<compile_context>
chip_gen: v6e
topology: v6e:2x2x1
jax: 0.10.0
libtpu: 0.0.40
codegen_flags: <defaults>
</compile_context>

<pallas_src>
from functools import partial

import jax
import jax.numpy as jnp
from jax.experimental import pallas as pl
from jax.experimental.pallas import tpu as pltpu


# ---------------------------------------------------------------------------
# In-kernel helpers
# ---------------------------------------------------------------------------
def _conv3x3_flat(act, w_ref):
    """3x3 / stride-1 / pad-1 conv of `act` (tn, H, W, Cp) against w_ref of
    shape (3, 3*Cp, Cp).  Returns a flat f32 accumulator (tn*H*W, Cp).

    The three dw taps are built with pltpu.roll along the W (sublane) axis +
    boundary masks and concatenated along channels (deep-K); the three dh
    taps are whole-row shifts (cheap, non-minor axis)."""
    tn, H, W, Cp = act.shape

    wi = jax.lax.broadcasted_iota(jnp.int32, act.shape, 2)     # index along W
    # left[w]  = act[w-1]  (invalid at w == 0)
    left = jnp.where(wi == 0, 0.0, pltpu.roll(act, shift=1, axis=2))
    # right[w] = act[w+1]  (invalid at w == W-1)
    right = jnp.where(wi == W - 1, 0.0, pltpu.roll(act, shift=W - 1, axis=2))

    # channel-concat in dw order (0, 1, 2) -> matches weight reshape (kw, cin)
    cat = jnp.concatenate([left, act, right], axis=-1)          # (tn,H,W,3Cp)

    zrow = jnp.zeros((tn, 1, W, 3 * Cp), cat.dtype)
    taps = (
        jnp.concatenate([zrow, cat[:, :H - 1]], axis=1),        # dh=0: x[h-1]
        cat,                                                    # dh=1: x[h]
        jnp.concatenate([cat[:, 1:], zrow], axis=1),            # dh=2: x[h+1]
    )

    acc = jnp.zeros((tn * H * W, Cp), jnp.float32)
    for dh in range(3):                                         # 3 deep-K matmuls
        acc = acc + jnp.dot(taps[dh].reshape(tn * H * W, 3 * Cp), w_ref[dh],
                            preferred_element_type=jnp.float32)
    return acc


def _write_conv_outputs(acc, y_ref, st_ref):
    """Write conv result and single-pass BN partials (sum, sum of squares)."""
    s = jnp.sum(acc, axis=0, keepdims=True)                     # (1, Cp)
    sq = jnp.sum(acc * acc, axis=0, keepdims=True)              # (1, Cp)
    st_ref[...] = jnp.concatenate([s, sq], axis=0)[None]        # (1, 2, Cp)
    y_ref[...] = acc.reshape(y_ref.shape)


# ---------------------------------------------------------------------------
# Kernels
# ---------------------------------------------------------------------------
def _conv_stats_kernel(x_ref, w_ref, y_ref, st_ref):
    """Stage 1: conv1 + BN1 partial statistics."""
    acc = _conv3x3_flat(x_ref[...], w_ref)
    _write_conv_outputs(acc, y_ref, st_ref)


def _bn_relu_conv_stats_kernel(y1_ref, ss_ref, w_ref, y2_ref, st_ref):
    """Stage 2: apply BN1 (scale/shift), ReLU, conv2 + BN2 partial stats."""
    ssv = ss_ref[...]                                           # (2, Cp)
    scale, shift = ssv[0:1], ssv[1:2]                           # (1, Cp) each
    act = jnp.maximum(y1_ref[...] * scale + shift, 0.0).astype(w_ref.dtype)
    acc = _conv3x3_flat(act, w_ref)
    _write_conv_outputs(acc, y2_ref, st_ref)


def _bn_add_relu_kernel(y2_ref, x_ref, ss_ref, out_ref):
    """Stage 3: apply BN2, residual add (identity), ReLU."""
    ssv = ss_ref[...]
    res = y2_ref[...] * ssv[0:1] + ssv[1:2] + x_ref[...].astype(jnp.float32)
    out_ref[...] = jnp.maximum(res, 0.0).astype(out_ref.dtype)


# ---------------------------------------------------------------------------
# Wrapper
# ---------------------------------------------------------------------------
def _finalize_bn(partial_stats, gamma, beta, count, eps):
    """(ntiles, 2, Cp) partials -> packed (2, Cp) [scale; shift]."""
    s = jnp.sum(partial_stats, axis=0)                          # (2, Cp)
    mean = s[0] / count
    var = jnp.maximum(s[1] / count - mean * mean, 0.0)          # biased var
    scale = gamma * jax.lax.rsqrt(var + eps)
    shift = beta - mean * scale
    return jnp.stack([scale, shift]).astype(jnp.float32)        # (2, Cp)


@partial(jax.jit, static_argnames=("eps",))
def basic_block_pallas(x_nchw, w1_oihw, g1, b1, w2_oihw, g2, b2, eps=1e-5):
    """NCHW in / NCHW out, matching the PyTorch BasicBlock (training-mode BN)."""
    x = jnp.transpose(x_nchw, (0, 2, 3, 1))                     # NHWC
    N, H, W, C = x.shape
    Cout = w1_oihw.shape[0]
    assert C == Cout, "no downsample => inplanes must equal planes"

    LANE = 128
    Cp = max(LANE, -(-C // LANE) * LANE)                        # lane-dense channels
    dt = x.dtype

    xp = x if Cp == C else jnp.pad(x, ((0, 0), (0, 0), (0, 0), (0, Cp - C)))

    def prep_w(w):
        w = jnp.transpose(w, (2, 3, 1, 0)).astype(dt)           # OIHW -> HWIO
        w = jnp.pad(w, ((0, 0), (0, 0), (0, Cp - C), (0, Cp - C)))
        return w.reshape(3, 3 * Cp, Cp)                         # (kh, kw*Cin, Cout)

    w1p, w2p = prep_w(w1_oihw), prep_w(w2_oihw)

    def pad_c(v):
        return jnp.pad(v.astype(jnp.float32), (0, Cp - C))

    g1p, b1p, g2p, b2p = pad_c(g1), pad_c(b1), pad_c(g2), pad_c(b2)

    # Tile over the batch; grid steps are independent ("parallel" => megacore
    # sharding on multi-TC chips).
    # TODO(synk): for large spatial extents also tile H (VMEM budget per chip).
    tile_n = 1
    assert N % tile_n == 0
    ntiles = N // tile_n
    grid = (ntiles,)
    cparams = pltpu.CompilerParams(dimension_semantics=("parallel",))

    img_spec = pl.BlockSpec((tile_n, H, W, Cp), lambda i: (i, 0, 0, 0))
    w_spec = pl.BlockSpec((3, 3 * Cp, Cp), lambda i: (0, 0, 0))
    ss_spec = pl.BlockSpec((2, Cp), lambda i: (0, 0))
    st_spec = pl.BlockSpec((1, 2, Cp), lambda i: (i, 0, 0))

    conv_out_shape = (jax.ShapeDtypeStruct((N, H, W, Cp), jnp.float32),
                      jax.ShapeDtypeStruct((ntiles, 2, Cp), jnp.float32))

    # --- stage 1: conv1 (+ BN1 partial statistics) ---------------------------
    y1, st1 = pl.pallas_call(
        _conv_stats_kernel,
        grid=grid,
        in_specs=[img_spec, w_spec],
        out_specs=(img_spec, st_spec),
        out_shape=conv_out_shape,
        compiler_params=cparams,
    )(xp, w1p)

    count = float(N * H * W)
    ss1 = _finalize_bn(st1, g1p, b1p, count, eps)

    # --- stage 2: BN1 apply + ReLU + conv2 (+ BN2 partial statistics) --------
    y2, st2 = pl.pallas_call(
        _bn_relu_conv_stats_kernel,
        grid=grid,
        in_specs=[img_spec, ss_spec, w_spec],
        out_specs=(img_spec, st_spec),
        out_shape=conv_out_shape,
        compiler_params=cparams,
    )(y1, ss1, w2p)

    ss2 = _finalize_bn(st2, g2p, b2p, count, eps)

    # --- stage 3: BN2 apply + residual add + ReLU -----------------------------
    outp = pl.pallas_call(
        _bn_add_relu_kernel,
        grid=grid,
        in_specs=[img_spec, img_spec, ss_spec],
        out_specs=img_spec,
        out_shape=jax.ShapeDtypeStruct((N, H, W, Cp), dt),
        compiler_params=cparams,
    )(y2, xp, ss2)

    return jnp.transpose(outp[..., :C], (0, 3, 1, 2))           # back to NCHW


# ---------------------------------------------------------------------------
# Pure-JAX reference (NCHW, OIHW) mirroring the PyTorch forward
# ---------------------------------------------------------------------------
def basic_block_ref(x, w1, g1, b1, w2, g2, b2, eps=1e-5):
    def conv(y, w):
        return jax.lax.conv_general_dilated(
            y, w, window_strides=(1, 1), padding=((1, 1), (1, 1)),
            dimension_numbers=('NCHW', 'OIHW', 'NCHW'))

    def bn(y, g, b):
        mean = jnp.mean(y, axis=(0, 2, 3), keepdims=True)
        var = jnp.mean((y - mean) ** 2, axis=(0, 2, 3), keepdims=True)
        return ((y - mean) * jax.lax.rsqrt(var + eps)
                * g.reshape(1, -1, 1, 1) + b.reshape(1, -1, 1, 1))

    out = jnp.maximum(bn(conv(x, w1), g1, b1), 0.0)
    out = bn(conv(out, w2), g2, b2)
    return jnp.maximum(out + x, 0.0)


if __name__ == "__main__":
    # small shapes: batch=2, inplanes=planes=4, spatial=16, stride=1
    N, C, H, W = 2, 4, 16, 16
    key = jax.random.PRNGKey(0)
    kx, k1, k2, kg1, kb1, kg2, kb2 = jax.random.split(key, 7)

    x = jax.random.normal(kx, (N, C, H, W), jnp.float32)
    w1 = jax.random.normal(k1, (C, C, 3, 3), jnp.float32) * 0.1   # conv1 (OIHW)
    w2 = jax.random.normal(k2, (C, C, 3, 3), jnp.float32) * 0.1   # conv2 (OIHW)
    g1 = 1.0 + 0.1 * jax.random.normal(kg1, (C,), jnp.float32)    # bn1 weight
    b1 = 0.1 * jax.random.normal(kb1, (C,), jnp.float32)          # bn1 bias
    g2 = 1.0 + 0.1 * jax.random.normal(kg2, (C,), jnp.float32)    # bn2 weight
    b2 = 0.1 * jax.random.normal(kb2, (C,), jnp.float32)          # bn2 bias

    out = basic_block_pallas(x, w1, g1, b1, w2, g2, b2)
    out = jax.block_until_ready(out)

    ref = jax.block_until_ready(basic_block_ref(x, w1, g1, b1, w2, g2, b2))
    assert out.shape == (N, C, H, W)
    assert jnp.allclose(out, ref, atol=5e-4, rtol=5e-4), \
        f"max abs err {jnp.max(jnp.abs(out - ref))}"

    print("KERNEL_OK")
</pallas_src>

<mosaic_0001>
module attributes {stable_mosaic.version = 11 : i64} {
  func.func @_conv_stats_kernel(%arg0: i32, %arg1: memref<1x16x16x128xf32, #tpu.memory_space<vmem>>, %arg2: memref<3x384x128xf32, #tpu.memory_space<vmem>>, %arg3: memref<1x16x16x128xf32, #tpu.memory_space<vmem>>, %arg4: memref<1x2x128xf32, #tpu.memory_space<vmem>>) attributes {dimension_semantics = [#tpu.dimension_semantics<parallel>], iteration_bounds = array<i64: 2>, scalar_prefetch = 0 : i64, scratch_operands = 0 : i64, tpu.core_type = #tpu.core_type<tc>, window_params = [{transform_indices = @transform_0, window_bounds = array<i64: 1, 16, 16, 128>}, {pipeline_mode = #tpu.pipeline_mode<synchronous>, transform_indices = @transform_1, window_bounds = array<i64: 3, 384, 128>}, {transform_indices = @transform_2, window_bounds = array<i64: 1, 16, 16, 128>}, {transform_indices = @transform_3, window_bounds = array<i64: 1, 2, 128>}]} {
    %c0 = arith.constant 0 : index
    %c0_0 = arith.constant 0 : index
    %c0_1 = arith.constant 0 : index
    %c0_2 = arith.constant 0 : index
    %0 = vector.load %arg1[%c0, %c0_0, %c0_1, %c0_2] : memref<1x16x16x128xf32, #tpu.memory_space<vmem>>, vector<1x16x16x128xf32>
    %1 = tpu.iota {dimensions = array<i32: 2>} : vector<1x16x16x128xi32>
    %c0_i32 = arith.constant 0 : i32
    %2 = vector.broadcast %c0_i32 : i32 to vector<1x16x16x128xi32>
    %3 = arith.cmpi eq, %1, %2 : vector<1x16x16x128xi32>
    %c1_i32 = arith.constant 1 : i32
    %4 = tpu.dynamic_rotate %0 by %c1_i32 dim 2 : vector<1x16x16x128xf32>, i32 -> vector<1x16x16x128xf32>
    %cst = arith.constant 0.000000e+00 : f32
    %5 = vector.broadcast %cst : f32 to vector<1x16x16x128xf32>
    %6 = arith.select %3, %5, %4 : vector<1x16x16x128xi1>, vector<1x16x16x128xf32>
    %c15_i32 = arith.constant 15 : i32
    %7 = vector.broadcast %c15_i32 : i32 to vector<1x16x16x128xi32>
    %8 = arith.cmpi eq, %1, %7 : vector<1x16x16x128xi32>
    %c15_i32_3 = arith.constant 15 : i32
    %9 = tpu.dynamic_rotate %0 by %c15_i32_3 dim 2 : vector<1x16x16x128xf32>, i32 -> vector<1x16x16x128xf32>
    %cst_4 = arith.constant 0.000000e+00 : f32
    %10 = vector.broadcast %cst_4 : f32 to vector<1x16x16x128xf32>
    %11 = arith.select %8, %10, %9 : vector<1x16x16x128xi1>, vector<1x16x16x128xf32>
    %12 = tpu.concatenate %6, %0, %11 in 3 : vector<1x16x16x128xf32>, vector<1x16x16x128xf32>, vector<1x16x16x128xf32> -> vector<1x16x16x384xf32>
    %cst_5 = arith.constant 0.000000e+00 : f32
    %13 = vector.broadcast %cst_5 : f32 to vector<1x1x16x384xf32>
    %14 = vector.extract_strided_slice %12 {offsets = [0, 0, 0, 0], sizes = [1, 15, 16, 384], strides = [1, 1, 1, 1]} : vector<1x16x16x384xf32> to vector<1x15x16x384xf32>
    %15 = tpu.concatenate %13, %14 in 1 : vector<1x1x16x384xf32>, vector<1x15x16x384xf32> -> vector<1x16x16x384xf32>
    %16 = vector.extract_strided_slice %12 {offsets = [0, 1, 0, 0], sizes = [1, 15, 16, 384], strides = [1, 1, 1, 1]} : vector<1x16x16x384xf32> to vector<1x15x16x384xf32>
    %17 = tpu.concatenate %16, %13 in 1 : vector<1x15x16x384xf32>, vector<1x1x16x384xf32> -> vector<1x16x16x384xf32>
    %cst_6 = arith.constant 0.000000e+00 : f32
    %18 = vector.broadcast %cst_6 : f32 to vector<256x128xf32>
    %19 = vector.shape_cast %15 : vector<1x16x16x384xf32> to vector<256x384xf32>
    %c0_7 = arith.constant 0 : index
    %c0_8 = arith.constant 0 : index
    %c0_9 = arith.constant 0 : index
    %20 = vector.load %arg2[%c0_7, %c0_8, %c0_9] : memref<3x384x128xf32, #tpu.memory_space<vmem>>, vector<1x384x128xf32>
    %21 = vector.shape_cast %20 : vector<1x384x128xf32> to vector<384x128xf32>
    %cst_10 = arith.constant dense<0.000000e+00> : vector<256x128xf32>
    %22 = tpu.matmul %19, %21, %cst_10 {dimension_numbers = #tpu.dot_dimension_numbers<[1], [0], [0], [1], [0, 0, 1, 1], [], []>} : vector<256x384xf32>, vector<384x128xf32>, vector<256x128xf32> -> vector<256x128xf32>
    %23 = arith.addf %18, %22 : vector<256x128xf32>
    %24 = vector.shape_cast %12 : vector<1x16x16x384xf32> to vector<256x384xf32>
    %c1 = arith.constant 1 : index
    %c0_11 = arith.constant 0 : index
    %c0_12 = arith.constant 0 : index
    %25 = vector.load %arg2[%c1, %c0_11, %c0_12] : memref<3x384x128xf32, #tpu.memory_space<vmem>>, vector<1x384x128xf32>
    %26 = vector.shape_cast %25 : vector<1x384x128xf32> to vector<384x128xf32>
    %cst_13 = arith.constant dense<0.000000e+00> : vector<256x128xf32>
    %27 = tpu.matmul %24, %26, %cst_13 {dimension_numbers = #tpu.dot_dimension_numbers<[1], [0], [0], [1], [0, 0, 1, 1], [], []>} : vector<256x384xf32>, vector<384x128xf32>, vector<256x128xf32> -> vector<256x128xf32>
    %28 = arith.addf %23, %27 : vector<256x128xf32>
    %29 = vector.shape_cast %17 : vector<1x16x16x384xf32> to vector<256x384xf32>
    %c2 = arith.constant 2 : index
    %c0_14 = arith.constant 0 : index
    %c0_15 = arith.constant 0 : index
    %30 = vector.load %arg2[%c2, %c0_14, %c0_15] : memref<3x384x128xf32, #tpu.memory_space<vmem>>, vector<1x384x128xf32>
    %31 = vector.shape_cast %30 : vector<1x384x128xf32> to vector<384x128xf32>
    %cst_16 = arith.constant dense<0.000000e+00> : vector<256x128xf32>
    %32 = tpu.matmul %29, %31, %cst_16 {dimension_numbers = #tpu.dot_dimension_numbers<[1], [0], [0], [1], [0, 0, 1, 1], [], []>} : vector<256x384xf32>, vector<384x128xf32>, vector<256x128xf32> -> vector<256x128xf32>
    %33 = arith.addf %28, %32 : vector<256x128xf32>
    %cst_17 = arith.constant dense<0.000000e+00> : vector<128xf32>
    %34 = vector.multi_reduction <add>, %33, %cst_17 [0] : vector<256x128xf32> to vector<128xf32>
    %35 = vector.shape_cast %34 : vector<128xf32> to vector<1x128xf32>
    %36 = arith.mulf %33, %33 : vector<256x128xf32>
    %cst_18 = arith.constant dense<0.000000e+00> : vector<128xf32>
    %37 = vector.multi_reduction <add>, %36, %cst_18 [0] : vector<256x128xf32> to vector<128xf32>
    %38 = vector.shape_cast %37 : vector<128xf32> to vector<1x128xf32>
    %39 = tpu.concatenate %35, %38 in 0 : vector<1x128xf32>, vector<1x128xf32> -> vector<2x128xf32>
    %40 = vector.shape_cast %39 : vector<2x128xf32> to vector<1x2x128xf32>
    %c0_19 = arith.constant 0 : index
    %c0_20 = arith.constant 0 : index
    %c0_21 = arith.constant 0 : index
    %41 = vector.load %arg4[%c0_19, %c0_20, %c0_21] : memref<1x2x128xf32, #tpu.memory_space<vmem>>, vector<1x2x128xf32>
    tpu.vector_store %arg4[%c0_19, %c0_20, %c0_21], %40 {strides = array<i32>} : memref<1x2x128xf32, #tpu.memory_space<vmem>>, vector<1x2x128xf32>,
    %42 = vector.shape_cast %33 : vector<256x128xf32> to vector<1x16x16x128xf32>
    %c0_22 = arith.constant 0 : index
    %c0_23 = arith.constant 0 : index
    %c0_24 = arith.constant 0 : index
    %c0_25 = arith.constant 0 : index
    %43 = vector.load %arg3[%c0_22, %c0_23, %c0_24, %c0_25] : memref<1x16x16x128xf32, #tpu.memory_space<vmem>>, vector<1x16x16x128xf32>
    tpu.vector_store %arg3[%c0_22, %c0_23, %c0_24, %c0_25], %42 {strides = array<i32>} : memref<1x16x16x128xf32, #tpu.memory_space<vmem>>, vector<1x16x16x128xf32>,
    return
  }
  func.func @transform_0(%arg0: i32) -> (i32, i32, i32, i32) {
    %c0_i32 = arith.constant 0 : i32
    %c0_i32_0 = arith.constant 0 : i32
    %c0_i32_1 = arith.constant 0 : i32
    %c0_i32_2 = arith.constant 0 : i32
    return %arg0, %c0_i32, %c0_i32_0, %c0_i32_1 : i32, i32, i32, i32
  }
  func.func @transform_1(%arg0: i32) -> (i32, i32, i32) {
    %c0_i32 = arith.constant 0 : i32
    %c0_i32_0 = arith.constant 0 : i32
    %c0_i32_1 = arith.constant 0 : i32
    %c0_i32_2 = arith.constant 0 : i32
    return %c0_i32, %c0_i32_0, %c0_i32_1 : i32, i32, i32
  }
  func.func @transform_2(%arg0: i32) -> (i32, i32, i32, i32) {
    %c0_i32 = arith.constant 0 : i32
    %c0_i32_0 = arith.constant 0 : i32
    %c0_i32_1 = arith.constant 0 : i32
    %c0_i32_2 = arith.constant 0 : i32
    return %arg0, %c0_i32, %c0_i32_0, %c0_i32_1 : i32, i32, i32, i32
  }
  func.func @transform_3(%arg0: i32) -> (i32, i32, i32) {
    %c0_i32 = arith.constant 0 : i32
    %c0_i32_0 = arith.constant 0 : i32
    %c0_i32_1 = arith.constant 0 : i32
    return %arg0, %c0_i32, %c0_i32_0 : i32, i32, i32
  }
}

module attributes {stable_mosaic.version = 11 : i64} {
  func.func @_bn_relu_conv_stats_kernel(%arg0: i32, %arg1: memref<1x16x16x128xf32, #tpu.memory_space<vmem>>, %arg2: memref<2x128xf32, #tpu.memory_space<vmem>>, %arg3: memref<3x384x128xf32, #tpu.memory_space<vmem>>, %arg4: memref<1x16x16x128xf32, #tpu.memory_space<vmem>>, %arg5: memref<1x2x128xf32, #tpu.memory_space<vmem>>) attributes {dimension_semantics = [#tpu.dimension_semantics<parallel>], iteration_bounds = array<i64: 2>, scalar_prefetch = 0 : i64, scratch_operands = 0 : i64, tpu.core_type = #tpu.core_type<tc>, window_params = [{transform_indices = @transform_0, window_bounds = array<i64: 1, 16, 16, 128>}, {pipeline_mode = #tpu.pipeline_mode<synchronous>, transform_indices = @transform_1, window_bounds = array<i64: 2, 128>}, {pipeline_mode = #tpu.pipeline_mode<synchronous>, transform_indices = @transform_2, window_bounds = array<i64: 3, 384, 128>}, {transform_indices = @transform_3, window_bounds = array<i64: 1, 16, 16, 128>}, {transform_indices = @transform_4, window_bounds = array<i64: 1, 2, 128>}]} {
    %c0 = arith.constant 0 : index
    %c0_0 = arith.constant 0 : index
    %0 = vector.load %arg2[%c0, %c0_0] : memref<2x128xf32, #tpu.memory_space<vmem>>, vector<2x128xf32>
    %1 = vector.extract_strided_slice %0 {offsets = [0, 0], sizes = [1, 128], strides = [1, 1]} : vector<2x128xf32> to vector<1x128xf32>
    %2 = vector.extract_strided_slice %0 {offsets = [1, 0], sizes = [1, 128], strides = [1, 1]} : vector<2x128xf32> to vector<1x128xf32>
    %c0_1 = arith.constant 0 : index
    %c0_2 = arith.constant 0 : index
    %c0_3 = arith.constant 0 : index
    %c0_4 = arith.constant 0 : index
    %3 = vector.load %arg1[%c0_1, %c0_2, %c0_3, %c0_4] : memref<1x16x16x128xf32, #tpu.memory_space<vmem>>, vector<1x16x16x128xf32>
    %4 = vector.shape_cast %1 : vector<1x128xf32> to vector<1x1x1x128xf32>
    %5 = vector.broadcast %4 : vector<1x1x1x128xf32> to vector<1x16x16x128xf32>
    %6 = arith.mulf %3, %5 : vector<1x16x16x128xf32>
    %7 = vector.shape_cast %2 : vector<1x128xf32> to vector<1x1x1x128xf32>
    %8 = vector.broadcast %7 : vector<1x1x1x128xf32> to vector<1x16x16x128xf32>
    %9 = arith.addf %6, %8 : vector<1x16x16x128xf32>
    %cst = arith.constant 0.000000e+00 : f32
    %10 = vector.broadcast %cst : f32 to vector<1x16x16x128xf32>
    %11 = arith.maximumf %9, %10 : vector<1x16x16x128xf32>
    %12 = tpu.iota {dimensions = array<i32: 2>} : vector<1x16x16x128xi32>
    %c0_i32 = arith.constant 0 : i32
    %13 = vector.broadcast %c0_i32 : i32 to vector<1x16x16x128xi32>
    %14 = arith.cmpi eq, %12, %13 : vector<1x16x16x128xi32>
    %c1_i32 = arith.constant 1 : i32
    %15 = tpu.dynamic_rotate %11 by %c1_i32 dim 2 : vector<1x16x16x128xf32>, i32 -> vector<1x16x16x128xf32>
    %cst_5 = arith.constant 0.000000e+00 : f32
    %16 = vector.broadcast %cst_5 : f32 to vector<1x16x16x128xf32>
    %17 = arith.select %14, %16, %15 : vector<1x16x16x128xi1>, vector<1x16x16x128xf32>
    %c15_i32 = arith.constant 15 : i32
    %18 = vector.broadcast %c15_i32 : i32 to vector<1x16x16x128xi32>
    %19 = arith.cmpi eq, %12, %18 : vector<1x16x16x128xi32>
    %c15_i32_6 = arith.constant 15 : i32
    %20 = tpu.dynamic_rotate %11 by %c15_i32_6 dim 2 : vector<1x16x16x128xf32>, i32 -> vector<1x16x16x128xf32>
    %cst_7 = arith.constant 0.000000e+00 : f32
    %21 = vector.broadcast %cst_7 : f32 to vector<1x16x16x128xf32>
    %22 = arith.select %19, %21, %20 : vector<1x16x16x128xi1>, vector<1x16x16x128xf32>
    %23 = tpu.concatenate %17, %11, %22 in 3 : vector<1x16x16x128xf32>, vector<1x16x16x128xf32>, vector<1x16x16x128xf32> -> vector<1x16x16x384xf32>
    %cst_8 = arith.constant 0.000000e+00 : f32
    %24 = vector.broadcast %cst_8 : f32 to vector<1x1x16x384xf32>
    %25 = vector.extract_strided_slice %23 {offsets = [0, 0, 0, 0], sizes = [1, 15, 16, 384], strides = [1, 1, 1, 1]} : vector<1x16x16x384xf32> to vector<1x15x16x384xf32>
    %26 = tpu.concatenate %24, %25 in 1 : vector<1x1x16x384xf32>, vector<1x15x16x384xf32> -> vector<1x16x16x384xf32>
    %27 = vector.extract_strided_slice %23 {offsets = [0, 1, 0, 0], sizes = [1, 15, 16, 384], strides = [1, 1, 1, 1]} : vector<1x16x16x384xf32> to vector<1x15x16x384xf32>
    %28 = tpu.concatenate %27, %24 in 1 : vector<1x15x16x384xf32>, vector<1x1x16x384xf32> -> vector<1x16x16x384xf32>
    %cst_9 = arith.constant 0.000000e+00 : f32
    %29 = vector.broadcast %cst_9 : f32 to vector<256x128xf32>
    %30 = vector.shape_cast %26 : vector<1x16x16x384xf32> to vector<256x384xf32>
    %c0_10 = arith.constant 0 : index
    %c0_11 = arith.constant 0 : index
    %c0_12 = arith.constant 0 : index
    %31 = vector.load %arg3[%c0_10, %c0_11, %c0_12] : memref<3x384x128xf32, #tpu.memory_space<vmem>>, vector<1x384x128xf32>
    %32 = vector.shape_cast %31 : vector<1x384x128xf32> to vector<384x128xf32>
    %cst_13 = arith.constant dense<0.000000e+00> : vector<256x128xf32>
    %33 = tpu.matmul %30, %32, %cst_13 {dimension_numbers = #tpu.dot_dimension_numbers<[1], [0], [0], [1], [0, 0, 1, 1], [], []>} : vector<256x384xf32>, vector<384x128xf32>, vector<256x128xf32> -> vector<256x128xf32>
    %34 = arith.addf %29, %33 : vector<256x128xf32>
    %35 = vector.shape_cast %23 : vector<1x16x16x384xf32> to vector<256x384xf32>
    %c1 = arith.constant 1 : index
    %c0_14 = arith.constant 0 : index
    %c0_15 = arith.constant 0 : index
    %36 = vector.load %arg3[%c1, %c0_14, %c0_15] : memref<3x384x128xf32, #tpu.memory_space<vmem>>, vector<1x384x128xf32>
    %37 = vector.shape_cast %36 : vector<1x384x128xf32> to vector<384x128xf32>
    %cst_16 = arith.constant dense<0.000000e+00> : vector<256x128xf32>
    %38 = tpu.matmul %35, %37, %cst_16 {dimension_numbers = #tpu.dot_dimension_numbers<[1], [0], [0], [1], [0, 0, 1, 1], [], []>} : vector<256x384xf32>, vector<384x128xf32>, vector<256x128xf32> -> vector<256x128xf32>
    %39 = arith.addf %34, %38 : vector<256x128xf32>
    %40 = vector.shape_cast %28 : vector<1x16x16x384xf32> to vector<256x384xf32>
    %c2 = arith.constant 2 : index
    %c0_17 = arith.constant 0 : index
    %c0_18 = arith.constant 0 : index
    %41 = vector.load %arg3[%c2, %c0_17, %c0_18] : memref<3x384x128xf32, #tpu.memory_space<vmem>>, vector<1x384x128xf32>
    %42 = vector.shape_cast %41 : vector<1x384x128xf32> to vector<384x128xf32>
    %cst_19 = arith.constant dense<0.000000e+00> : vector<256x128xf32>
    %43 = tpu.matmul %40, %42, %cst_19 {dimension_numbers = #tpu.dot_dimension_numbers<[1], [0], [0], [1], [0, 0, 1, 1], [], []>} : vector<256x384xf32>, vector<384x128xf32>, vector<256x128xf32> -> vector<256x128xf32>
    %44 = arith.addf %39, %43 : vector<256x128xf32>
    %cst_20 = arith.constant dense<0.000000e+00> : vector<128xf32>
    %45 = vector.multi_reduction <add>, %44, %cst_20 [0] : vector<256x128xf32> to vector<128xf32>
    %46 = vector.shape_cast %45 : vector<128xf32> to vector<1x128xf32>
    %47 = arith.mulf %44, %44 : vector<256x128xf32>
    %cst_21 = arith.constant dense<0.000000e+00> : vector<128xf32>
    %48 = vector.multi_reduction <add>, %47, %cst_21 [0] : vector<256x128xf32> to vector<128xf32>
    %49 = vector.shape_cast %48 : vector<128xf32> to vector<1x128xf32>
    %50 = tpu.concatenate %46, %49 in 0 : vector<1x128xf32>, vector<1x128xf32> -> vector<2x128xf32>
    %51 = vector.shape_cast %50 : vector<2x128xf32> to vector<1x2x128xf32>
    %c0_22 = arith.constant 0 : index
    %c0_23 = arith.constant 0 : index
    %c0_24 = arith.constant 0 : index
    %52 = vector.load %arg5[%c0_22, %c0_23, %c0_24] : memref<1x2x128xf32, #tpu.memory_space<vmem>>, vector<1x2x128xf32>
    tpu.vector_store %arg5[%c0_22, %c0_23, %c0_24], %51 {strides = array<i32>} : memref<1x2x128xf32, #tpu.memory_space<vmem>>, vector<1x2x128xf32>,
    %53 = vector.shape_cast %44 : vector<256x128xf32> to vector<1x16x16x128xf32>
    %c0_25 = arith.constant 0 : index
    %c0_26 = arith.constant 0 : index
    %c0_27 = arith.constant 0 : index
    %c0_28 = arith.constant 0 : index
    %54 = vector.load %arg4[%c0_25, %c0_26, %c0_27, %c0_28] : memref<1x16x16x128xf32, #tpu.memory_space<vmem>>, vector<1x16x16x128xf32>
    tpu.vector_store %arg4[%c0_25, %c0_26, %c0_27, %c0_28], %53 {strides = array<i32>} : memref<1x16x16x128xf32, #tpu.memory_space<vmem>>, vector<1x16x16x128xf32>,
    return
  }
  func.func @transform_0(%arg0: i32) -> (i32, i32, i32, i32) {
    %c0_i32 = arith.constant 0 : i32
    %c0_i32_0 = arith.constant 0 : i32
    %c0_i32_1 = arith.constant 0 : i32
    %c0_i32_2 = arith.constant 0 : i32
    return %arg0, %c0_i32, %c0_i32_0, %c0_i32_1 : i32, i32, i32, i32
  }
  func.func @transform_1(%arg0: i32) -> (i32, i32) {
    %c0_i32 = arith.constant 0 : i32
    %c0_i32_0 = arith.constant 0 : i32
    %c0_i32_1 = arith.constant 0 : i32
    return %c0_i32, %c0_i32_0 : i32, i32
  }
  func.func @transform_2(%arg0: i32) -> (i32, i32, i32) {
    %c0_i32 = arith.constant 0 : i32
    %c0_i32_0 = arith.constant 0 : i32
    %c0_i32_1 = arith.constant 0 : i32
    %c0_i32_2 = arith.constant 0 : i32
    return %c0_i32, %c0_i32_0, %c0_i32_1 : i32, i32, i32
  }
  func.func @transform_3(%arg0: i32) -> (i32, i32, i32, i32) {
    %c0_i32 = arith.constant 0 : i32
    %c0_i32_0 = arith.constant 0 : i32
    %c0_i32_1 = arith.constant 0 : i32
    %c0_i32_2 = arith.constant 0 : i32
    return %arg0, %c0_i32, %c0_i32_0, %c0_i32_1 : i32, i32, i32, i32
  }
  func.func @transform_4(%arg0: i32) -> (i32, i32, i32) {
    %c0_i32 = arith.constant 0 : i32
    %c0_i32_0 = arith.constant 0 : i32
    %c0_i32_1 = arith.constant 0 : i32
    return %arg0, %c0_i32, %c0_i32_0 : i32, i32, i32
  }
}

module attributes {stable_mosaic.version = 11 : i64} {
  func.func @_bn_add_relu_kernel(%arg0: i32, %arg1: memref<1x16x16x128xf32, #tpu.memory_space<vmem>>, %arg2: memref<1x16x16x128xf32, #tpu.memory_space<vmem>>, %arg3: memref<2x128xf32, #tpu.memory_space<vmem>>, %arg4: memref<1x16x16x128xf32, #tpu.memory_space<vmem>>) attributes {dimension_semantics = [#tpu.dimension_semantics<parallel>], iteration_bounds = array<i64: 2>, scalar_prefetch = 0 : i64, scratch_operands = 0 : i64, tpu.core_type = #tpu.core_type<tc>, window_params = [{transform_indices = @transform_0, window_bounds = array<i64: 1, 16, 16, 128>}, {transform_indices = @transform_1, window_bounds = array<i64: 1, 16, 16, 128>}, {pipeline_mode = #tpu.pipeline_mode<synchronous>, transform_indices = @transform_2, window_bounds = array<i64: 2, 128>}, {transform_indices = @transform_3, window_bounds = array<i64: 1, 16, 16, 128>}]} {
    %c0 = arith.constant 0 : index
    %c0_0 = arith.constant 0 : index
    %0 = vector.load %arg3[%c0, %c0_0] : memref<2x128xf32, #tpu.memory_space<vmem>>, vector<2x128xf32>
    %c0_1 = arith.constant 0 : index
    %c0_2 = arith.constant 0 : index
    %c0_3 = arith.constant 0 : index
    %c0_4 = arith.constant 0 : index
    %1 = vector.load %arg1[%c0_1, %c0_2, %c0_3, %c0_4] : memref<1x16x16x128xf32, #tpu.memory_space<vmem>>, vector<1x16x16x128xf32>
    %2 = vector.extract_strided_slice %0 {offsets = [0, 0], sizes = [1, 128], strides = [1, 1]} : vector<2x128xf32> to vector<1x128xf32>
    %3 = vector.shape_cast %2 : vector<1x128xf32> to vector<1x1x1x128xf32>
    %4 = vector.broadcast %3 : vector<1x1x1x128xf32> to vector<1x16x16x128xf32>
    %5 = arith.mulf %1, %4 : vector<1x16x16x128xf32>
    %6 = vector.extract_strided_slice %0 {offsets = [1, 0], sizes = [1, 128], strides = [1, 1]} : vector<2x128xf32> to vector<1x128xf32>
    %7 = vector.shape_cast %6 : vector<1x128xf32> to vector<1x1x1x128xf32>
    %8 = vector.broadcast %7 : vector<1x1x1x128xf32> to vector<1x16x16x128xf32>
    %9 = arith.addf %5, %8 : vector<1x16x16x128xf32>
    %c0_5 = arith.constant 0 : index
    %c0_6 = arith.constant 0 : index
    %c0_7 = arith.constant 0 : index
    %c0_8 = arith.constant 0 : index
    %10 = vector.load %arg2[%c0_5, %c0_6, %c0_7, %c0_8] : memref<1x16x16x128xf32, #tpu.memory_space<vmem>>, vector<1x16x16x128xf32>
    %11 = arith.addf %9, %10 : vector<1x16x16x128xf32>
    %cst = arith.constant 0.000000e+00 : f32
    %12 = vector.broadcast %cst : f32 to vector<1x16x16x128xf32>
    %13 = arith.maximumf %11, %12 : vector<1x16x16x128xf32>
    %c0_9 = arith.constant 0 : index
    %c0_10 = arith.constant 0 : index
    %c0_11 = arith.constant 0 : index
    %c0_12 = arith.constant 0 : index
    %14 = vector.load %arg4[%c0_9, %c0_10, %c0_11, %c0_12] : memref<1x16x16x128xf32, #tpu.memory_space<vmem>>, vector<1x16x16x128xf32>
    tpu.vector_store %arg4[%c0_9, %c0_10, %c0_11, %c0_12], %13 {strides = array<i32>} : memref<1x16x16x128xf32, #tpu.memory_space<vmem>>, vector<1x16x16x128xf32>,
    return
  }
  func.func @transform_0(%arg0: i32) -> (i32, i32, i32, i32) {
    %c0_i32 = arith.constant 0 : i32
    %c0_i32_0 = arith.constant 0 : i32
    %c0_i32_1 = arith.constant 0 : i32
    %c0_i32_2 = arith.constant 0 : i32
    return %arg0, %c0_i32, %c0_i32_0, %c0_i32_1 : i32, i32, i32, i32
  }
  func.func @transform_1(%arg0: i32) -> (i32, i32, i32, i32) {
    %c0_i32 = arith.constant 0 : i32
    %c0_i32_0 = arith.constant 0 : i32
    %c0_i32_1 = arith.constant 0 : i32
    %c0_i32_2 = arith.constant 0 : i32
    return %arg0, %c0_i32, %c0_i32_0, %c0_i32_1 : i32, i32, i32, i32
  }
  func.func @transform_2(%arg0: i32) -> (i32, i32) {
    %c0_i32 = arith.constant 0 : i32
    %c0_i32_0 = arith.constant 0 : i32
    %c0_i32_1 = arith.constant 0 : i32
    return %c0_i32, %c0_i32_0 : i32, i32
  }
  func.func @transform_3(%arg0: i32) -> (i32, i32, i32, i32) {
    %c0_i32 = arith.constant 0 : i32
    %c0_i32_0 = arith.constant 0 : i32
    %c0_i32_1 = arith.constant 0 : i32
    %c0_i32_2 = arith.constant 0 : i32
    return %arg0, %c0_i32, %c0_i32_0, %c0_i32_1 : i32, i32, i32, i32
  }
}

</mosaic_0001>

<bundles_post_ra>
// kernel: basic_block_pallas.5
= control target key start
LH: loop header
LB: loop body
LE: loop exit
PB: predicated region body
PF: predicated region fallthrough
CT: control target
= control target key end

     0   :  { %s543_s12 = smov 0   ;;  %s741_s0 = inlined_call_operand.vmem [shape: f32[2,16,16,128], index: 0, kind: input, shape index: {}]   ;;  %s742_s1 = inlined_call_operand.vmem [shape: f32[2,16,16,128], index: 1, kind: input, shape index: {}]   ;;  %s743_s2 = inlined_call_operand.vmem [shape: f32[2,128], index: 2, kind: input, shape index: {}]   ;;  %s744_s3 = inlined_call_operand.vmem [shape: f32[2,16,16,128], index: 3, kind: output, shape index: {}]  }
   0x1 LB: > { %s491_s13 = sadd.s32 4294967295, %s521_s12   ;;  %p495_p0 = scmp.ge.s32.totalorder %s521_s12, 1  ;;  %s521_s12 = sphi %s543_s12, %s13_s12  }
   0x2   : > { %p147_p1 = scmp.lt.s32.totalorder %s521_s12, 3 }
   0x4   : > { %p148_p2 = pnand %p495_p0, %p147_p1 }
   0x5   : > { %p176_p3 = scmp.lt.s32.totalorder (!%p148_p2), %s491_s13, 1 }
   0x6   : > { %151 = sbr.rel (%p148_p2) target bundleno = 56 (0x38), region = 32 }
   0xb   : > { %v224_v0 = vlaneseq  ;;  %s746_s13 = smov (!%p176_p3, %s491_s13), 1  ;;  %v191_v2 = vld [vmem:[%s743_s2] sm:$0x3] }
   0xc   : > { %s554_s16 = sshll.u32 %s746_s13, 8 }
   0xd   : > { %v225_v1 = vshrl.u32 %v224_v0, 7  ;;  %s560_s19 = scalar_lea.vmem %s741_s0, %s554_s16  ;;  %s566_s22 = scalar_lea.vmem %s742_s1, %s554_s16 }
   0xe   : > { %v192_v5 = vld [vmem:[%s560_s19] sm:$0xff]  ;;  %v193_v8 = vld [vmem:[%s560_s19 + $0x8] sm:$0xff]  ;;  %v194_v10 = vld [vmem:[%s560_s19 + $0x10] sm:$0xff]  ;;  %s606_s25 = scalar_lea.vmem %s744_s3, %s554_s16 }
   0xf   : > { %v226_v3 = vsub.s32 0, %v225_v1  ;;  %v262_v4 = vsub.s32 1, %v225_v1  ;;  %v296_v9 = vld [vmem:[%s566_s22] sm:$0xff]  ;;  %v297_v13 = vld [vmem:[%s566_s22 + $0x8] sm:$0xff]  ;;  %v195_v15 = vld [vmem:[%s560_s19 + $0x18] sm:$0xff] }
  0x10   : > { %v196_v16 = vld [vmem:[%s560_s19 + $0x20] sm:$0xff]  ;;  %v298_v17 = vld [vmem:[%s566_s22 + $0x10] sm:$0xff]  ;;  %v299_v19 = vld [vmem:[%s566_s22 + $0x18] sm:$0xff] }
  0x11   : > { %v569_v6 = vrot.slane %v191_v2, %v226_v3  ;;  %v571_v7 = vrot.slane %v191_v2, %v262_v4  ;;  %v197_v21 = vld [vmem:[%s560_s19 + $0x28] sm:$0xff]  ;;  %v300_v25 = vld [vmem:[%s566_s22 + $0x20] sm:$0xff]  ;;  %v198_v27 = vld [vmem:[%s560_s19 + $0x30] sm:$0xff] }
  0x12   : > { %v199_v28 = vld [vmem:[%s560_s19 + $0x38] sm:$0xff]  ;;  %v301_v31 = vld [vmem:[%s566_s22 + $0x28] sm:$0xff]  ;;  %v302_v38 = vld [vmem:[%s566_s22 + $0x30] sm:$0xff] }
  0x13   : > { %v228_v11 = vmul.f32 %v569_v6, %v192_v5  ;;  %v229_v12 = vmul.f32 %v569_v6, %v193_v8  ;;  %v230_v14 = vmul.f32 %v569_v6, %v194_v10  ;;  %v231_v18 = vmul.f32 %v569_v6, %v195_v15  ;;  %v303_v39 = vld [vmem:[%s566_s22 + $0x38] sm:$0xff]  ;;  %v200_v44 = vld [vmem:[%s560_s19 + $0x40] sm:$0xff]  ;;  %v201_v45 = vld [vmem:[%s560_s19 + $0x48] sm:$0xff] }
  0x14   : > { %v232_v20 = vmul.f32 %v569_v6, %v196_v16  ;;  %v233_v26 = vmul.f32 %v569_v6, %v197_v21  ;;  %v234_v32 = vmul.f32 %v569_v6, %v198_v27  ;;  %v235_v33 = vmul.f32 %v569_v6, %v199_v28  ;;  %v202_v46 = vld [vmem:[%s560_s19 + $0x50] sm:$0xff]  ;;  %v203_v51 = vld [vmem:[%s560_s19 + $0x58] sm:$0xff]  ;;  %v204_v52 = vld [vmem:[%s560_s19 + $0x60] sm:$0xff] }
  0x15   : > { %v264_v22 = vadd.f32 %v571_v7, %v228_v11  ;;  %v265_v23 = vadd.f32 %v571_v7, %v229_v12  ;;  %v266_v24 = vadd.f32 %v571_v7, %v230_v14  ;;  %v267_v29 = vadd.f32 %v571_v7, %v231_v18  ;;  %v205_v57 = vld [vmem:[%s560_s19 + $0x68] sm:$0xff]  ;;  %v206_v62 = vld [vmem:[%s560_s19 + $0x70] sm:$0xff]  ;;  %v207_v63 = vld [vmem:[%s560_s19 + $0x78] sm:$0xff] }
  0x16   : > { %v268_v30 = vadd.f32 %v571_v7, %v232_v20  ;;  %v269_v37 = vadd.f32 %v571_v7, %v233_v26  ;;  %v270_v42 = vadd.f32 %v571_v7, %v234_v32  ;;  %v271_v43 = vadd.f32 %v571_v7, %v235_v33  ;;  %v304_v2 = vld [vmem:[%s566_s22 + $0x40] sm:$0xff]  ;;  %v305_v3 = vld [vmem:[%s566_s22 + $0x48] sm:$0xff]  ;;  %v306_v4 = vld [vmem:[%s566_s22 + $0x50] sm:$0xff] }
  0x17   : > { %v328_v34 = vadd.f32 %v296_v9, %v264_v22  ;;  %v329_v35 = vadd.f32 %v297_v13, %v265_v23  ;;  %v330_v36 = vadd.f32 %v298_v17, %v266_v24  ;;  %v331_v40 = vadd.f32 %v299_v19, %v267_v29  ;;  %v307_v12 = vld [vmem:[%s566_s22 + $0x58] sm:$0xff]  ;;  %v308_v13 = vld [vmem:[%s566_s22 + $0x60] sm:$0xff]  ;;  %v309_v17 = vld [vmem:[%s566_s22 + $0x68] sm:$0xff] }
  0x18   : > { %v332_v41 = vadd.f32 %v300_v25, %v268_v30  ;;  %v333_v50 = vadd.f32 %v301_v31, %v269_v37  ;;  %v334_v55 = vadd.f32 %v302_v38, %v270_v42  ;;  %v335_v56 = vadd.f32 %v303_v39, %v271_v43  ;;  %v310_v24 = vld [vmem:[%s566_s22 + $0x70] sm:$0xff]  ;;  %v311_v25 = vld [vmem:[%s566_s22 + $0x78] sm:$0xff]  ;;  %v208_v30 = vld [vmem:[%s560_s19 + $0x80] sm:$0xff] }
  0x19   : > { %v360_v47 = vmax.f32 %v328_v34, 0.0  ;;  %v361_v48 = vmax.f32 %v329_v35, 0.0  ;;  %v362_v49 = vmax.f32 %v330_v36, 0.0  ;;  %v363_v53 = vmax.f32 %v331_v40, 0.0  ;;  %v209_v31 = vld [vmem:[%s560_s19 + $0x88] sm:$0xff]  ;;  %v210_v32 = vld [vmem:[%s560_s19 + $0x90] sm:$0xff] }
  0x1a   : > { %v364_v54 = vmax.f32 %v332_v41, 0.0  ;;  %v365_v58 = vmax.f32 %v333_v50, 0.0  ;;  %v236_v59 = vmul.f32 %v569_v6, %v200_v44  ;;  %v237_v60 = vmul.f32 %v569_v6, %v201_v45  ;;  %v211_v37 = vld [vmem:[%s560_s19 + $0x98] sm:$0xff]  ;;  %v212_v38 = vld [vmem:[%s560_s19 + $0xa0] sm:$0xff]  ;;  %v213_v43 = vld [vmem:[%s560_s19 + $0xa8] sm:$0xff] }
  0x1b   : > { %392 = vst [vmem:[%s606_s25] sm:$0xff] %v360_v47  ;;  %393 = vst [vmem:[%s606_s25 + $0x8] sm:$0xff] %v361_v48  ;;  %v238_v61 = vmul.f32 %v569_v6, %v202_v46  ;;  %v366_v0 = vmax.f32 %v334_v55, 0.0  ;;  %v367_v1 = vmax.f32 %v335_v56, 0.0  ;;  %v239_v5 = vmul.f32 %v569_v6, %v203_v51  ;;  %v214_v48 = vld [vmem:[%s560_s19 + $0xb0] sm:$0xff] }
  0x1c   : > { %394 = vst [vmem:[%s606_s25 + $0x10] sm:$0xff] %v362_v49  ;;  %395 = vst [vmem:[%s606_s25 + $0x18] sm:$0xff] %v363_v53  ;;  %v240_v8 = vmul.f32 %v569_v6, %v204_v52  ;;  %v272_v9 = vadd.f32 %v571_v7, %v236_v59  ;;  %v273_v10 = vadd.f32 %v571_v7, %v237_v60  ;;  %v215_v49 = vld [vmem:[%s560_s19 + $0xb8] sm:$0xff]  ;;  %v312_v52 = vld [vmem:[%s566_s22 + $0x80] sm:$0xff] }
  0x1d   : > { %396 = vst [vmem:[%s606_s25 + $0x20] sm:$0xff] %v364_v54  ;;  %397 = vst [vmem:[%s606_s25 + $0x28] sm:$0xff] %v365_v58  ;;  %v274_v11 = vadd.f32 %v571_v7, %v238_v61  ;;  %v241_v14 = vmul.f32 %v569_v6, %v205_v57  ;;  %v275_v15 = vadd.f32 %v571_v7, %v239_v5  ;;  %v313_v53 = vld [vmem:[%s566_s22 + $0x88] sm:$0xff]  ;;  %v314_v54 = vld [vmem:[%s566_s22 + $0x90] sm:$0xff] }
  0x1e   : > { %398 = vst [vmem:[%s606_s25 + $0x30] sm:$0xff] %v366_v0  ;;  %399 = vst [vmem:[%s606_s25 + $0x38] sm:$0xff] %v367_v1  ;;  %v276_v16 = vadd.f32 %v571_v7, %v240_v8  ;;  %v242_v18 = vmul.f32 %v569_v6, %v206_v62  ;;  %v243_v19 = vmul.f32 %v569_v6, %v207_v63  ;;  %v315_v60 = vld [vmem:[%s566_s22 + $0x98] sm:$0xff]  ;;  %v316_v61 = vld [vmem:[%s566_s22 + $0xa0] sm:$0xff] }
  0x1f   : > { %v336_v20 = vadd.f32 %v304_v2, %v272_v9  ;;  %v337_v21 = vadd.f32 %v305_v3, %v273_v10  ;;  %v338_v22 = vadd.f32 %v306_v4, %v274_v11  ;;  %v277_v23 = vadd.f32 %v571_v7, %v241_v14  ;;  %v317_v1 = vld [vmem:[%s566_s22 + $0xa8] sm:$0xff]  ;;  %v318_v10 = vld [vmem:[%s566_s22 + $0xb0] sm:$0xff]  ;;  %v319_v11 = vld [vmem:[%s566_s22 + $0xb8] sm:$0xff] }
  0x20   : > { %v339_v26 = vadd.f32 %v307_v12, %v275_v15  ;;  %v340_v27 = vadd.f32 %v308_v13, %v276_v16  ;;  %v278_v28 = vadd.f32 %v571_v7, %v242_v18  ;;  %v279_v29 = vadd.f32 %v571_v7, %v243_v19  ;;  %v216_v16 = vld [vmem:[%s560_s19 + $0xc0] sm:$0xff]  ;;  %v218_v18 = vld [vmem:[%s560_s19 + $0xd0] sm:$0xff] }
  0x21   : > { %v368_v33 = vmax.f32 %v336_v20, 0.0  ;;  %v369_v34 = vmax.f32 %v337_v21, 0.0  ;;  %v370_v35 = vmax.f32 %v338_v22, 0.0  ;;  %v341_v36 = vadd.f32 %v309_v17, %v277_v23  ;;  %v217_v17 = vld [vmem:[%s560_s19 + $0xc8] sm:$0xff]  ;;  %v219_v23 = vld [vmem:[%s560_s19 + $0xd8] sm:$0xff] }
  0x22   : > { %v371_v39 = vmax.f32 %v339_v26, 0.0  ;;  %v372_v40 = vmax.f32 %v340_v27, 0.0  ;;  %v342_v41 = vadd.f32 %v310_v24, %v278_v28  ;;  %v343_v42 = vadd.f32 %v311_v25, %v279_v29  ;;  %v220_v24 = vld [vmem:[%s560_s19 + $0xe0] sm:$0xff]  ;;  %v221_v29 = vld [vmem:[%s560_s19 + $0xe8] sm:$0xff] }
  0x23   : > { %400 = vst [vmem:[%s606_s25 + $0x40] sm:$0xff] %v368_v33  ;;  %401 = vst [vmem:[%s606_s25 + $0x48] sm:$0xff] %v369_v34  ;;  %v373_v44 = vmax.f32 %v341_v36, 0.0  ;;  %v244_v45 = vmul.f32 %v569_v6, %v208_v30  ;;  %v245_v46 = vmul.f32 %v569_v6, %v209_v31  ;;  %v246_v47 = vmul.f32 %v569_v6, %v210_v32  ;;  %v222_v34 = vld [vmem:[%s560_s19 + $0xf0] sm:$0xff] }
  0x24   : > { %402 = vst [vmem:[%s606_s25 + $0x50] sm:$0xff] %v370_v35  ;;  %403 = vst [vmem:[%s606_s25 + $0x58] sm:$0xff] %v371_v39  ;;  %v374_v50 = vmax.f32 %v342_v41, 0.0  ;;  %v375_v51 = vmax.f32 %v343_v42, 0.0  ;;  %v247_v55 = vmul.f32 %v569_v6, %v211_v37  ;;  %v248_v56 = vmul.f32 %v569_v6, %v212_v38  ;;  %v223_v35 = vld [vmem:[%s560_s19 + $0xf8] sm:$0xff]  ;;  %v320_v38 = vld [vmem:[%s566_s22 + $0xc0] sm:$0xff] }
  0x25   : > { %404 = vst [vmem:[%s606_s25 + $0x60] sm:$0xff] %v372_v40  ;;  %405 = vst [vmem:[%s606_s25 + $0x68] sm:$0xff] %v373_v44  ;;  %v280_v57 = vadd.f32 %v571_v7, %v244_v45  ;;  %v281_v58 = vadd.f32 %v571_v7, %v245_v46  ;;  %v282_v59 = vadd.f32 %v571_v7, %v246_v47  ;;  %v321_v39 = vld [vmem:[%s566_s22 + $0xc8] sm:$0xff]  ;;  %v322_v40 = vld [vmem:[%s566_s22 + $0xd0] sm:$0xff] }
  0x26   : > { %v249_v62 = vmul.f32 %v569_v6, %v213_v43  ;;  %406 = vst [vmem:[%s606_s25 + $0x70] sm:$0xff] %v374_v50  ;;  %407 = vst [vmem:[%s606_s25 + $0x78] sm:$0xff] %v375_v51  ;;  %v283_v63 = vadd.f32 %v571_v7, %v247_v55  ;;  %v284_v0 = vadd.f32 %v571_v7, %v248_v56  ;;  %v323_v46 = vld [vmem:[%s566_s22 + $0xd8] sm:$0xff]  ;;  %v324_v47 = vld [vmem:[%s566_s22 + $0xe0] sm:$0xff] }
  0x27   : > { %v250_v2 = vmul.f32 %v569_v6, %v214_v48  ;;  %v251_v3 = vmul.f32 %v569_v6, %v215_v49  ;;  %v344_v4 = vadd.f32 %v312_v52, %v280_v57  ;;  %v345_v5 = vadd.f32 %v313_v53, %v281_v58  ;;  %v325_v51 = vld [vmem:[%s566_s22 + $0xe8] sm:$0xff]  ;;  %v326_v58 = vld [vmem:[%s566_s22 + $0xf0] sm:$0xff] }
  0x28   : > { %v346_v8 = vadd.f32 %v314_v54, %v282_v59  ;;  %v285_v9 = vadd.f32 %v571_v7, %v249_v62  ;;  %v347_v12 = vadd.f32 %v315_v60, %v283_v63  ;;  %v348_v13 = vadd.f32 %v316_v61, %v284_v0  ;;  %v327_v59 = vld [vmem:[%s566_s22 + $0xf8] sm:$0xff] }
  0x29   : > { %v286_v14 = vadd.f32 %v571_v7, %v250_v2  ;;  %v287_v15 = vadd.f32 %v571_v7, %v251_v3  ;;  %v376_v19 = vmax.f32 %v344_v4, 0.0  ;;  %v377_v20 = vmax.f32 %v345_v5, 0.0 }
  0x2a   : > { %v378_v21 = vmax.f32 %v346_v8, 0.0  ;;  %v349_v22 = vadd.f32 %v317_v1, %v285_v9  ;;  %v379_v25 = vmax.f32 %v347_v12, 0.0  ;;  %v380_v26 = vmax.f32 %v348_v13, 0.0 }
  0x2b   : > { %v350_v27 = vadd.f32 %v318_v10, %v286_v14  ;;  %v351_v28 = vadd.f32 %v319_v11, %v287_v15  ;;  %408 = vst [vmem:[%s606_s25 + $0x80] sm:$0xff] %v376_v19  ;;  %409 = vst [vmem:[%s606_s25 + $0x88] sm:$0xff] %v377_v20  ;;  %v252_v31 = vmul.f32 %v569_v6, %v216_v16 }
  0x2c   : > { %410 = vst [vmem:[%s606_s25 + $0x90] sm:$0xff] %v378_v21  ;;  %v381_v30 = vmax.f32 %v349_v22, 0.0  ;;  %v253_v32 = vmul.f32 %v569_v6, %v217_v17  ;;  %v254_v33 = vmul.f32 %v569_v6, %v218_v18  ;;  %411 = vst [vmem:[%s606_s25 + $0x98] sm:$0xff] %v379_v25  ;;  %v255_v41 = vmul.f32 %v569_v6, %v219_v23 }
  0x2d   : > { %412 = vst [vmem:[%s606_s25 + $0xa0] sm:$0xff] %v380_v26  ;;  %v382_v36 = vmax.f32 %v350_v27, 0.0  ;;  %v383_v37 = vmax.f32 %v351_v28, 0.0  ;;  %v256_v42 = vmul.f32 %v569_v6, %v220_v24  ;;  %v288_v43 = vadd.f32 %v571_v7, %v252_v31 }
  0x2e   : > { %413 = vst [vmem:[%s606_s25 + $0xa8] sm:$0xff] %v381_v30  ;;  %v289_v44 = vadd.f32 %v571_v7, %v253_v32  ;;  %v290_v45 = vadd.f32 %v571_v7, %v254_v33  ;;  %v257_v48 = vmul.f32 %v569_v6, %v221_v29  ;;  %v291_v49 = vadd.f32 %v571_v7, %v255_v41 }
  0x2f   : > { %414 = vst [vmem:[%s606_s25 + $0xb0] sm:$0xff] %v382_v36  ;;  %415 = vst [vmem:[%s606_s25 + $0xb8] sm:$0xff] %v383_v37  ;;  %v292_v50 = vadd.f32 %v571_v7, %v256_v42  ;;  %v258_v52 = vmul.f32 %v569_v6, %v222_v34  ;;  %v259_v53 = vmul.f32 %v569_v6, %v223_v35 }
  0x30   : > { %v352_v54 = vadd.f32 %v320_v38, %v288_v43  ;;  %v353_v55 = vadd.f32 %v321_v39, %v289_v44  ;;  %v354_v56 = vadd.f32 %v322_v40, %v290_v45  ;;  %v293_v57 = vadd.f32 %v571_v7, %v257_v48 }
  0x31   : > { %v355_v60 = vadd.f32 %v323_v46, %v291_v49  ;;  %v356_v61 = vadd.f32 %v324_v47, %v292_v50  ;;  %v294_v62 = vadd.f32 %v571_v7, %v258_v52  ;;  %v295_v63 = vadd.f32 %v571_v7, %v259_v53 }
  0x32   : > { %v384_v0 = vmax.f32 %v352_v54, 0.0  ;;  %v385_v6 = vmax.f32 %v353_v55, 0.0  ;;  %v386_v1 = vmax.f32 %v354_v56, 0.0  ;;  %v357_v2 = vadd.f32 %v325_v51, %v293_v57 }
  0x33   : > { %v387_v3 = vmax.f32 %v355_v60, 0.0  ;;  %v388_v4 = vmax.f32 %v356_v61, 0.0  ;;  %v358_v5 = vadd.f32 %v326_v58, %v294_v62  ;;  %v359_v8 = vadd.f32 %v327_v59, %v295_v63 }
  0x34   : > { %416 = vst [vmem:[%s606_s25 + $0xc0] sm:$0xff] %v384_v0  ;;  %417 = vst [vmem:[%s606_s25 + $0xc8] sm:$0xff] %v385_v6  ;;  %v389_v9 = vmax.f32 %v357_v2, 0.0 }
  0x35   : > { %418 = vst [vmem:[%s606_s25 + $0xd0] sm:$0xff] %v386_v1  ;;  %419 = vst [vmem:[%s606_s25 + $0xd8] sm:$0xff] %v387_v3  ;;  %v390_v10 = vmax.f32 %v358_v5, 0.0  ;;  %v391_v11 = vmax.f32 %v359_v8, 0.0 }
  0x36   : > { %420 = vst [vmem:[%s606_s25 + $0xe0] sm:$0xff] %v388_v4  ;;  %421 = vst [vmem:[%s606_s25 + $0xe8] sm:$0xff] %v389_v9 }
  0x37   : > { %422 = vst [vmem:[%s606_s25 + $0xf0] sm:$0xff] %v390_v10  ;;  %423 = vst [vmem:[%s606_s25 + $0xf8] sm:$0xff] %v391_v11 }
  0x38 PF: > { %s13_s12 = sadd.s32 1, %s521_s12  }
  0x39   : > { %p10_p4 = scmp.ge.s32.totalorder %s13_s12, 4  }
  0x3b   :  { %12 = sbr.rel (!%p10_p4) target bundleno = 1 (0x1), region = 65 }

// kernel: basic_block_pallas.3
= control target key start
LH: loop header
LB: loop body
LE: loop exit
PB: predicated region body
PF: predicated region fallthrough
CT: control target
= control target key end

     0   :  { %s2918_s12 = smov 0   ;;  %s4749_s0 = inlined_call_operand.vmem [shape: f32[2,16,16,128], index: 0, kind: input, shape index: {}]   ;;  %s4750_s1 = inlined_call_operand.vmem [shape: f32[3,384,128], index: 1, kind: input, shape index: {}]   ;;  %s4751_s2 = inlined_call_operand.vmem [shape: f32[2,16,16,128], index: 2, kind: output, shape index: {0}]   ;;  %s4752_s3 = inlined_call_operand.vmem [shape: f32[2,2,128], index: 3, kind: output, shape index: {1}]  }
   0x1 LB: > { %s2170_s13 = sadd.s32 4294967295, %s2895_s12   ;;  %p2174_p0 = scmp.ge.s32.totalorder %s2895_s12, 1  ;;  %s2895_s12 = sphi %s2918_s12, %s14_s12  }
   0x2   : > { %p140_p1 = scmp.lt.s32.totalorder %s2895_s12, 3 }
   0x4   : > { %p141_p2 = pnand %p2174_p0, %p140_p1 }
   0x6   : > { %144 = sbr.rel (%p141_p2) target bundleno = 585 (0x249), region = 28 }
   0xb   : > { %v2227_v0 = vld [vmem:[%s4750_s1 + $0x2f8] sm:$0xff]  ;;  %v2226_v2 = vld [vmem:[%s4750_s1 + $0x2f0] sm:$0xff]  ;;  %v4763_v3 = vmov 0.0   ;;  %v2225_v5 = vld [vmem:[%s4750_s1 + $0x2e8] sm:$0xff]  ;;  %p168_p3 = scmp.lt.s32.totalorder %s2170_s13, 1  ;;  %v214_v23 = vlaneseq  ;;  %vm2049_vm4 = vcmask 1040384  }
   0xc   : > { %v2195_v1 = vld [vmem:[%s4750_s1 + $0x1f8] sm:$0xff]  ;;  %512 = vmatprep.subr.mxu0 %v4763_v3  ;;  %2610 = vmatprep.subr.mxu1 %v2227_v0  ;;  %v2194_v4 = vld [vmem:[%s4750_s1 + $0x1f0] sm:$0xff]  ;;  %v2193_v6 = vld [vmem:[%s4750_s1 + $0x1e8] sm:$0xff] }
   0xd   : > { %513 = vmatpush1.msra.mxu0 %v2195_v1  ;;  %2611 = vmatpush3.msra.mxu1 %v2227_v0  ;;  %v2224_v7 = vld [vmem:[%s4750_s1 + $0x2e0] sm:$0xff]  ;;  %v2223_v9 = vld [vmem:[%s4750_s1 + $0x2d8] sm:$0xff]  ;;  %v2222_v11 = vld [vmem:[%s4750_s1 + $0x2d0] sm:$0xff]  ;;  %s4874_s13 = smov (!%p168_p3, %s2170_s13), 1  ;;  %v3036_v30 = vshrl.u32 %v214_v23, 7 }
   0xe   : > { %514 = vmatprep.subr.mxu0 %v4763_v3  ;;  %2612 = vmatprep.subr.mxu1 %v2226_v2  ;;  %v2192_v8 = vld [vmem:[%s4750_s1 + $0x1e0] sm:$0xff]  ;;  %v2191_v10 = vld [vmem:[%s4750_s1 + $0x1d8] sm:$0xff]  ;;  %v2190_v12 = vld [vmem:[%s4750_s1 + $0x1d0] sm:$0xff]  ;;  %s2462_s29 = sshll.u32 %s4874_s13, 8 }
   0xf   : > { %515 = vmatpush1.msra.mxu0 %v2194_v4  ;;  %2613 = vmatpush3.msra.mxu1 %v2226_v2  ;;  %v2221_v13 = vld [vmem:[%s4750_s1 + $0x2c8] sm:$0xff]  ;;  %v2220_v15 = vld [vmem:[%s4750_s1 + $0x2c0] sm:$0xff]  ;;  %v2219_v17 = vld [vmem:[%s4750_s1 + $0x2b8] sm:$0xff]  ;;  %s3017_s11 = scalar_lea.vmem %s4749_s0, %s2462_s29  ;;  %v3055_v37 = vadd.s32 8, %v3036_v30  ;;  %vm350_vm0 = vcmp.lt.s32.totalorder %v3036_v30, 7  ;;  %vm251_vm2 = vcmp.lt.s32.totalorder %v3036_v30, 1  ;;  %s4675_s27 = scalar_lea.vmem %s4751_s2, %s2462_s29 }
  0x10   : > { %516 = vmatprep.subr.mxu0 %v4763_v3  ;;  %2614 = vmatprep.subr.mxu1 %v2225_v5  ;;  %v2189_v14 = vld [vmem:[%s4750_s1 + $0x1c8] sm:$0xff]  ;;  %v2188_v16 = vld [vmem:[%s4750_s1 + $0x1c0] sm:$0xff]  ;;  %v2187_v18 = vld [vmem:[%s4750_s1 + $0x1b8] sm:$0xff]  ;;  %vm2464_vm3 = vcmp.ne.s32.totalorder %v3036_v30, 0  ;;  %s2179_s29 = sshll.u32 %s4874_s13, 1 }
  0x11   : > { %517 = vmatpush1.msra.mxu0 %v2193_v6  ;;  %2615 = vmatpush3.msra.mxu1 %v2225_v5  ;;  %v2218_v19 = vld [vmem:[%s4750_s1 + $0x2b0] sm:$0xff]  ;;  %v2217_v21 = vld [vmem:[%s4750_s1 + $0x2a8] sm:$0xff]  ;;  %v2216_v24 = vld [vmem:[%s4750_s1 + $0x2a0] sm:$0xff]  ;;  %vm2465_vm1 = vcmp.ne.s32.totalorder %v3055_v37, 15  ;;  %s181_s4 = scalar_lea.vmem %s4752_s3, %s2179_s29 }
  0x12   : > { %518 = vmatprep.subr.mxu0 %v4763_v3  ;;  %2616 = vmatprep.subr.mxu1 %v2224_v7  ;;  %v2186_v20 = vld [vmem:[%s4750_s1 + $0x1b0] sm:$0xff]  ;;  %v2185_v22 = vld [vmem:[%s4750_s1 + $0x1a8] sm:$0xff]  ;;  %v2184_v25 = vld [vmem:[%s4750_s1 + $0x1a0] sm:$0xff] }
  0x13   : > { %519 = vmatpush1.msra.mxu0 %v2192_v8  ;;  %2617 = vmatpush3.msra.mxu1 %v2224_v7  ;;  %v2215_v26 = vld [vmem:[%s4750_s1 + $0x298] sm:$0xff]  ;;  %v3031_v28 = vld [vmem:[%s3017_s11] sm:$0xff]  ;;  %v3034_v29 = vld [vmem:[%s3017_s11 + $0x8] sm:$0xff] }
  0x14   : > { %520 = vmatprep.subr.mxu0 %v4763_v3  ;;  %2618 = vmatprep.subr.mxu1 %v2223_v9  ;;  %v2183_v27 = vld [vmem:[%s4750_s1 + $0x198] sm:$0xff]  ;;  %v2214_v31 = vld [vmem:[%s4750_s1 + $0x290] sm:$0xff]  ;;  %v2213_v33 = vld [vmem:[%s4750_s1 + $0x288] sm:$0xff]  ;;  %v318_v34 = vrot.slane %v3031_v28, 1  ;;  %v334_v35 = vrot.slane %v3034_v29, 1 }
  0x15   : > { %521 = vmatpush1.msra.mxu0 %v2191_v10  ;;  %2619 = vmatpush3.msra.mxu1 %v2223_v9  ;;  %v2182_v32 = vld [vmem:[%s4750_s1 + $0x190] sm:$0xff]  ;;  %v2181_v36 = vld [vmem:[%s4750_s1 + $0x188] sm:$0xff]  ;;  %v3062_v39 = vld [vmem:[%s3017_s11 + $0x18] sm:$0xff] }
  0x16   : > { %522 = vmatprep.subr.mxu0 %v4763_v3  ;;  %2620 = vmatprep.subr.mxu1 %v2222_v11  ;;  %v3059_v38 = vld [vmem:[%s3017_s11 + $0x10] sm:$0xff]  ;;  %v2212_v40 = vld [vmem:[%s4750_s1 + $0x280] sm:$0xff]  ;;  %v3073_v42 = vsel %vm350_vm0, %v318_v34, %v334_v35  ;;  %v335_v44 = vrot.slane %v3062_v39, 1  ;;  %v3081_v45 = vsel %vm350_vm0, %v334_v35, %v318_v34  ;;  %v2211_v46 = vld [vmem:[%s4750_s1 + $0x278] sm:$0xff] }
  0x17   : > { %523 = vmatpush1.msra.mxu0 %v2190_v12  ;;  %2621 = vmatpush3.msra.mxu1 %v2222_v11  ;;  %v2180_v41 = vld [vmem:[%s4750_s1 + $0x180] sm:$0xff]  ;;  %v319_v43 = vrot.slane %v3059_v38, 1  ;;  %v430_v47 = vld [vmem:[%s4750_s1 + $0x78] sm:$0xff]  ;;  %v3093_v49 = vld [vmem:[%s3017_s11 + $0x28] sm:$0xff] }
  0x18   : > { %524 = vmatprep.subr.mxu0 %v4763_v3  ;;  %2622 = vmatprep.subr.mxu1 %v2221_v13  ;;  %v3090_v48 = vld [vmem:[%s3017_s11 + $0x20] sm:$0xff]  ;;  %v2210_v50 = vld [vmem:[%s4750_s1 + $0x270] sm:$0xff]  ;;  %v336_v54 = vrot.slane %v3093_v49, 1  ;;  %v2209_v56 = vld [vmem:[%s4750_s1 + $0x268] sm:$0xff] }
  0x19   : > { %525 = vmatpush1.msra.mxu0 %v2189_v14  ;;  %2623 = vmatpush3.msra.mxu1 %v2221_v13  ;;  %v3106_v51 = vsel %vm350_vm0, %v319_v43, %v335_v44  ;;  %v429_v52 = vld [vmem:[%s4750_s1 + $0x70] sm:$0xff]  ;;  %v320_v53 = vrot.slane %v3090_v48, 1  ;;  %v3117_v55 = vsel %vm350_vm0, %v335_v44, %v319_v43  ;;  %v428_v57 = vld [vmem:[%s4750_s1 + $0x68] sm:$0xff]  ;;  %v3130_v59 = vld [vmem:[%s3017_s11 + $0x38] sm:$0xff] }
  0x1a   : > { %526 = vmatprep.subr.mxu0 %v4763_v3  ;;  %2624 = vmatprep.subr.mxu1 %v2220_v15  ;;  %v3127_v58 = vld [vmem:[%s3017_s11 + $0x30] sm:$0xff]  ;;  %v2208_v60 = vld [vmem:[%s4750_s1 + $0x260] sm:$0xff]  ;;  %v337_v0 = vrot.slane %v3130_v59, 1  ;;  %v2207_v2 = vld [vmem:[%s4750_s1 + $0x258] sm:$0xff] }
  0x1b   : > { %527 = vmatpush1.msra.mxu0 %v2188_v16  ;;  %2625 = vmatpush3.msra.mxu1 %v2220_v15  ;;  %v3142_v61 = vsel %vm350_vm0, %v320_v53, %v336_v54  ;;  %v427_v62 = vld [vmem:[%s4750_s1 + $0x60] sm:$0xff]  ;;  %v321_v63 = vrot.slane %v3127_v58, 1  ;;  %v3153_v1 = vsel %vm350_vm0, %v336_v54, %v320_v53  ;;  %v426_v4 = vld [vmem:[%s4750_s1 + $0x58] sm:$0xff]  ;;  %v3166_v6 = vld [vmem:[%s3017_s11 + $0x48] sm:$0xff] }
  0x1c   : > { %528 = vmatprep.subr.mxu0 %v4763_v3  ;;  %2626 = vmatprep.subr.mxu1 %v2219_v17  ;;  %v3163_v5 = vld [vmem:[%s3017_s11 + $0x40] sm:$0xff]  ;;  %v2206_v7 = vld [vmem:[%s4750_s1 + $0x250] sm:$0xff]  ;;  %v338_v11 = vrot.slane %v3166_v6, 1  ;;  %v2205_v13 = vld [vmem:[%s4750_s1 + $0x248] sm:$0xff] }
  0x1d   : > { %529 = vmatpush1.msra.mxu0 %v2187_v18  ;;  %2627 = vmatpush3.msra.mxu1 %v2219_v17  ;;  %v3178_v8 = vsel %vm350_vm0, %v321_v63, %v337_v0  ;;  %v425_v9 = vld [vmem:[%s4750_s1 + $0x50] sm:$0xff]  ;;  %v322_v10 = vrot.slane %v3163_v5, 1  ;;  %v3189_v12 = vsel %vm350_vm0, %v337_v0, %v321_v63  ;;  %v424_v14 = vld [vmem:[%s4750_s1 + $0x48] sm:$0xff]  ;;  %v3202_v16 = vld [vmem:[%s3017_s11 + $0x58] sm:$0xff] }
  0x1e   : > { %530 = vmatprep.subr.mxu0 %v4763_v3  ;;  %2628 = vmatprep.subr.mxu1 %v2218_v19  ;;  %v3199_v15 = vld [vmem:[%s3017_s11 + $0x50] sm:$0xff]  ;;  %v2204_v17 = vld [vmem:[%s4750_s1 + $0x240] sm:$0xff]  ;;  %v2203_v23 = vld [vmem:[%s4750_s1 + $0x238] sm:$0xff] }
  0x1f   : > { %531 = vmatpush1.msra.mxu0 %v2186_v20  ;;  %2629 = vmatpush3.msra.mxu1 %v2218_v19  ;;  %v3214_v18 = vsel %vm350_vm0, %v322_v10, %v338_v11  ;;  %v423_v19 = vld [vmem:[%s4750_s1 + $0x40] sm:$0xff]  ;;  %v323_v20 = vrot.slane %v3199_v15, 1  ;;  %v3274_v43 = vld [vmem:[%s3017_s11 + $0x78] sm:$0xff]  ;;  %v417_v0 = vld [vmem:[%s4750_s1 + $0x10] sm:$0xff] }
  0x20   : > { %532 = vmatprep.subr.mxu0 %v4763_v3  ;;  %2630 = vmatprep.subr.mxu1 %v2217_v21  ;;  %v2200_v44 = vld [vmem:[%s4750_s1 + $0x220] sm:$0xff]  ;;  %v2199_v54 = vld [vmem:[%s4750_s1 + $0x218] sm:$0xff] }
  0x21   : > { %533 = vmatpush1.msra.mxu0 %v2185_v22  ;;  %2631 = vmatpush3.msra.mxu1 %v2217_v21  ;;  %v339_v21 = vrot.slane %v3202_v16, 1  ;;  %v3225_v22 = vsel %vm350_vm0, %v338_v11, %v322_v10  ;;  %v3339_v10 = vld [vmem:[%s3017_s11 + $0x98] sm:$0xff]  ;;  %v2197_v11 = vld [vmem:[%s4750_s1 + $0x208] sm:$0xff] }
  0x22   : > { %534 = vmatprep.subr.mxu0 %v4763_v3  ;;  %2632 = vmatprep.subr.mxu1 %v2216_v24 }
  0x23   : > { %535 = vmatpush1.msra.mxu0 %v2184_v25  ;;  %2633 = vmatpush3.msra.mxu1 %v2216_v24  ;;  %v422_v24 = vld [vmem:[%s4750_s1 + $0x38] sm:$0xff]  ;;  %v3235_v25 = vld [vmem:[%s3017_s11 + $0x60] sm:$0xff]  ;;  %v3261_v35 = vsel %vm350_vm0, %v339_v21, %v323_v20 }
  0x24   : > { %536 = vmatprep.subr.mxu0 %v4763_v3  ;;  %2634 = vmatprep.subr.mxu1 %v2215_v26  ;;  %4808 = vst [vmem:[#allocation3_spill] sm:$0xff] %v3261_v35 }
  0x25   : > { %537 = vmatpush1.msra.mxu0 %v2183_v27  ;;  %2635 = vmatpush3.msra.mxu1 %v2215_v26  ;;  %v3238_v26 = vld [vmem:[%s3017_s11 + $0x68] sm:$0xff]  ;;  %v2202_v27 = vld [vmem:[%s4750_s1 + $0x230] sm:$0xff] }
  0x26   : > { %538 = vmatprep.subr.mxu0 %v4763_v3  ;;  %2636 = vmatprep.subr.mxu1 %v2214_v31  ;;  %v340_v34 = vrot.slane %v3238_v26, 1 }
  0x27   : > { %539 = vmatpush1.msra.mxu0 %v2182_v32  ;;  %2637 = vmatpush3.msra.mxu1 %v2214_v31  ;;  %v3250_v31 = vsel %vm350_vm0, %v323_v20, %v339_v21  ;;  %v421_v32 = vld [vmem:[%s4750_s1 + $0x30] sm:$0xff]  ;;  %v343_v21 = vrot.slane %v3339_v10, 1 }
  0x28   : > { %540 = vmatprep.subr.mxu0 %v4763_v3  ;;  %2638 = vmatprep.subr.mxu1 %v2213_v33  ;;  %4807 = vst [vmem:[#allocation2_spill] sm:$0xff] %v3250_v31 }
  0x29   : > { %541 = vmatpush1.msra.mxu0 %v2181_v36  ;;  %2639 = vmatpush3.msra.mxu1 %v2213_v33  ;;  %v324_v33 = vrot.slane %v3235_v25, 1  ;;  %v2201_v36 = vld [vmem:[%s4750_s1 + $0x228] sm:$0xff] }
  0x2a   : > { %542 = vmatprep.subr.mxu0 %v4763_v3  ;;  %2640 = vmatprep.subr.mxu1 %v2212_v40 }
  0x2b   : > { %543 = vmatpush1.msra.mxu0 %v2180_v41  ;;  %2641 = vmatpush3.msra.mxu1 %v2212_v40  ;;  %v420_v40 = vld [vmem:[%s4750_s1 + $0x28] sm:$0xff]  ;;  %v3271_v41 = vld [vmem:[%s3017_s11 + $0x70] sm:$0xff]  ;;  %v3297_v53 = vsel %vm350_vm0, %v340_v34, %v324_v33 }
  0x2c   : > { %2642 = vmatprep.mubr.f32.mxu1 %v3073_v42  ;;  %544 = vmatprep.subr.mxu0 %v4763_v3  ;;  %4810 = vst [vmem:[#allocation5_spill] sm:$0xff] %v3297_v53 }
  0x2d   : > { %2643 = vmatmul.mubr.msk.f32.vlgmr.msra.gmra.mxu1 %vm2465_vm1, %v3081_v45  ;;  %962 = vmatprep.subr.mxu1 %v4763_v3 }
  0x2e   : > { %545 = vmatpush2.msra.mxu0 %v2211_v46  ;;  %963 = vmatpush1.msra.mxu1 %v430_v47  ;;  %v3286_v46 = vsel %vm350_vm0, %v324_v33, %v340_v34  ;;  %v419_v47 = vld [vmem:[%s4750_s1 + $0x20] sm:$0xff]  ;;  %v3383_v34 = vld [vmem:[%s3017_s11 + $0xa8] sm:$0xff] }
  0x2f   : > { %546 = vmatprep.subr.mxu0 %v4763_v3  ;;  %964 = vmatprep.subr.mxu1 %v4763_v3  ;;  %4809 = vst [vmem:[#allocation4_spill] sm:$0xff] %v3286_v46  ;;  %v3380_v33 = vld [vmem:[%s3017_s11 + $0xa0] sm:$0xff] }
  0x30   : > { %547 = vmatpush2.msra.mxu0 %v2210_v50  ;;  %2645 = vmatprep.mubr.f32.mxu1 %v3106_v51  ;;  %v325_v50 = vrot.slane %v3271_v41, 1 }
  0x31   : > { %965 = vmatpush1.msra.mxu1 %v429_v52  ;;  %548 = vmatprep.subr.mxu0 %v4763_v3  ;;  %v341_v52 = vrot.slane %v3274_v43, 1 }
  0x32   : > { %2646 = vmatmul.mubr.msk.f32.gmra.mxu1 %vm2465_vm1, %v3117_v55  ;;  %966 = vmatprep.subr.mxu1 %v4763_v3 }
  0x33   : > { %549 = vmatpush2.msra.mxu0 %v2209_v56  ;;  %967 = vmatpush1.msra.mxu1 %v428_v57  ;;  %v418_v56 = vld [vmem:[%s4750_s1 + $0x18] sm:$0xff]  ;;  %v3308_v57 = vld [vmem:[%s3017_s11 + $0x80] sm:$0xff]  ;;  %v3322_v63 = vsel %vm350_vm0, %v325_v50, %v341_v52 }
  0x34   : > { %550 = vmatprep.subr.mxu0 %v4763_v3  ;;  %968 = vmatprep.subr.mxu1 %v4763_v3  ;;  %4811 = vst [vmem:[#allocation6_spill] sm:$0xff] %v3322_v63 }
  0x35   : > { %551 = vmatpush2.msra.mxu0 %v2208_v60  ;;  %2648 = vmatprep.mubr.f32.mxu1 %v3142_v61  ;;  %v3311_v60 = vld [vmem:[%s3017_s11 + $0x88] sm:$0xff] }
  0x36   : > { %969 = vmatpush1.msra.mxu1 %v427_v62  ;;  %552 = vmatprep.subr.mxu0 %v4763_v3  ;;  %v2198_v62 = vld [vmem:[%s4750_s1 + $0x210] sm:$0xff] }
  0x37   : > { %2649 = vmatmul.mubr.msk.f32.gmra.mxu1 %vm2465_vm1, %v3153_v1  ;;  %970 = vmatprep.subr.mxu1 %v4763_v3 }
  0x38   : > { %553 = vmatpush2.msra.mxu0 %v2207_v2  ;;  %971 = vmatpush1.msra.mxu1 %v426_v4  ;;  %v3331_v2 = vsel %vm350_vm0, %v341_v52, %v325_v50  ;;  %v326_v4 = vrot.slane %v3308_v57, 1  ;;  %v3405_v50 = vld [vmem:[%s4750_s1 + $0x178] sm:$0xff]  ;;  %v445_v52 = vld [vmem:[%s4750_s1 + $0xf0] sm:$0xff] }
  0x39   : > { %554 = vmatprep.subr.mxu0 %v4763_v3  ;;  %972 = vmatprep.subr.mxu1 %v4763_v3  ;;  %4812 = vst [vmem:[#allocation7_spill] sm:$0xff] %v3331_v2 }
  0x3a   : > { %555 = vmatpush2.msra.mxu0 %v2206_v7  ;;  %2651 = vmatprep.mubr.f32.mxu1 %v3178_v8  ;;  %v342_v7 = vrot.slane %v3311_v60, 1 }
  0x3b   : > { %973 = vmatpush1.msra.mxu1 %v425_v9  ;;  %556 = vmatprep.subr.mxu0 %v4763_v3  ;;  %v3336_v9 = vld [vmem:[%s3017_s11 + $0x90] sm:$0xff] }
  0x3c   : > { %2652 = vmatmul.mubr.msk.f32.gmra.mxu1 %vm2465_vm1, %v3189_v12  ;;  %974 = vmatprep.subr.mxu1 %v4763_v3  ;;  %v327_v20 = vrot.slane %v3336_v9, 1 }
  0x3d   : > { %557 = vmatpush2.msra.mxu0 %v2205_v13  ;;  %975 = vmatpush1.msra.mxu1 %v424_v14  ;;  %v416_v13 = vld [vmem:[%s4750_s1 + $0x8] sm:$0xff]  ;;  %v219_v14 = vrot.slane %v3031_v28, 7 }
  0x3e   : > { %558 = vmatprep.subr.mxu0 %v4763_v3  ;;  %976 = vmatprep.subr.mxu1 %v4763_v3 }
  0x3f   : > { %559 = vmatpush2.msra.mxu0 %v2204_v17  ;;  %2654 = vmatprep.mubr.f32.mxu1 %v3214_v18  ;;  %v235_v17 = vrot.slane %v3034_v29, 7 }
  0x40   : > { %977 = vmatpush1.msra.mxu1 %v423_v19  ;;  %560 = vmatprep.subr.mxu0 %v4763_v3  ;;  %v2196_v19 = vld [vmem:[%s4750_s1 + $0x200] sm:$0xff] }
  0x41   : > { %2655 = vmatmul.mubr.msk.f32.gmra.mxu1 %vm2465_vm1, %v3225_v22  ;;  %978 = vmatprep.subr.mxu1 %v4763_v3 }
  0x42   : > { %561 = vmatpush2.msra.mxu0 %v2203_v23  ;;  %979 = vmatpush1.msra.mxu1 %v422_v24  ;;  %v3363_v23 = vsel %vm350_vm0, %v326_v4, %v342_v7  ;;  %v415_v24 = vld [vmem:[%s4750_s1] sm:$0xff] }
  0x43   : > { %562 = vmatprep.subr.mxu0 %v4763_v3  ;;  %980 = vmatprep.subr.mxu1 %v4763_v3  ;;  %4813 = vst [vmem:[#allocation8_spill] sm:$0xff] %v3363_v23 }
  0x44   : > { %563 = vmatpush2.msra.mxu0 %v2202_v27  ;;  %2657 = vmatprep.mubr.f32.mxu1 %v3250_v31  ;;  %v3373_v27 = vsel %vm251_vm2, %v235_v17, %v219_v14  ;;  %v3566_v31 = vld [vmem:[%s3017_s11 + $0xf8] sm:$0xff] }
  0x45   : > { %981 = vmatpush1.msra.mxu1 %v421_v32  ;;  %564 = vmatprep.subr.mxu0 %v4763_v3  ;;  %v3377_v32 = vsel %vm350_vm0, %v342_v7, %v326_v4  ;;  %v3422_v4 = vld [vmem:[%s3017_s11 + $0xb8] sm:$0xff]  ;;  %v3427_v7 = vsel %vm350_vm0, %v343_v21, %v327_v20 }
  0x46   : > { %2658 = vmatmul.mubr.msk.f32.gmra.mxu1 %vm2465_vm1, %v3261_v35  ;;  %982 = vmatprep.subr.mxu1 %v4763_v3  ;;  %4814 = vst [vmem:[#allocation9_spill] sm:$0xff] %v3377_v32  ;;  %4816 = vst [vmem:[#allocation11_spill] sm:$0xff] %v3427_v7  ;;  %v3563_v35 = vld [vmem:[%s3017_s11 + $0xf0] sm:$0xff] }
  0x47   : > { %565 = vmatpush2.msra.mxu0 %v2201_v36  ;;  %983 = vmatpush1.msra.mxu1 %v420_v40  ;;  %v446_v36 = vld [vmem:[%s4750_s1 + $0xf8] sm:$0xff]  ;;  %v3392_v40 = vsel %vm350_vm0, %v327_v20, %v343_v21  ;;  %v3453_v21 = vld [vmem:[%s3017_s11 + $0xc0] sm:$0xff] }
  0x48   : > { %566 = vmatprep.subr.mxu0 %v4763_v3  ;;  %984 = vmatprep.subr.mxu1 %v4763_v3  ;;  %4815 = vst [vmem:[#allocation10_spill] sm:$0xff] %v3392_v40 }
  0x49   : > { %567 = vmatpush2.msra.mxu0 %v2200_v44  ;;  %2660 = vmatprep.mubr.f32.mxu1 %v3286_v46  ;;  %v328_v44 = vrot.slane %v3380_v33, 1  ;;  %v238_v46 = vrot.slane %v3130_v59, 7 }
  0x4a   : > { %985 = vmatpush1.msra.mxu1 %v419_v47  ;;  %568 = vmatprep.subr.mxu0 %v4763_v3  ;;  %v344_v47 = vrot.slane %v3383_v34, 1 }
  0x4b   : > { %2661 = vmatmul.mubr.msk.f32.gmra.mxu1 %vm2465_vm1, %v3297_v53  ;;  %986 = vmatprep.subr.mxu1 %v4763_v3  ;;  %v222_v53 = vrot.slane %v3127_v58, 7 }
  0x4c   : > { %569 = vmatpush2.msra.mxu0 %v2199_v54  ;;  %987 = vmatpush1.msra.mxu1 %v418_v56  ;;  %v3414_v54 = vsel %vm251_vm2, %v219_v14, %v235_v17  ;;  %v220_v56 = vrot.slane %v3059_v38, 7  ;;  %v345_v17 = vrot.slane %v3422_v4, 1 }
  0x4d   : > { %570 = vmatprep.subr.mxu0 %v4763_v3  ;;  %988 = vmatprep.subr.mxu1 %v4763_v3 }
  0x4e   : > { %571 = vmatpush2.msra.mxu0 %v2198_v62  ;;  %2663 = vmatprep.mubr.f32.mxu1 %v3322_v63  ;;  %v236_v62 = vrot.slane %v3062_v39, 7  ;;  %v438_v63 = vld [vmem:[%s4750_s1 + $0xb8] sm:$0xff] }
  0x4f   : > { %989 = vmatpush1.msra.mxu1 %v417_v0  ;;  %572 = vmatprep.subr.mxu0 %v4763_v3  ;;  %v3419_v0 = vld [vmem:[%s3017_s11 + $0xb0] sm:$0xff] }
  0x50   : > { %2664 = vmatmul.mubr.msk.f32.gmra.mxu1 %vm2465_vm1, %v3331_v2  ;;  %990 = vmatprep.subr.mxu1 %v4763_v3  ;;  %v329_v14 = vrot.slane %v3419_v0, 1  ;;  %v3450_v20 = vsel %vm251_vm2, %v236_v62, %v220_v56  ;;  %v3528_v2 = vld [vmem:[%s3017_s11 + $0xe8] sm:$0xff] }
  0x51   : > { %573 = vmatpush2.msra.mxu0 %v2197_v11  ;;  %991 = vmatpush1.msra.mxu1 %v416_v13  ;;  %v444_v11 = vld [vmem:[%s4750_s1 + $0xe8] sm:$0xff]  ;;  %v3437_v13 = vsel %vm350_vm0, %v328_v44, %v344_v47 }
  0x52   : > { %574 = vmatprep.subr.mxu0 %v4763_v3  ;;  %992 = vmatprep.subr.mxu1 %v4763_v3  ;;  %4817 = vst [vmem:[#allocation12_spill] sm:$0xff] %v3437_v13 }
  0x53   : > { %575 = vmatpush2.msra.mxu0 %v2196_v19  ;;  %576 = vmatprep.mubr.f32.mxu0 %v3031_v28  ;;  %v443_v19 = vld [vmem:[%s4750_s1 + $0xe0] sm:$0xff] }
  0x54   : > { %2666 = vmatprep.mubr.f32.mxu1 %v3363_v23  ;;  %993 = vmatpush1.msra.mxu1 %v415_v24  ;;  %v3456_v24 = vld [vmem:[%s3017_s11 + $0xc8] sm:$0xff]  ;;  %v3494_v23 = vld [vmem:[%s3017_s11 + $0xd8] sm:$0xff] }
  0x55   : > { %2229 = vmatmul.mubr.msk.f32.vlgmr.msra.gmra.mxu0 %vm2464_vm3, %v3373_v27  ;;  %2667 = vmatmul.mubr.msk.f32.gmra.mxu1 %vm2465_vm1, %v3377_v32  ;;  %v3491_v32 = vld [vmem:[%s3017_s11 + $0xd0] sm:$0xff] }
  0x56   : > { %994 = vmatprep.subr.mxu1 %v4763_v3  ;;  %581 = vmatprep.mubr.f32.mxu0 %v3034_v29 }
  0x57   : > { %995 = vmatpush2.msra.mxu1 %v446_v36  ;;  %2669 = vmatprep.mubr.f32.mxu1 %v3392_v40  ;;  %v3461_v36 = vsel %vm350_vm0, %v344_v47, %v328_v44  ;;  %v330_v44 = vrot.slane %v3453_v21, 1  ;;  %v346_v47 = vrot.slane %v3456_v24, 1  ;;  %v237_v40 = vrot.slane %v3093_v49, 7 }
  0x58   : > { %996 = vmatprep.subr.mxu1 %v4763_v3  ;;  %2690 = vmatprep.subr.mxu0 %v3405_v50  ;;  %4818 = vst [vmem:[#allocation13_spill] sm:$0xff] %v3461_v36 }
  0x59   : > { %997 = vmatpush2.msra.mxu1 %v445_v52  ;;  %582 = vmatmul.mubr.f32.gmra.mxu0 %v3414_v54  ;;  %v442_v52 = vld [vmem:[%s4750_s1 + $0xd8] sm:$0xff] }
  0x5a   : > { %2670 = vmatmul.mubr.msk.f32.gmra.mxu1 %vm2465_vm1, %v3427_v7  ;;  %998 = vmatprep.subr.mxu1 %v4763_v3  ;;  %v221_v7 = vrot.slane %v3090_v48, 7 }
  0x5b   : > { %999 = vmatpush2.msra.mxu1 %v444_v11  ;;  %586 = vmatprep.mubr.f32.mxu0 %v3059_v38  ;;  %v3473_v11 = vsel %vm350_vm0, %v329_v14, %v345_v17 }
  0x5c   : > { %1000 = vmatprep.subr.mxu1 %v4763_v3  ;;  %2672 = vmatprep.mubr.f32.mxu1 %v3437_v13  ;;  %4819 = vst [vmem:[#allocation14_spill] sm:$0xff] %v3473_v11  ;;  %v3486_v13 = vsel %vm251_vm2, %v220_v56, %v236_v62  ;;  %v440_v56 = vld [vmem:[%s4750_s1 + $0xc8] sm:$0xff]  ;;  %v3509_v62 = vsel %vm350_vm0, %v330_v44, %v346_v47 }
  0x5d   : > { %1001 = vmatpush2.msra.mxu1 %v443_v19  ;;  %2231 = vmatmul.mubr.msk.f32.gmra.mxu0 %vm2464_vm3, %v3450_v20  ;;  %v441_v19 = vld [vmem:[%s4750_s1 + $0xd0] sm:$0xff]  ;;  %4822 = vst [vmem:[#allocation16_spill] sm:$0xff] %v3509_v62 }
  0x5e   : > { %2673 = vmatmul.mubr.msk.f32.gmra.mxu1 %vm2465_vm1, %v3461_v36  ;;  %1002 = vmatprep.subr.mxu1 %v4763_v3  ;;  %v3499_v3 = vsel %vm350_vm0, %v345_v17, %v329_v14  ;;  %v4821_v36 = vmov 0.0   ;;  %v347_v14 = vrot.slane %v3494_v23, 1  ;;  %v439_v17 = vld [vmem:[%s4750_s1 + $0xc0] sm:$0xff] }
  0x5f   : > { %1003 = vmatpush2.msra.mxu1 %v442_v52  ;;  %591 = vmatprep.mubr.f32.mxu0 %v3062_v39  ;;  %4820 = vst [vmem:[#allocation15_spill] sm:$0xff] %v3499_v3  ;;  %v331_v52 = vrot.slane %v3491_v32, 1 }
  0x60   : > { %1004 = vmatprep.subr.mxu1 %v4821_v36  ;;  %2675 = vmatprep.mubr.f32.mxu1 %v3473_v11  ;;  %v3525_v11 = vld [vmem:[%s3017_s11 + $0xe0] sm:$0xff] }
  0x61   : > { %1005 = vmatpush2.msra.mxu1 %v441_v19  ;;  %592 = vmatmul.mubr.f32.gmra.mxu0 %v3486_v13  ;;  %v3522_v19 = vsel %vm251_vm2, %v237_v40, %v221_v7 }
  0x62   : > { %2676 = vmatmul.mubr.msk.f32.gmra.mxu1 %vm2465_vm1, %v3499_v3  ;;  %1006 = vmatprep.subr.mxu1 %v4821_v36  ;;  %v3533_v3 = vsel %vm350_vm0, %v346_v47, %v330_v44  ;;  %v332_v44 = vrot.slane %v3525_v11, 1  ;;  %v348_v47 = vrot.slane %v3528_v2, 1 }
  0x63   : > { %1007 = vmatpush2.msra.mxu1 %v440_v56  ;;  %596 = vmatprep.mubr.f32.mxu0 %v3090_v48  ;;  %4823 = vst [vmem:[#allocation17_spill] sm:$0xff] %v3533_v3  ;;  %v3545_v56 = vsel %vm350_vm0, %v331_v52, %v347_v14 }
  0x64   : > { %1008 = vmatprep.subr.mxu1 %v4821_v36  ;;  %2678 = vmatprep.mubr.f32.mxu1 %v3509_v62  ;;  %4824 = vst [vmem:[#allocation18_spill] sm:$0xff] %v3545_v56  ;;  %v3558_v62 = vsel %vm251_vm2, %v221_v7, %v237_v40  ;;  %v436_v40 = vld [vmem:[%s4750_s1 + $0xa8] sm:$0xff]  ;;  %v333_v7 = vrot.slane %v3563_v35, 1 }
  0x65   : > { %1009 = vmatpush2.msra.mxu1 %v439_v17  ;;  %2233 = vmatmul.mubr.msk.f32.gmra.mxu0 %vm2464_vm3, %v3522_v19  ;;  %v437_v17 = vld [vmem:[%s4750_s1 + $0xb0] sm:$0xff] }
  0x66   : > { %2679 = vmatmul.mubr.msk.f32.gmra.mxu1 %vm2465_vm1, %v3533_v3  ;;  %1010 = vmatprep.subr.mxu1 %v4821_v36  ;;  %v3571_v3 = vsel %vm350_vm0, %v347_v14, %v331_v52  ;;  %v349_v52 = vrot.slane %v3566_v31, 1  ;;  %v435_v14 = vld [vmem:[%s4750_s1 + $0xa0] sm:$0xff] }
  0x67   : > { %1011 = vmatpush2.msra.mxu1 %v438_v63  ;;  %601 = vmatprep.mubr.f32.mxu0 %v3093_v49  ;;  %4825 = vst [vmem:[#allocation19_spill] sm:$0xff] %v3571_v3  ;;  %v3581_v63 = vsel %vm350_vm0, %v332_v44, %v348_v47 }
  0x68   : > { %1012 = vmatprep.subr.mxu1 %v4821_v36  ;;  %2681 = vmatprep.mubr.f32.mxu1 %v3545_v56  ;;  %4826 = vst [vmem:[#allocation20_spill] sm:$0xff] %v3581_v63  ;;  %v3599_v56 = vsel %vm350_vm0, %v348_v47, %v332_v44  ;;  %v433_v44 = vld [vmem:[%s4750_s1 + $0x90] sm:$0xff]  ;;  %v3622_v47 = vsel %vm251_vm2, %v222_v53, %v238_v46 }
  0x69   : > { %1013 = vmatpush2.msra.mxu1 %v437_v17  ;;  %602 = vmatmul.mubr.f32.gmra.mxu0 %v3558_v62  ;;  %v3594_v17 = vsel %vm251_vm2, %v238_v46, %v222_v53  ;;  %4827 = vst [vmem:[#allocation21_spill] sm:$0xff] %v3599_v56  ;;  %v432_v46 = vld [vmem:[%s4750_s1 + $0x88] sm:$0xff] }
  0x6a   : > { %2682 = vmatmul.mubr.msk.f32.gmra.mxu1 %vm2465_vm1, %v3571_v3  ;;  %1014 = vmatprep.subr.mxu1 %v4821_v36  ;;  %v434_v3 = vld [vmem:[%s4750_s1 + $0x98] sm:$0xff] }
  0x6b   : > { %1015 = vmatpush2.msra.mxu1 %v436_v40  ;;  %606 = vmatprep.mubr.f32.mxu0 %v3127_v58  ;;  %v3611_v40 = vsel %vm350_vm0, %v333_v7, %v349_v52 }
  0x6c   : > { %1016 = vmatprep.subr.mxu1 %v4821_v36  ;;  %2684 = vmatprep.mubr.f32.mxu1 %v3581_v63  ;;  %4828 = vst [vmem:[#allocation22_spill] sm:$0xff] %v3611_v40  ;;  %v223_v63 = vrot.slane %v3163_v5, 7 }
  0x6d   : > { %1017 = vmatpush2.msra.mxu1 %v435_v14  ;;  %2235 = vmatmul.mubr.msk.f32.gmra.mxu0 %vm2464_vm3, %v3594_v17  ;;  %v3627_v14 = vsel %vm350_vm0, %v349_v52, %v333_v7  ;;  %v2367_v7 = vld [vmem:[%s4750_s1 + $0x378] sm:$0xff] }
  0x6e   : > { %2685 = vmatmul.mubr.msk.f32.gmra.mxu1 %vm2465_vm1, %v3599_v56  ;;  %1018 = vmatprep.subr.mxu1 %v4821_v36  ;;  %4829 = vst [vmem:[#allocation23_spill] sm:$0xff] %v3627_v14  ;;  %v239_v56 = vrot.slane %v3166_v6, 7 }
  0x6f   : > { %1019 = vmatpush2.msra.mxu1 %v434_v3  ;;  %611 = vmatprep.mubr.f32.mxu0 %v3130_v59  ;;  %v431_v3 = vld [vmem:[%s4750_s1 + $0x80] sm:$0xff] }
  0x70   : > { %1020 = vmatprep.subr.mxu1 %v4821_v36  ;;  %2687 = vmatprep.mubr.f32.mxu1 %v3611_v40  ;;  %v3647_v53 = vsel %vm251_vm2, %v239_v56, %v223_v63  ;;  %v3666_v52 = vsel %vm251_vm2, %v223_v63, %v239_v56  ;;  %v460_v56 = vld [vmem:[%s4750_s1 + $0x168] sm:$0xff]  ;;  %v4859_v40 = vld [vmem:[#allocation21_spill] sm:$0xff] }
  0x71   : > { %1021 = vmatpush2.msra.mxu1 %v433_v44  ;;  %612 = vmatmul.mubr.f32.gmra.mxu0 %v3622_v47  ;;  %v224_v44 = vrot.slane %v3199_v15, 7 }
  0x72   : > { %2688 = vmatmul.mubr.msk.f32.gmra.mxu1 %vm2465_vm1, %v3627_v14  ;;  %1022 = vmatprep.subr.mxu1 %v4821_v36  ;;  %v241_v14 = vrot.slane %v3238_v26, 7 }
  0x73   : > { %1023 = vmatpush2.msra.mxu1 %v432_v46  ;;  %2691 = vmatpush3.msra.mxu0 %v3405_v50  ;;  %v461_v50 = vld [vmem:[%s4750_s1 + $0x170] sm:$0xff]  ;;  %v240_v46 = vrot.slane %v3202_v16, 7 }
  0x74   : > { %1024 = vmatprep.subr.mxu1 %v4821_v36  ;;  %616 = vmatprep.mubr.f32.mxu0 %v3163_v5 }
  0x75   : > { %1025 = vmatpush2.msra.mxu1 %v431_v3  ;;  %1026 = vmatprep.mubr.f32.mxu1 %v4821_v36  ;;  %v2366_v3 = vld [vmem:[%s4750_s1 + $0x370] sm:$0xff]  ;;  %v3682_v63 = vsel %vm251_vm2, %v240_v46, %v224_v44 }
  0x76   : > { %2237 = vmatmul.mubr.msk.f32.gmra.mxu0 %vm2464_vm3, %v3647_v53  ;;  %1027 = vmatmul.mubr.f32.vlgmr.msra.gmra.mxu1 %v4821_v36 }
  0x77   : > { %1461 = vmatprep.subr.mxu1 %v4821_v36  ;;  %621 = vmatprep.mubr.f32.mxu0 %v3166_v6 }
  0x78   : > { %1462 = vmatpush1.msra.mxu1 %v2367_v7  ;;  %1031 = vmatprep.mubr.f32.mxu1 %v4821_v36  ;;  %v2365_v7 = vld [vmem:[%s4750_s1 + $0x368] sm:$0xff] }
  0x79   : > { %2692 = vmatprep.subr.mxu0 %v461_v50  ;;  %1463 = vmatprep.subr.mxu1 %v4821_v36 }
  0x7a   : > { %622 = vmatmul.mubr.f32.gmra.mxu0 %v3666_v52  ;;  %1032 = vmatmul.mubr.f32.gmra.mxu1 %v4821_v36 }
  0x7b   : > { %2693 = vmatpush3.msra.mxu0 %v461_v50  ;;  %1464 = vmatpush1.msra.mxu1 %v2366_v3  ;;  %v2364_v50 = vld [vmem:[%s4750_s1 + $0x360] sm:$0xff]  ;;  %v225_v3 = vrot.slane %v3235_v25, 7 }
  0x7c   : > { %626 = vmatprep.mubr.f32.mxu0 %v3199_v15  ;;  %1036 = vmatprep.mubr.f32.mxu1 %v3031_v28  ;;  %v3702_v28 = vsel %vm251_vm2, %v224_v44, %v240_v46  ;;  %v2363_v44 = vld [vmem:[%s4750_s1 + $0x358] sm:$0xff] }
  0x7d   : > { %1465 = vmatprep.subr.mxu1 %v4821_v36  ;;  %2694 = vmatprep.subr.mxu0 %v460_v56  ;;  %v3739_v46 = vsel %vm251_vm2, %v225_v3, %v241_v14 }
  0x7e   : > { %2239 = vmatmul.mubr.msk.f32.gmra.mxu0 %vm2464_vm3, %v3682_v63  ;;  %2293 = vmatmul.mubr.msk.f32.gmra.mxu1 %vm2464_vm3, %v3373_v27  ;;  %v459_v27 = vld [vmem:[%s4750_s1 + $0x160] sm:$0xff] }
  0x7f   : > { %1466 = vmatpush1.msra.mxu1 %v2365_v7  ;;  %631 = vmatprep.mubr.f32.mxu0 %v3202_v16  ;;  %v242_v7 = vrot.slane %v3274_v43, 7 }
  0x80   : > { %1041 = vmatprep.mubr.f32.mxu1 %v3034_v29  ;;  %1467 = vmatprep.subr.mxu1 %v4821_v36  ;;  %v3720_v29 = vsel %vm251_vm2, %v241_v14, %v225_v3  ;;  %v456_v3 = vld [vmem:[%s4750_s1 + $0x148] sm:$0xff] }
  0x81   : > { %2695 = vmatpush3.msra.mxu0 %v460_v56  ;;  %1468 = vmatpush1.msra.mxu1 %v2364_v50  ;;  %v226_v56 = vrot.slane %v3271_v41, 7  ;;  %v457_v50 = vld [vmem:[%s4750_s1 + $0x150] sm:$0xff] }
  0x82   : > { %632 = vmatmul.mubr.f32.gmra.mxu0 %v3702_v28  ;;  %1042 = vmatmul.mubr.f32.gmra.mxu1 %v3414_v54  ;;  %v458_v54 = vld [vmem:[%s4750_s1 + $0x158] sm:$0xff] }
  0x83   : > { %636 = vmatprep.mubr.f32.mxu0 %v3235_v25  ;;  %1046 = vmatprep.mubr.f32.mxu1 %v3059_v38  ;;  %v2362_v38 = vld [vmem:[%s4750_s1 + $0x350] sm:$0xff]  ;;  %v3756_v14 = vsel %vm251_vm2, %v242_v7, %v226_v56 }
  0x84   : > { %1469 = vmatprep.subr.mxu1 %v4821_v36  ;;  %2696 = vmatprep.subr.mxu0 %v459_v27 }
  0x85   : > { %1470 = vmatpush1.msra.mxu1 %v2363_v44  ;;  %2697 = vmatpush3.msra.mxu0 %v459_v27  ;;  %v3775_v27 = vsel %vm251_vm2, %v226_v56, %v242_v7  ;;  %v227_v44 = vrot.slane %v3308_v57, 7  ;;  %v454_v7 = vld [vmem:[%s4750_s1 + $0x138] sm:$0xff] }
  0x86   : > { %2241 = vmatmul.mubr.msk.f32.gmra.mxu0 %vm2464_vm3, %v3720_v29  ;;  %2295 = vmatmul.mubr.msk.f32.gmra.mxu1 %vm2464_vm3, %v3450_v20 }
  0x87   : > { %641 = vmatprep.mubr.f32.mxu0 %v3238_v26  ;;  %1051 = vmatprep.mubr.f32.mxu1 %v3062_v39  ;;  %v2361_v39 = vld [vmem:[%s4750_s1 + $0x348] sm:$0xff] }
  0x88   : > { %1471 = vmatprep.subr.mxu1 %v4821_v36  ;;  %2698 = vmatprep.subr.mxu0 %v458_v54 }
  0x89   : > { %1472 = vmatpush1.msra.mxu1 %v2362_v38  ;;  %2699 = vmatpush3.msra.mxu0 %v458_v54  ;;  %v243_v54 = vrot.slane %v3311_v60, 7  ;;  %v455_v38 = vld [vmem:[%s4750_s1 + $0x140] sm:$0xff] }
  0x8a   : > { %642 = vmatmul.mubr.f32.gmra.mxu0 %v3739_v46  ;;  %1052 = vmatmul.mubr.f32.gmra.mxu1 %v3486_v13 }
  0x8b   : > { %646 = vmatprep.mubr.f32.mxu0 %v3271_v41  ;;  %1056 = vmatprep.mubr.f32.mxu1 %v3090_v48  ;;  %v2360_v48 = vld [vmem:[%s4750_s1 + $0x340] sm:$0xff]  ;;  %v3792_v56 = vsel %vm251_vm2, %v243_v54, %v227_v44 }
  0x8c   : > { %1473 = vmatprep.subr.mxu1 %v4821_v36  ;;  %2700 = vmatprep.subr.mxu0 %v457_v50 }
  0x8d   : > { %1474 = vmatpush1.msra.mxu1 %v2361_v39  ;;  %2701 = vmatpush3.msra.mxu0 %v457_v50  ;;  %v3811_v50 = vsel %vm251_vm2, %v227_v44, %v243_v54  ;;  %v228_v39 = vrot.slane %v3336_v9, 7  ;;  %v452_v54 = vld [vmem:[%s4750_s1 + $0x128] sm:$0xff] }
  0x8e   : > { %2243 = vmatmul.mubr.msk.f32.gmra.mxu0 %vm2464_vm3, %v3756_v14  ;;  %2297 = vmatmul.mubr.msk.f32.gmra.mxu1 %vm2464_vm3, %v3522_v19 }
  0x8f   : > { %651 = vmatprep.mubr.f32.mxu0 %v3274_v43  ;;  %1061 = vmatprep.mubr.f32.mxu1 %v3093_v49  ;;  %v2359_v49 = vld [vmem:[%s4750_s1 + $0x338] sm:$0xff] }
  0x90   : > { %1475 = vmatprep.subr.mxu1 %v4821_v36  ;;  %2702 = vmatprep.subr.mxu0 %v456_v3 }
  0x91   : > { %1476 = vmatpush1.msra.mxu1 %v2360_v48  ;;  %2703 = vmatpush3.msra.mxu0 %v456_v3  ;;  %v244_v3 = vrot.slane %v3339_v10, 7  ;;  %v453_v48 = vld [vmem:[%s4750_s1 + $0x130] sm:$0xff] }
  0x92   : > { %652 = vmatmul.mubr.f32.gmra.mxu0 %v3775_v27  ;;  %1062 = vmatmul.mubr.f32.gmra.mxu1 %v3558_v62 }
  0x93   : > { %656 = vmatprep.mubr.f32.mxu0 %v3308_v57  ;;  %1066 = vmatprep.mubr.f32.mxu1 %v3127_v58  ;;  %v2358_v58 = vld [vmem:[%s4750_s1 + $0x330] sm:$0xff]  ;;  %v3828_v44 = vsel %vm251_vm2, %v244_v3, %v228_v39 }
  0x94   : > { %1477 = vmatprep.subr.mxu1 %v4821_v36  ;;  %2704 = vmatprep.subr.mxu0 %v455_v38 }
  0x95   : > { %1478 = vmatpush1.msra.mxu1 %v2359_v49  ;;  %2705 = vmatpush3.msra.mxu0 %v455_v38  ;;  %v3847_v38 = vsel %vm251_vm2, %v228_v39, %v244_v3  ;;  %v229_v49 = vrot.slane %v3380_v33, 7  ;;  %v450_v3 = vld [vmem:[%s4750_s1 + $0x118] sm:$0xff] }
  0x96   : > { %2245 = vmatmul.mubr.msk.f32.gmra.mxu0 %vm2464_vm3, %v3792_v56  ;;  %2299 = vmatmul.mubr.msk.f32.gmra.mxu1 %vm2464_vm3, %v3594_v17 }
  0x97   : > { %661 = vmatprep.mubr.f32.mxu0 %v3311_v60  ;;  %1071 = vmatprep.mubr.f32.mxu1 %v3130_v59  ;;  %v2357_v59 = vld [vmem:[%s4750_s1 + $0x328] sm:$0xff] }
  0x98   : > { %1479 = vmatprep.subr.mxu1 %v4821_v36  ;;  %2706 = vmatprep.subr.mxu0 %v454_v7 }
  0x99   : > { %1480 = vmatpush1.msra.mxu1 %v2358_v58  ;;  %2707 = vmatpush3.msra.mxu0 %v454_v7  ;;  %v245_v7 = vrot.slane %v3383_v34, 7  ;;  %v451_v58 = vld [vmem:[%s4750_s1 + $0x120] sm:$0xff] }
  0x9a   : > { %662 = vmatmul.mubr.f32.gmra.mxu0 %v3811_v50  ;;  %1072 = vmatmul.mubr.f32.gmra.mxu1 %v3622_v47 }
  0x9b   : > { %666 = vmatprep.mubr.f32.mxu0 %v3336_v9  ;;  %1076 = vmatprep.mubr.f32.mxu1 %v3163_v5  ;;  %v2356_v5 = vld [vmem:[%s4750_s1 + $0x320] sm:$0xff]  ;;  %v3864_v39 = vsel %vm251_vm2, %v245_v7, %v229_v49 }
  0x9c   : > { %1481 = vmatprep.subr.mxu1 %v4821_v36  ;;  %2708 = vmatprep.subr.mxu0 %v453_v48 }
  0x9d   : > { %1482 = vmatpush1.msra.mxu1 %v2357_v59  ;;  %2709 = vmatpush3.msra.mxu0 %v453_v48  ;;  %v3883_v48 = vsel %vm251_vm2, %v229_v49, %v245_v7  ;;  %v230_v59 = vrot.slane %v3419_v0, 7  ;;  %v448_v7 = vld [vmem:[%s4750_s1 + $0x108] sm:$0xff] }
  0x9e   : > { %2247 = vmatmul.mubr.msk.f32.gmra.mxu0 %vm2464_vm3, %v3828_v44  ;;  %2301 = vmatmul.mubr.msk.f32.gmra.mxu1 %vm2464_vm3, %v3647_v53 }
  0x9f   : > { %671 = vmatprep.mubr.f32.mxu0 %v3339_v10  ;;  %1081 = vmatprep.mubr.f32.mxu1 %v3166_v6  ;;  %v2355_v6 = vld [vmem:[%s4750_s1 + $0x318] sm:$0xff] }
  0xa0   : > { %1483 = vmatprep.subr.mxu1 %v4821_v36  ;;  %2710 = vmatprep.subr.mxu0 %v452_v54 }
  0xa1   : > { %1484 = vmatpush1.msra.mxu1 %v2356_v5  ;;  %2711 = vmatpush3.msra.mxu0 %v452_v54  ;;  %v246_v54 = vrot.slane %v3422_v4, 7  ;;  %v449_v5 = vld [vmem:[%s4750_s1 + $0x110] sm:$0xff] }
  0xa2   : > { %672 = vmatmul.mubr.f32.gmra.mxu0 %v3847_v38  ;;  %1082 = vmatmul.mubr.f32.gmra.mxu1 %v3666_v52 }
  0xa3   : > { %676 = vmatprep.mubr.f32.mxu0 %v3380_v33  ;;  %1086 = vmatprep.mubr.f32.mxu1 %v3199_v15  ;;  %v2354_v15 = vld [vmem:[%s4750_s1 + $0x310] sm:$0xff]  ;;  %v3900_v49 = vsel %vm251_vm2, %v246_v54, %v230_v59 }
  0xa4   : > { %1485 = vmatprep.subr.mxu1 %v4821_v36  ;;  %2712 = vmatprep.subr.mxu0 %v451_v58 }
  0xa5   : > { %1486 = vmatpush1.msra.mxu1 %v2355_v6  ;;  %2713 = vmatpush3.msra.mxu0 %v451_v58  ;;  %v3919_v58 = vsel %vm251_vm2, %v230_v59, %v246_v54  ;;  %v231_v6 = vrot.slane %v3453_v21, 7  ;;  %v3942_v54 = vld [vmem:[%s4750_s1 + $0x478] sm:$0xff] }
  0xa6   : > { %2249 = vmatmul.mubr.msk.f32.gmra.mxu0 %vm2464_vm3, %v3864_v39  ;;  %2303 = vmatmul.mubr.msk.f32.gmra.mxu1 %vm2464_vm3, %v3682_v63  ;;  %4830 = vst [vmem:[#allocation24_spill] sm:$0xff] %v3919_v58 }
  0xa7   : > { %681 = vmatprep.mubr.f32.mxu0 %v3383_v34  ;;  %1091 = vmatprep.mubr.f32.mxu1 %v3202_v16  ;;  %v2353_v16 = vld [vmem:[%s4750_s1 + $0x308] sm:$0xff] }
  0xa8   : > { %1487 = vmatprep.subr.mxu1 %v4821_v36  ;;  %2714 = vmatprep.subr.mxu0 %v450_v3 }
  0xa9   : > { %1488 = vmatpush1.msra.mxu1 %v2354_v15  ;;  %2715 = vmatpush3.msra.mxu0 %v450_v3  ;;  %v247_v3 = vrot.slane %v3456_v24, 7  ;;  %v447_v15 = vld [vmem:[%s4750_s1 + $0x100] sm:$0xff] }
  0xaa   : > { %682 = vmatmul.mubr.f32.gmra.mxu0 %v3883_v48  ;;  %1092 = vmatmul.mubr.f32.gmra.mxu1 %v3702_v28 }
  0xab   : > { %686 = vmatprep.mubr.f32.mxu0 %v3419_v0  ;;  %1096 = vmatprep.mubr.f32.mxu1 %v3235_v25  ;;  %v2352_v25 = vld [vmem:[%s4750_s1 + $0x300] sm:$0xff]  ;;  %v3936_v59 = vsel %vm251_vm2, %v247_v3, %v231_v6 }
  0xac   : > { %1489 = vmatprep.subr.mxu1 %v4821_v36  ;;  %2716 = vmatprep.subr.mxu0 %v449_v5  ;;  %4831 = vst [vmem:[#allocation25_spill] sm:$0xff] %v3936_v59 }
  0xad   : > { %1490 = vmatpush1.msra.mxu1 %v2353_v16  ;;  %2717 = vmatpush3.msra.mxu0 %v449_v5  ;;  %v3957_v5 = vsel %vm251_vm2, %v231_v6, %v247_v3  ;;  %v232_v16 = vrot.slane %v3491_v32, 7  ;;  %v2380_v6 = vld [vmem:[%s4750_s1 + $0x3e0] sm:$0xff]  ;;  %v233_v3 = vrot.slane %v3525_v11, 7 }
  0xae   : > { %2251 = vmatmul.mubr.msk.f32.gmra.mxu0 %vm2464_vm3, %v3900_v49  ;;  %2305 = vmatmul.mubr.msk.f32.gmra.mxu1 %vm2464_vm3, %v3720_v29  ;;  %4832 = vst [vmem:[#allocation26_spill] sm:$0xff] %v3957_v5 }
  0xaf   : > { %691 = vmatprep.mubr.f32.mxu0 %v3422_v4  ;;  %1101 = vmatprep.mubr.f32.mxu1 %v3238_v26  ;;  %v2383_v26 = vld [vmem:[%s4750_s1 + $0x3f8] sm:$0xff] }
  0xb0   : > { %1491 = vmatprep.subr.mxu1 %v4821_v36  ;;  %2718 = vmatprep.subr.mxu0 %v448_v7 }
  0xb1   : > { %1492 = vmatpush1.msra.mxu1 %v2352_v25  ;;  %2719 = vmatpush3.msra.mxu0 %v448_v7  ;;  %v248_v7 = vrot.slane %v3494_v23, 7 }
  0xb2   : > { %692 = vmatmul.mubr.f32.gmra.mxu0 %v3919_v58  ;;  %1102 = vmatmul.mubr.f32.gmra.mxu1 %v3739_v46 }
  0xb3   : > { %696 = vmatprep.mubr.f32.mxu0 %v3453_v21  ;;  %1106 = vmatprep.mubr.f32.mxu1 %v3271_v41  ;;  %v2382_v41 = vld [vmem:[%s4750_s1 + $0x3f0] sm:$0xff]  ;;  %v3972_v25 = vsel %vm251_vm2, %v248_v7, %v232_v16 }
  0xb4   : > { %1493 = vmatprep.subr.mxu1 %v4821_v36  ;;  %2720 = vmatprep.subr.mxu0 %v447_v15  ;;  %4833 = vst [vmem:[#allocation27_spill] sm:$0xff] %v3972_v25 }
  0xb5   : > { %1494 = vmatpush2.msra.mxu1 %v2383_v26  ;;  %2721 = vmatpush3.msra.mxu0 %v447_v15  ;;  %v249_v15 = vrot.slane %v3528_v2, 7  ;;  %v2379_v26 = vld [vmem:[%s4750_s1 + $0x3d8] sm:$0xff] }
  0xb6   : > { %2253 = vmatmul.mubr.msk.f32.gmra.mxu0 %vm2464_vm3, %v3936_v59  ;;  %2307 = vmatmul.mubr.msk.f32.gmra.mxu1 %vm2464_vm3, %v3756_v14 }
  0xb7   : > { %701 = vmatprep.mubr.f32.mxu0 %v3456_v24  ;;  %1111 = vmatprep.mubr.f32.mxu1 %v3274_v43  ;;  %v2381_v43 = vld [vmem:[%s4750_s1 + $0x3e8] sm:$0xff] }
  0xb8   : > { %1495 = vmatprep.subr.mxu1 %v4821_v36  ;;  %2770 = vmatprep.subr.mxu0 %v3942_v54 }
  0xb9   : > { %1496 = vmatpush2.msra.mxu1 %v2382_v41  ;;  %v2378_v41 = vld [vmem:[%s4750_s1 + $0x3d0] sm:$0xff] }
  0xba   : > { %702 = vmatmul.mubr.f32.gmra.mxu0 %v3957_v5  ;;  %1112 = vmatmul.mubr.f32.gmra.mxu1 %v3775_v27 }
  0xbb   : > { %706 = vmatprep.mubr.f32.mxu0 %v3491_v32  ;;  %1116 = vmatprep.mubr.f32.mxu1 %v3308_v57  ;;  %v3988_v57 = vsel %vm251_vm2, %v232_v16, %v248_v7  ;;  %v234_v16 = vrot.slane %v3563_v35, 7  ;;  %v250_v7 = vrot.slane %v3566_v31, 7 }
  0xbc   : > { %1497 = vmatprep.subr.mxu1 %v4821_v36  ;;  %4834 = vst [vmem:[#allocation28_spill] sm:$0xff] %v3988_v57 }
  0xbd   : > { %1498 = vmatpush2.msra.mxu1 %v2381_v43  ;;  %v2377_v43 = vld [vmem:[%s4750_s1 + $0x3c8] sm:$0xff] }
  0xbe   : > { %2255 = vmatmul.mubr.msk.f32.gmra.mxu0 %vm2464_vm3, %v3972_v25  ;;  %2309 = vmatmul.mubr.msk.f32.gmra.mxu1 %vm2464_vm3, %v3792_v56 }
  0xbf   : > { %711 = vmatprep.mubr.f32.mxu0 %v3494_v23  ;;  %1121 = vmatprep.mubr.f32.mxu1 %v3311_v60  ;;  %v4002_v60 = vsel %vm251_vm2, %v249_v15, %v233_v3 }
  0xc0   : > { %1499 = vmatprep.subr.mxu1 %v4821_v36  ;;  %4835 = vst [vmem:[#allocation29_spill] sm:$0xff] %v4002_v60 }
  0xc1   : > { %1500 = vmatpush2.msra.mxu1 %v2380_v6  ;;  %v2375_v6 = vld [vmem:[%s4750_s1 + $0x3b8] sm:$0xff] }
  0xc2   : > { %712 = vmatmul.mubr.f32.gmra.mxu0 %v3988_v57  ;;  %1122 = vmatmul.mubr.f32.gmra.mxu1 %v3811_v50 }
  0xc3   : > { %716 = vmatprep.mubr.f32.mxu0 %v3525_v11  ;;  %1126 = vmatprep.mubr.f32.mxu1 %v3336_v9  ;;  %v4018_v9 = vsel %vm251_vm2, %v233_v3, %v249_v15  ;;  %v2369_v3 = vld [vmem:[%s4750_s1 + $0x388] sm:$0xff]  ;;  %v4839_v15 = vld [vmem:[#allocation2_spill] sm:$0xff] }
  0xc4   : > { %1501 = vmatprep.subr.mxu1 %v4821_v36  ;;  %4836 = vst [vmem:[#allocation30_spill] sm:$0xff] %v4018_v9 }
  0xc5   : > { %1502 = vmatpush2.msra.mxu1 %v2379_v26 }
  0xc6   : > { %2257 = vmatmul.mubr.msk.f32.gmra.mxu0 %vm2464_vm3, %v4002_v60  ;;  %2311 = vmatmul.mubr.msk.f32.gmra.mxu1 %vm2464_vm3, %v3828_v44 }
  0xc7   : > { %721 = vmatprep.mubr.f32.mxu0 %v3528_v2  ;;  %1131 = vmatprep.mubr.f32.mxu1 %v3339_v10  ;;  %v4032_v10 = vsel %vm251_vm2, %v250_v7, %v234_v16 }
  0xc8   : > { %1503 = vmatprep.subr.mxu1 %v4821_v36  ;;  %4837 = vst [vmem:[#allocation31_spill] sm:$0xff] %v4032_v10 }
  0xc9   : > { %1504 = vmatpush2.msra.mxu1 %v2378_v41  ;;  %v4840_v41 = vld [vmem:[#allocation3_spill] sm:$0xff] }
  0xca   : > { %722 = vmatmul.mubr.f32.gmra.mxu0 %v4018_v9  ;;  %1132 = vmatmul.mubr.f32.gmra.mxu1 %v3847_v38 }
  0xcb   : > { %726 = vmatprep.mubr.f32.mxu0 %v3563_v35  ;;  %1136 = vmatprep.mubr.f32.mxu1 %v3380_v33  ;;  %v2376_v35 = vld [vmem:[%s4750_s1 + $0x3c0] sm:$0xff]  ;;  %v4048_v33 = vsel %vm251_vm2, %v234_v16, %v250_v7  ;;  %v4841_v7 = vld [vmem:[#allocation4_spill] sm:$0xff] }
  0xcc   : > { %1505 = vmatprep.subr.mxu1 %v4821_v36  ;;  %4838 = vst [vmem:[#allocation32_spill] sm:$0xff] %v4048_v33  ;;  %v2392_v16 = vld [vmem:[%s4750_s1 + $0x440] sm:$0xff] }
  0xcd   : > { %1506 = vmatpush2.msra.mxu1 %v2377_v43 }
  0xce   : > { %2259 = vmatmul.mubr.msk.f32.gmra.mxu0 %vm2464_vm3, %v4032_v10  ;;  %2313 = vmatmul.mubr.msk.f32.gmra.mxu1 %vm2464_vm3, %v3864_v39  ;;  %v2863_v10 = vld [vmem:[%s3017_s11 + $0x30] sm:$0xff] }
  0xcf   : > { %731 = vmatprep.mubr.f32.mxu0 %v3566_v31  ;;  %1141 = vmatprep.mubr.f32.mxu1 %v3383_v34  ;;  %v2374_v31 = vld [vmem:[%s4750_s1 + $0x3b0] sm:$0xff] }
  0xd0   : > { %1507 = vmatprep.subr.mxu1 %v4821_v36  ;;  %v2398_v34 = vld [vmem:[%s4750_s1 + $0x470] sm:$0xff] }
  0xd1   : > { %1508 = vmatpush2.msra.mxu1 %v2376_v35  ;;  %v4842_v35 = vld [vmem:[#allocation5_spill] sm:$0xff] }
  0xd2   : > { %732 = vmatmul.mubr.f32.gmra.mxu0 %v4048_v33  ;;  %1142 = vmatmul.mubr.f32.gmra.mxu1 %v3883_v48  ;;  %v4851_v33 = vld [vmem:[#allocation14_spill] sm:$0xff] }
  0xd3   : > { %1146 = vmatprep.mubr.f32.mxu1 %v3419_v0  ;;  %2722 = vmatprep.mubr.f32.mxu0 %v4821_v36  ;;  %v2373_v0 = vld [vmem:[%s4750_s1 + $0x3a8] sm:$0xff] }
  0xd4   : > { %1509 = vmatprep.subr.mxu1 %v4821_v36 }
  0xd5   : > { %1510 = vmatpush2.msra.mxu1 %v2375_v6 }
  0xd6   : > { %2315 = vmatmul.mubr.msk.f32.gmra.mxu1 %vm2464_vm3, %v3900_v49  ;;  %2723 = vmatmul.mubr.f32.vlgmr.msra.gmra.mxu0 %v4821_v36 }
  0xd7   : > { %1151 = vmatprep.mubr.f32.mxu1 %v3422_v4  ;;  %2725 = vmatprep.mubr.f32.mxu0 %v3073_v42  ;;  %v2397_v42 = vld [vmem:[%s4750_s1 + $0x468] sm:$0xff]  ;;  %v2396_v4 = vld [vmem:[%s4750_s1 + $0x460] sm:$0xff] }
  0xd8   : > { %1511 = vmatprep.subr.mxu1 %v4821_v36  ;;  %2771 = vmatpush3.msra.mxu0 %v3942_v54  ;;  %v2370_v54 = vld [vmem:[%s4750_s1 + $0x390] sm:$0xff] }
  0xd9   : > { %1512 = vmatpush2.msra.mxu1 %v2374_v31  ;;  %2772 = vmatprep.subr.mxu0 %v2398_v34  ;;  %v4843_v31 = vld [vmem:[#allocation6_spill] sm:$0xff] }
  0xda   : > { %1152 = vmatmul.mubr.f32.gmra.mxu1 %v3919_v58  ;;  %2726 = vmatmul.mubr.msk.f32.gmra.mxu0 %vm2465_vm1, %v3081_v45  ;;  %v2372_v45 = vld [vmem:[%s4750_s1 + $0x3a0] sm:$0xff] }
  0xdb   : > { %1156 = vmatprep.mubr.f32.mxu1 %v3453_v21  ;;  %2728 = vmatprep.mubr.f32.mxu0 %v3106_v51  ;;  %v2371_v21 = vld [vmem:[%s4750_s1 + $0x398] sm:$0xff] }
  0xdc   : > { %1513 = vmatprep.subr.mxu1 %v4821_v36  ;;  %2773 = vmatpush3.msra.mxu0 %v2398_v34  ;;  %v2859_v34 = vld [vmem:[%s3017_s11 + $0x10] sm:$0xff] }
  0xdd   : > { %1514 = vmatpush2.msra.mxu1 %v2373_v0  ;;  %2774 = vmatprep.subr.mxu0 %v2397_v42 }
  0xde   : > { %2317 = vmatmul.mubr.msk.f32.gmra.mxu1 %vm2464_vm3, %v3936_v59  ;;  %2729 = vmatmul.mubr.msk.f32.gmra.mxu0 %vm2465_vm1, %v3117_v55  ;;  %v2866_v59 = vld [vmem:[%s3017_s11 + $0x48] sm:$0xff] }
  0xdf   : > { %1161 = vmatprep.mubr.f32.mxu1 %v3456_v24  ;;  %2731 = vmatprep.mubr.f32.mxu0 %v3142_v61  ;;  %v2395_v24 = vld [vmem:[%s4750_s1 + $0x458] sm:$0xff] }
  0xe0   : > { %1515 = vmatprep.subr.mxu1 %v4821_v36  ;;  %2775 = vmatpush3.msra.mxu0 %v2397_v42  ;;  %v4844_v42 = vld [vmem:[#allocation7_spill] sm:$0xff] }
  0xe1   : > { %1516 = vmatpush2.msra.mxu1 %v2372_v45  ;;  %2776 = vmatprep.subr.mxu0 %v2396_v4  ;;  %v2390_v45 = vld [vmem:[%s4750_s1 + $0x430] sm:$0xff] }
  0xe2   : > { %1162 = vmatmul.mubr.f32.gmra.mxu1 %v3957_v5  ;;  %2732 = vmatmul.mubr.msk.f32.gmra.mxu0 %vm2465_vm1, %v3153_v1  ;;  %v2865_v5 = vld [vmem:[%s3017_s11 + $0x40] sm:$0xff] }
  0xe3   : > { %1166 = vmatprep.mubr.f32.mxu1 %v3491_v32  ;;  %2734 = vmatprep.mubr.f32.mxu0 %v3178_v8  ;;  %v2394_v32 = vld [vmem:[%s4750_s1 + $0x450] sm:$0xff] }
  0xe4   : > { %1517 = vmatprep.subr.mxu1 %v4821_v36  ;;  %2777 = vmatpush3.msra.mxu0 %v2396_v4  ;;  %v4845_v4 = vld [vmem:[#allocation8_spill] sm:$0xff] }
  0xe5   : > { %1518 = vmatpush2.msra.mxu1 %v2371_v21  ;;  %2778 = vmatprep.subr.mxu0 %v2395_v24  ;;  %v2860_v21 = vld [vmem:[%s3017_s11 + $0x18] sm:$0xff] }
  0xe6   : > { %2319 = vmatmul.mubr.msk.f32.gmra.mxu1 %vm2464_vm3, %v3972_v25  ;;  %2735 = vmatmul.mubr.msk.f32.gmra.mxu0 %vm2465_vm1, %v3189_v12  ;;  %v4855_v25 = vld [vmem:[#allocation18_spill] sm:$0xff] }
  0xe7   : > { %1171 = vmatprep.mubr.f32.mxu1 %v3494_v23  ;;  %2737 = vmatprep.mubr.f32.mxu0 %v3214_v18  ;;  %v2393_v23 = vld [vmem:[%s4750_s1 + $0x448] sm:$0xff] }
  0xe8   : > { %1519 = vmatprep.subr.mxu1 %v4821_v36  ;;  %2779 = vmatpush3.msra.mxu0 %v2395_v24 }
  0xe9   : > { %1520 = vmatpush2.msra.mxu1 %v2370_v54  ;;  %2780 = vmatprep.subr.mxu0 %v2394_v32 }
  0xea   : > { %1172 = vmatmul.mubr.f32.gmra.mxu1 %v3988_v57  ;;  %2738 = vmatmul.mubr.msk.f32.gmra.mxu0 %vm2465_vm1, %v3225_v22  ;;  %v4854_v57 = vld [vmem:[#allocation17_spill] sm:$0xff] }
  0xeb   : > { %1176 = vmatprep.mubr.f32.mxu1 %v3525_v11  ;;  %2740 = vmatprep.mubr.f32.mxu0 %v4839_v15  ;;  %v2368_v11 = vld [vmem:[%s4750_s1 + $0x380] sm:$0xff] }
  0xec   : > { %1521 = vmatprep.subr.mxu1 %v4821_v36  ;;  %2781 = vmatpush3.msra.mxu0 %v2394_v32  ;;  %v4846_v32 = vld [vmem:[#allocation9_spill] sm:$0xff] }
  0xed   : > { %1522 = vmatpush2.msra.mxu1 %v2369_v3  ;;  %v4142_v26 = vpop.f32.mrf.mxu1  ;;  %2782 = vmatprep.subr.mxu0 %v2393_v23  ;;  %v4847_v3 = vld [vmem:[#allocation10_spill] sm:$0xff] }
  0xee   : > { %2321 = vmatmul.mubr.msk.f32.gmra.mxu1 %vm2464_vm3, %v4002_v60  ;;  %2741 = vmatmul.mubr.msk.f32.gmra.mxu0 %vm2465_vm1, %v4840_v41  ;;  %v2864_v60 = vld [vmem:[%s3017_s11 + $0x38] sm:$0xff] }
  0xef   : > { %1181 = vmatprep.mubr.f32.mxu1 %v3528_v2  ;;  %2743 = vmatprep.mubr.f32.mxu0 %v4841_v7  ;;  %v4158_v43 = vpop.f32.mrf.mxu1  ;;  %v2391_v2 = vld [vmem:[%s4750_s1 + $0x438] sm:$0xff] }
  0xf0   : > { %1523 = vmatprep.subr.mxu1 %v4821_v36  ;;  %2783 = vmatpush3.msra.mxu0 %v2393_v23  ;;  %v2861_v23 = vld [vmem:[%s3017_s11 + $0x20] sm:$0xff]  ;;  %v4857_v36 = vld [vmem:[#allocation19_spill] sm:$0xff] }
  0xf1   : > { %1524 = vmatpush2.msra.mxu1 %v2368_v11  ;;  %2784 = vmatprep.subr.mxu0 %v2392_v16 }
  0xf2   : > { %1182 = vmatmul.mubr.f32.gmra.mxu1 %v4018_v9  ;;  %2744 = vmatmul.mubr.msk.f32.gmra.mxu0 %vm2465_vm1, %v4842_v35  ;;  %v4165_v6 = vpop.f32.mrf.mxu1  ;;  %v2386_v9 = vld [vmem:[%s4750_s1 + $0x410] sm:$0xff] }
  0xf3   : > { %2746 = vmatprep.mubr.f32.mxu0 %v4843_v31  ;;  %1525 = vmatprep.mubr.f32.mxu1 %v2859_v34  ;;  %v4849_v34 = vld [vmem:[#allocation12_spill] sm:$0xff] }
  0xf4   : > { %v4172_v0 = vpop.f32.mrf.mxu1  ;;  %2785 = vmatpush3.msra.mxu0 %v2392_v16  ;;  %v4848_v16 = vld [vmem:[#allocation11_spill] sm:$0xff] }
  0xf5   : > { %2786 = vmatprep.subr.mxu0 %v2391_v2 }
  0xf6   : > { %2747 = vmatmul.mubr.msk.f32.gmra.mxu0 %vm2465_vm1, %v4844_v42  ;;  %2401 = vmatmul.mubr.msk.f32.vlgmr.msra.gmra.mxu1 %vm2464_vm3, %v3450_v20  ;;  %v2389_v20 = vld [vmem:[%s4750_s1 + $0x428] sm:$0xff] }
  0xf7   : > { %2749 = vmatprep.mubr.f32.mxu0 %v4845_v4  ;;  %1530 = vmatprep.mubr.f32.mxu1 %v2860_v21  ;;  %v4185_v24 = vpop.f32.mrf.mxu1  ;;  %v2862_v21 = vld [vmem:[%s3017_s11 + $0x28] sm:$0xff] }
  0xf8   : > { %2787 = vmatpush3.msra.mxu0 %v2391_v2  ;;  %v2388_v2 = vld [vmem:[%s4750_s1 + $0x420] sm:$0xff] }
  0xf9   : > { %v4187_v54 = vpop.f32.mrf.mxu1  ;;  %2788 = vmatprep.subr.mxu0 %v2390_v45 }
  0xfa   : > { %2750 = vmatmul.mubr.msk.f32.gmra.mxu0 %vm2465_vm1, %v4846_v32  ;;  %1531 = vmatmul.mubr.f32.gmra.mxu1 %v3486_v13 }
  0xfb   : > { %2752 = vmatprep.mubr.f32.mxu0 %v4847_v3  ;;  %1535 = vmatprep.mubr.f32.mxu1 %v2861_v23  ;;  %v4850_v23 = vld [vmem:[#allocation13_spill] sm:$0xff] }
  0xfc   : > { %v4198_v11 = vpop.f32.mrf.mxu1  ;;  %2789 = vmatpush3.msra.mxu0 %v2390_v45 }
  0xfd   : > { %2790 = vmatprep.subr.mxu0 %v2389_v20 }
  0xfe   : > { %2753 = vmatmul.mubr.msk.f32.gmra.mxu0 %vm2465_vm1, %v4848_v16  ;;  %2403 = vmatmul.mubr.msk.f32.gmra.mxu1 %vm2464_vm3, %v3522_v19  ;;  %v4206_v13 = vpop.f32.mrf.mxu1  ;;  %v2387_v19 = vld [vmem:[%s4750_s1 + $0x418] sm:$0xff] }
  0xff   : > { %2755 = vmatprep.mubr.f32.mxu0 %v4849_v34  ;;  %1540 = vmatprep.mubr.f32.mxu1 %v2862_v21 }
 0x100   : > { %2791 = vmatpush3.msra.mxu0 %v2389_v20  ;;  %v4852_v20 = vld [vmem:[#allocation15_spill] sm:$0xff] }
 0x101   : > { %v4213_v45 = vpop.f32.mrf.mxu1  ;;  %2792 = vmatprep.subr.mxu0 %v2388_v2 }
 0x102   : > { %2756 = vmatmul.mubr.msk.f32.gmra.mxu0 %vm2465_vm1, %v4850_v23  ;;  %1541 = vmatmul.mubr.f32.gmra.mxu1 %v3558_v62 }
 0x103   : > { %2758 = vmatprep.mubr.f32.mxu0 %v4851_v33  ;;  %1545 = vmatprep.mubr.f32.mxu1 %v2863_v10  ;;  %v4224_v21 = vpop.f32.mrf.mxu1  ;;  %v4853_v10 = vld [vmem:[#allocation16_spill] sm:$0xff] }
 0x104   : > { %2793 = vmatpush3.msra.mxu0 %v2388_v2 }
 0x105   : > { %2794 = vmatprep.subr.mxu0 %v2387_v19 }
 0x106   : > { %2759 = vmatmul.mubr.msk.f32.gmra.mxu0 %vm2465_vm1, %v4852_v20  ;;  %2405 = vmatmul.mubr.msk.f32.gmra.mxu1 %vm2464_vm3, %v3594_v17  ;;  %v4232_v62 = vpop.f32.mrf.mxu1  ;;  %v2385_v17 = vld [vmem:[%s4750_s1 + $0x408] sm:$0xff] }
 0x107   : > { %2761 = vmatprep.mubr.f32.mxu0 %v4853_v10  ;;  %1550 = vmatprep.mubr.f32.mxu1 %v2864_v60 }
 0x108   : > { %v4239_v2 = vpop.f32.mrf.mxu1  ;;  %2795 = vmatpush3.msra.mxu0 %v2387_v19 }
 0x109   : > { %2796 = vmatprep.subr.mxu0 %v2386_v9 }
 0x10a   : > { %2762 = vmatmul.mubr.msk.f32.gmra.mxu0 %vm2465_vm1, %v4854_v57  ;;  %1551 = vmatmul.mubr.f32.gmra.mxu1 %v3622_v47  ;;  %v2384_v47 = vld [vmem:[%s4750_s1 + $0x400] sm:$0xff] }
 0x10b   : > { %2764 = vmatprep.mubr.f32.mxu0 %v4855_v25  ;;  %1555 = vmatprep.mubr.f32.mxu1 %v2865_v5  ;;  %v4250_v60 = vpop.f32.mrf.mxu1  ;;  %v4858_v5 = vld [vmem:[#allocation20_spill] sm:$0xff] }
 0x10c   : > { %4856 = vst [vmem:[#allocation2_spill] sm:$0xff] %v4250_v60  ;;  %2797 = vmatpush3.msra.mxu0 %v2386_v9  ;;  %v2867_v60 = vld [vmem:[%s3017_s11 + $0x50] sm:$0xff] }
 0x10d   : > { %v4252_v19 = vpop.f32.mrf.mxu1  ;;  %2798 = vmatprep.subr.mxu0 %v2385_v17 }
 0x10e   : > { %2765 = vmatmul.mubr.msk.f32.gmra.mxu0 %vm2465_vm1, %v4857_v36  ;;  %2407 = vmatmul.mubr.msk.f32.gmra.mxu1 %vm2464_vm3, %v3647_v53 }
 0x10f   : > { %2767 = vmatprep.mubr.f32.mxu0 %v4858_v5  ;;  %1560 = vmatprep.mubr.f32.mxu1 %v2866_v59 }
 0x110   : > { %v4265_v9 = vpop.f32.mrf.mxu1  ;;  %2799 = vmatpush3.msra.mxu0 %v2385_v17 }
 0x111   : > { %2800 = vmatprep.subr.mxu0 %v2384_v47 }
 0x112   : > { %2768 = vmatmul.mubr.msk.f32.gmra.mxu0 %vm2465_vm1, %v4859_v40  ;;  %1561 = vmatmul.mubr.f32.gmra.mxu1 %v3666_v52  ;;  %v4271_v53 = vpop.f32.mrf.mxu1 }
 0x113   : > { %1565 = vmatprep.mubr.f32.mxu1 %v2867_v60  ;;  %2801 = vmatpush3.msra.mxu0 %v2384_v47  ;;  %v2868_v47 = vld [vmem:[%s3017_s11 + $0x58] sm:$0xff] }
 0x114   : > { %2802 = vmatprep.mubr.f32.mxu0 %v3106_v51 }
 0x115   : > { %v578_v58 = vpop.f32.mrf.mxu0  ;;  %v4275_v59 = vpop.f32.mrf.mxu1 }
 0x116   : > { %v4278_v17 = vadd.f32 %v4158_v43, %v578_v58  ;;  %2409 = vmatmul.mubr.msk.f32.gmra.mxu1 %vm2464_vm3, %v3682_v63  ;;  %2803 = vmatmul.mubr.msk.f32.vlgmr.msra.gmra.mxu0 %vm2465_vm1, %v3117_v55  ;;  %v2869_v63 = vld [vmem:[%s3017_s11 + $0x60] sm:$0xff] }
 0x117   : > { %v580_v52 = vpop.f32.mrf.mxu0  ;;  %v4286_v60 = vpop.f32.mrf.mxu1  ;;  %1570 = vmatprep.mubr.f32.mxu1 %v2868_v47  ;;  %2805 = vmatprep.mubr.f32.mxu0 %v3142_v61 }
 0x119   : > { %v583_v51 = vpop.f32.mrf.mxu0 }
 0x11a   : > { %v4291_v58 = vadd.f32 %v4142_v26, %v583_v51  ;;  %v4293_v43 = vpop.f32.mrf.mxu1  ;;  %1571 = vmatmul.mubr.f32.gmra.mxu1 %v3702_v28  ;;  %2806 = vmatmul.mubr.msk.f32.gmra.mxu0 %vm2465_vm1, %v3153_v1  ;;  %v2870_v28 = vld [vmem:[%s3017_s11 + $0x68] sm:$0xff] }
 0x11b   : > { %v585_v55 = vpop.f32.mrf.mxu0  ;;  %1575 = vmatprep.mubr.f32.mxu1 %v2869_v63  ;;  %2808 = vmatprep.mubr.f32.mxu0 %v3178_v8 }
 0x11c   : > { %v4301_v52 = vpop.f32.mrf.mxu1 }
 0x11d   : > { %v588_v61 = vpop.f32.mrf.mxu0 }
 0x11e   : > { %v4304_v26 = vadd.f32 %v4172_v0, %v588_v61  ;;  %v4306_v47 = vpop.f32.mrf.mxu1  ;;  %2411 = vmatmul.mubr.msk.f32.gmra.mxu1 %vm2464_vm3, %v3720_v29  ;;  %2809 = vmatmul.mubr.msk.f32.gmra.mxu0 %vm2465_vm1, %v3189_v12  ;;  %v2871_v29 = vld [vmem:[%s3017_s11 + $0x70] sm:$0xff] }
 0x11f   : > { %v590_v1 = vpop.f32.mrf.mxu0  ;;  %1580 = vmatprep.mubr.f32.mxu1 %v2870_v28  ;;  %2811 = vmatprep.mubr.f32.mxu0 %v3214_v18 }
 0x120   : > { %v4316_v8 = vpop.f32.mrf.mxu1 }
 0x121   : > { %v593_v51 = vpop.f32.mrf.mxu0 }
 0x122   : > { %v4319_v0 = vadd.f32 %v4165_v6, %v593_v51  ;;  %v4321_v55 = vpop.f32.mrf.mxu1  ;;  %1581 = vmatmul.mubr.f32.gmra.mxu1 %v3739_v46  ;;  %2812 = vmatmul.mubr.msk.f32.gmra.mxu0 %vm2465_vm1, %v3225_v22  ;;  %v2872_v46 = vld [vmem:[%s3017_s11 + $0x78] sm:$0xff] }
 0x123   : > { %v595_v12 = vpop.f32.mrf.mxu0  ;;  %1585 = vmatprep.mubr.f32.mxu1 %v2871_v29  ;;  %2814 = vmatprep.mubr.f32.mxu0 %v4839_v15 }
 0x124   : > { %v4329_v18 = vpop.f32.mrf.mxu1 }
 0x125   : > { %v598_v63 = vpop.f32.mrf.mxu0 }
 0x126   : > { %v4332_v6 = vadd.f32 %v4187_v54, %v598_v63  ;;  %v4334_v61 = vpop.f32.mrf.mxu1  ;;  %2413 = vmatmul.mubr.msk.f32.gmra.mxu1 %vm2464_vm3, %v3756_v14  ;;  %2815 = vmatmul.mubr.msk.f32.gmra.mxu0 %vm2465_vm1, %v4840_v41  ;;  %v2873_v41 = vld [vmem:[%s3017_s11 + $0x80] sm:$0xff] }
 0x127   : > { %v600_v22 = vpop.f32.mrf.mxu0  ;;  %1590 = vmatprep.mubr.f32.mxu1 %v2872_v46  ;;  %2817 = vmatprep.mubr.f32.mxu0 %v4841_v7 }
 0x128   : > { %v4344_v15 = vpop.f32.mrf.mxu1 }
 0x129   : > { %v603_v1 = vpop.f32.mrf.mxu0 }
 0x12a   : > { %v4347_v54 = vadd.f32 %v4185_v24, %v603_v1  ;;  %v4349_v28 = vpop.f32.mrf.mxu1  ;;  %1591 = vmatmul.mubr.f32.gmra.mxu1 %v3775_v27  ;;  %2818 = vmatmul.mubr.msk.f32.gmra.mxu0 %vm2465_vm1, %v4842_v35  ;;  %v2874_v35 = vld [vmem:[%s3017_s11 + $0x88] sm:$0xff] }
 0x12b   : > { %v605_v14 = vpop.f32.mrf.mxu0  ;;  %1595 = vmatprep.mubr.f32.mxu1 %v2873_v41  ;;  %2820 = vmatprep.mubr.f32.mxu0 %v4843_v31 }
 0x12c   : > { %v4357_v7 = vpop.f32.mrf.mxu1 }
 0x12d   : > { %v608_v51 = vpop.f32.mrf.mxu0 }
 0x12e   : > { %v4360_v24 = vadd.f32 %v4206_v13, %v608_v51  ;;  %v4362_v12 = vpop.f32.mrf.mxu1  ;;  %2415 = vmatmul.mubr.msk.f32.gmra.mxu1 %vm2464_vm3, %v3792_v56  ;;  %2821 = vmatmul.mubr.msk.f32.gmra.mxu0 %vm2465_vm1, %v4844_v42  ;;  %v2875_v42 = vld [vmem:[%s3017_s11 + $0x90] sm:$0xff] }
 0x12f   : > { %v610_v27 = vpop.f32.mrf.mxu0  ;;  %1600 = vmatprep.mubr.f32.mxu1 %v2874_v35  ;;  %2823 = vmatprep.mubr.f32.mxu0 %v4845_v4 }
 0x130   : > { %v4372_v31 = vpop.f32.mrf.mxu1 }
 0x131   : > { %v613_v29 = vpop.f32.mrf.mxu0 }
 0x132   : > { %v4375_v13 = vadd.f32 %v4198_v11, %v613_v29  ;;  %v4377_v63 = vpop.f32.mrf.mxu1  ;;  %1601 = vmatmul.mubr.f32.gmra.mxu1 %v3811_v50  ;;  %2824 = vmatmul.mubr.msk.f32.gmra.mxu0 %vm2465_vm1, %v4846_v32 }
 0x133   : > { %v615_v56 = vpop.f32.mrf.mxu0  ;;  %1605 = vmatprep.mubr.f32.mxu1 %v2875_v42  ;;  %2826 = vmatprep.mubr.f32.mxu0 %v4847_v3  ;;  %v2876_v3 = vld [vmem:[%s3017_s11 + $0x98] sm:$0xff] }
 0x134   : > { %v4385_v4 = vpop.f32.mrf.mxu1 }
 0x136   : > { %v618_v22 = vpop.f32.mrf.mxu0  ;;  %v1028_v46 = vpop.f32.mrf.mxu1  ;;  %2417 = vmatmul.mubr.msk.f32.gmra.mxu1 %vm2464_vm3, %v3828_v44  ;;  %2827 = vmatmul.mubr.msk.f32.gmra.mxu0 %vm2465_vm1, %v4848_v16 }
 0x137   : > { %v4394_v50 = vadd.f32 %v4224_v21, %v618_v22  ;;  %v4397_v32 = vadd.f32 %v1028_v46, %v4278_v17  ;;  %1610 = vmatprep.mubr.f32.mxu1 %v2876_v3  ;;  %2829 = vmatprep.mubr.f32.mxu0 %v4849_v34  ;;  %v2877_v21 = vld [vmem:[%s3017_s11 + $0xa0] sm:$0xff]  ;;  %v4860_v3 = vld [vmem:[#allocation24_spill] sm:$0xff] }
 0x138   : > { %v620_v11 = vpop.f32.mrf.mxu0  ;;  %v1030_v1 = vpop.f32.mrf.mxu1 }
 0x13a   : > { %v623_v14 = vpop.f32.mrf.mxu0  ;;  %v1033_v41 = vpop.f32.mrf.mxu1  ;;  %1611 = vmatmul.mubr.f32.gmra.mxu1 %v3847_v38  ;;  %2830 = vmatmul.mubr.msk.f32.gmra.mxu0 %vm2465_vm1, %v4850_v23 }
 0x13b   : > { %v4406_v44 = vadd.f32 %v4213_v45, %v623_v14  ;;  %v4409_v16 = vadd.f32 %v1033_v41, %v4291_v58  ;;  %1615 = vmatprep.mubr.f32.mxu1 %v2877_v21  ;;  %2832 = vmatprep.mubr.f32.mxu0 %v4851_v33  ;;  %v2878_v33 = vld [vmem:[%s3017_s11 + $0xa8] sm:$0xff]  ;;  %v4863_v21 = vld [vmem:[#allocation25_spill] sm:$0xff] }
 0x13c   : > { %v625_v34 = vpop.f32.mrf.mxu0  ;;  %v1035_v17 = vpop.f32.mrf.mxu1 }
 0x13d   : > { %v2882_v17 = vld [vmem:[%s3017_s11 + $0xc8] sm:$0xff] }
 0x13e   : > { %v628_v51 = vpop.f32.mrf.mxu0  ;;  %v1038_v27 = vpop.f32.mrf.mxu1  ;;  %2419 = vmatmul.mubr.msk.f32.gmra.mxu1 %vm2464_vm3, %v3864_v39  ;;  %2833 = vmatmul.mubr.msk.f32.gmra.mxu0 %vm2465_vm1, %v4852_v20 }
 0x13f   : > { %v4420_v38 = vadd.f32 %v4239_v2, %v628_v51  ;;  %v4423_v45 = vadd.f32 %v1038_v27, %v4304_v26  ;;  %1620 = vmatprep.mubr.f32.mxu1 %v2878_v33  ;;  %2835 = vmatprep.mubr.f32.mxu0 %v4853_v10  ;;  %v2879_v2 = vld [vmem:[%s3017_s11 + $0xb0] sm:$0xff]  ;;  %v4865_v51 = vmov 0.0  }
 0x140   : > { %v630_v23 = vpop.f32.mrf.mxu0  ;;  %v1040_v58 = vpop.f32.mrf.mxu1 }
 0x142   : > { %v633_v35 = vpop.f32.mrf.mxu0  ;;  %v1043_v29 = vpop.f32.mrf.mxu1  ;;  %1621 = vmatmul.mubr.f32.gmra.mxu1 %v3883_v48  ;;  %2836 = vmatmul.mubr.msk.f32.gmra.mxu0 %vm2465_vm1, %v4854_v57 }
 0x143   : > { %v4432_v39 = vadd.f32 %v4232_v62, %v633_v35  ;;  %v4435_v20 = vadd.f32 %v1043_v29, %v4319_v0  ;;  %1625 = vmatprep.mubr.f32.mxu1 %v2879_v2  ;;  %2838 = vmatprep.mubr.f32.mxu0 %v4855_v25  ;;  %v2880_v25 = vld [vmem:[%s3017_s11 + $0xb8] sm:$0xff]  ;;  %v4866_v35 = vld [vmem:[#allocation26_spill] sm:$0xff] }
 0x144   : > { %v635_v10 = vpop.f32.mrf.mxu0  ;;  %v1045_v26 = vpop.f32.mrf.mxu1 }
 0x145   : > { %v4867_v26 = vld [vmem:[#allocation27_spill] sm:$0xff] }
 0x146   : > { %v638_v56 = vpop.f32.mrf.mxu0  ;;  %v1048_v42 = vpop.f32.mrf.mxu1  ;;  %2421 = vmatmul.mubr.msk.f32.gmra.mxu1 %vm2464_vm3, %v3900_v49  ;;  %2839 = vmatmul.mubr.msk.f32.gmra.mxu0 %vm2465_vm1, %v4857_v36  ;;  %v4861_v36 = vld [vmem:[#allocation2_spill] sm:$0xff] }
 0x147   : > { %v4446_v48 = vadd.f32 %v4252_v19, %v638_v56  ;;  %v4449_v57 = vadd.f32 %v1048_v42, %v4332_v6  ;;  %1630 = vmatprep.mubr.f32.mxu1 %v2880_v25  ;;  %2841 = vmatprep.mubr.f32.mxu0 %v4858_v5  ;;  %v2881_v6 = vld [vmem:[%s3017_s11 + $0xc0] sm:$0xff]  ;;  %v2884_v25 = vld [vmem:[%s3017_s11 + $0xd8] sm:$0xff] }
 0x148   : > { %v640_v62 = vpop.f32.mrf.mxu0  ;;  %v1050_v0 = vpop.f32.mrf.mxu1  ;;  %v4862_v5 = vld [vmem:[#allocation22_spill] sm:$0xff] }
 0x14a   : > { %v643_v22 = vpop.f32.mrf.mxu0  ;;  %v1053_v46 = vpop.f32.mrf.mxu1  ;;  %1631 = vmatmul.mubr.f32.gmra.mxu1 %v4860_v3  ;;  %2842 = vmatmul.mubr.msk.f32.gmra.mxu0 %vm2465_vm1, %v4859_v40  ;;  %v4864_v40 = vld [vmem:[#allocation23_spill] sm:$0xff] }
 0x14b   : > { %v4458_v49 = vadd.f32 %v4861_v36, %v643_v22  ;;  %v4461_v19 = vadd.f32 %v1053_v46, %v4347_v54  ;;  %1635 = vmatprep.mubr.f32.mxu1 %v2881_v6  ;;  %2844 = vmatprep.mubr.f32.mxu0 %v4862_v5  ;;  %v4868_v46 = vld [vmem:[#allocation28_spill] sm:$0xff]  ;;  %v2885_v36 = vld [vmem:[%s3017_s11 + $0xe0] sm:$0xff] }
 0x14c   : > { %v645_v11 = vpop.f32.mrf.mxu0  ;;  %v1055_v1 = vpop.f32.mrf.mxu1 }
 0x14d   : > { %v4869_v11 = vld [vmem:[#allocation29_spill] sm:$0xff] }
 0x14e   : > { %v648_v14 = vpop.f32.mrf.mxu0  ;;  %v1058_v41 = vpop.f32.mrf.mxu1  ;;  %2423 = vmatmul.mubr.msk.f32.gmra.mxu1 %vm2464_vm3, %v4863_v21  ;;  %2845 = vmatmul.mubr.msk.f32.gmra.mxu0 %vm2465_vm1, %v4864_v40 }
 0x14f   : > { %v4472_v54 = vadd.f32 %v4271_v53, %v648_v14  ;;  %v4475_v34 = vadd.f32 %v1058_v41, %v4360_v24  ;;  %1640 = vmatprep.mubr.f32.mxu1 %v2882_v17  ;;  %2847 = vmatprep.mubr.f32.mxu0 %v4865_v51  ;;  %v2883_v53 = vld [vmem:[%s3017_s11 + $0xd0] sm:$0xff]  ;;  %v2886_v14 = vld [vmem:[%s3017_s11 + $0xe8] sm:$0xff]  ;;  %v4870_v17 = vld [vmem:[#allocation30_spill] sm:$0xff] }
 0x150   : > { %v650_v27 = vpop.f32.mrf.mxu0  ;;  %v1060_v33 = vpop.f32.mrf.mxu1 }
 0x151   : > { %v2887_v33 = vld [vmem:[%s3017_s11 + $0xf0] sm:$0xff] }
 0x152   : > { %v4479_v23 = vpop.f32.mrf.mxu0  ;;  %v1063_v58 = vpop.f32.mrf.mxu1  ;;  %1641 = vmatmul.mubr.f32.gmra.mxu1 %v4866_v35  ;;  %2848 = vmatmul.mubr.f32.gmra.mxu0 %v4865_v51 }
 0x153   : > { %v4484_v37 = vadd.f32 %v1063_v58, %v4375_v13  ;;  %1645 = vmatprep.mubr.f32.mxu1 %v2883_v53 }
 0x154   : > { %v655_v24 = vpop.f32.mrf.mxu0  ;;  %v1065_v29 = vpop.f32.mrf.mxu1 }
 0x156   : > { %v658_v2 = vpop.f32.mrf.mxu0  ;;  %v1068_v10 = vpop.f32.mrf.mxu1  ;;  %2425 = vmatmul.mubr.msk.f32.gmra.mxu1 %vm2464_vm3, %v4867_v26 }
 0x157   : > { %v884_v56 = vadd.f32 %v4286_v60, %v658_v2  ;;  %v4492_v42 = vadd.f32 %v1068_v10, %v4394_v50  ;;  %1650 = vmatprep.mubr.f32.mxu1 %v2884_v25  ;;  %v2888_v2 = vld [vmem:[%s3017_s11 + $0xf8] sm:$0xff] }
 0x158   : > { %v660_v13 = vpop.f32.mrf.mxu0  ;;  %v1070_v62 = vpop.f32.mrf.mxu1 }
 0x159   : > { %v4872_v13 = vld [vmem:[#allocation32_spill] sm:$0xff] }
 0x15a   : > { %v663_v0 = vpop.f32.mrf.mxu0  ;;  %v1073_v22 = vpop.f32.mrf.mxu1  ;;  %1651 = vmatmul.mubr.f32.gmra.mxu1 %v4868_v46 }
 0x15b   : > { %v4497_v3 = vadd.f32 %v1073_v22, %v4406_v44  ;;  %1655 = vmatprep.mubr.f32.mxu1 %v2885_v36 }
 0x15c   : > { %v665_v6 = vpop.f32.mrf.mxu0  ;;  %v1075_v60 = vpop.f32.mrf.mxu1 }
 0x15e   : > { %v668_v5 = vpop.f32.mrf.mxu0  ;;  %v1078_v50 = vpop.f32.mrf.mxu1  ;;  %2427 = vmatmul.mubr.msk.f32.gmra.mxu1 %vm2464_vm3, %v4869_v11 }
 0x15f   : > { %v4504_v1 = vadd.f32 %v1078_v50, %v4420_v38  ;;  %1660 = vmatprep.mubr.f32.mxu1 %v2886_v14  ;;  %v4871_v38 = vld [vmem:[#allocation31_spill] sm:$0xff]  ;;  %v879_v50 = vadd.f32 %v4265_v9, %v4479_v23 }
 0x160   : > { %v670_v41 = vpop.f32.mrf.mxu0  ;;  %v1080_v44 = vpop.f32.mrf.mxu1 }
 0x162   : > { %v673_v21 = vpop.f32.mrf.mxu0  ;;  %v1083_v40 = vpop.f32.mrf.mxu1  ;;  %1661 = vmatmul.mubr.f32.gmra.mxu1 %v4870_v17 }
 0x163   : > { %v4509_v27 = vadd.f32 %v1083_v40, %v4432_v39  ;;  %1665 = vmatprep.mubr.f32.mxu1 %v2887_v33 }
 0x164   : > { %v675_v58 = vpop.f32.mrf.mxu0  ;;  %v1085_v35 = vpop.f32.mrf.mxu1 }
 0x165   : > { %v889_v35 = vadd.f32 %v4275_v59, %v663_v0 }
 0x166   : > { %v678_v53 = vpop.f32.mrf.mxu0  ;;  %v1088_v24 = vpop.f32.mrf.mxu1  ;;  %2429 = vmatmul.mubr.msk.f32.gmra.mxu1 %vm2464_vm3, %v4871_v38 }
 0x167   : > { %v4516_v29 = vadd.f32 %v1088_v24, %v4446_v48  ;;  %1670 = vmatprep.mubr.f32.mxu1 %v2888_v2 }
 0x168   : > { %v680_v10 = vpop.f32.mrf.mxu0  ;;  %v1090_v26 = vpop.f32.mrf.mxu1 }
 0x16a   : > { %v683_v25 = vpop.f32.mrf.mxu0  ;;  %v1093_v39 = vpop.f32.mrf.mxu1  ;;  %1671 = vmatmul.mubr.f32.gmra.mxu1 %v4872_v13 }
 0x16b   : > { %v4521_v62 = vadd.f32 %v1093_v39, %v4458_v49  ;;  %1675 = vmatprep.mubr.f32.mxu1 %v4865_v51 }
 0x16c   : > { %v685_v22 = vpop.f32.mrf.mxu0  ;;  %v1095_v46 = vpop.f32.mrf.mxu1 }
 0x16e   : > { %v688_v30 = vpop.f32.mrf.mxu0  ;;  %v1098_v36 = vpop.f32.mrf.mxu1  ;;  %1676 = vmatmul.mubr.f32.gmra.mxu1 %v4865_v51 }
 0x16f   : > { %v4526_v48 = vadd.f32 %v1098_v36, %v4472_v54  ;;  %1680 = vmatprep.mubr.f32.mxu1 %v4865_v51 }
 0x170   : > { %v690_v6 = vpop.f32.mrf.mxu0  ;;  %v1100_v60 = vpop.f32.mrf.mxu1 }
 0x171   : > { %v904_v60 = vadd.f32 %v4316_v8, %v678_v53 }
 0x172   : > { %v693_v49 = vpop.f32.mrf.mxu0  ;;  %v1103_v11 = vpop.f32.mrf.mxu1  ;;  %1681 = vmatmul.mubr.f32.gmra.mxu1 %v4865_v51  ;;  %v894_v51 = vadd.f32 %v4301_v52, %v668_v5 }
 0x173   : > { %v4532_v14 = vadd.f32 %v1103_v11, %v879_v50 }
 0x174   : > { %v695_v41 = vpop.f32.mrf.mxu0  ;;  %v1105_v44 = vpop.f32.mrf.mxu1 }
 0x175   : > { %v909_v44 = vadd.f32 %v4306_v47, %v683_v25 }
 0x176   : > { %v698_v40 = vpop.f32.mrf.mxu0  ;;  %v1108_v17 = vpop.f32.mrf.mxu1 }
 0x177   : > { %v4534_v33 = vadd.f32 %v1108_v17, %v884_v56  ;;  %v899_v56 = vadd.f32 %v4293_v43, %v673_v21 }
 0x178   : > { %v700_v54 = vpop.f32.mrf.mxu0  ;;  %v1110_v58 = vpop.f32.mrf.mxu1 }
 0x17a   : > { %v703_v24 = vpop.f32.mrf.mxu0  ;;  %v1113_v38 = vpop.f32.mrf.mxu1 }
 0x17b   : > { %v4537_v2 = vadd.f32 %v1113_v38, %v889_v35  ;;  %v914_v35 = vadd.f32 %v4329_v18, %v688_v30 }
 0x17c   : > { %v705_v9 = vpop.f32.mrf.mxu0  ;;  %v1115_v23 = vpop.f32.mrf.mxu1 }
 0x17e   : > { %v708_v10 = vpop.f32.mrf.mxu0  ;;  %v1118_v26 = vpop.f32.mrf.mxu1 }
 0x17f   : > { %v4540_v39 = vadd.f32 %v1118_v26, %v894_v51  ;;  %v919_v51 = vadd.f32 %v4321_v55, %v693_v49 }
 0x180   : > { %v710_v13 = vpop.f32.mrf.mxu0  ;;  %v1120_v22 = vpop.f32.mrf.mxu1 }
 0x182   : > { %v713_v46 = vpop.f32.mrf.mxu0  ;;  %v1123_v36 = vpop.f32.mrf.mxu1 }
 0x183   : > { %v4543_v6 = vadd.f32 %v1123_v36, %v899_v56  ;;  %v924_v56 = vadd.f32 %v4344_v15, %v698_v40 }
 0x184   : > { %v715_v59 = vpop.f32.mrf.mxu0  ;;  %v1125_v0 = vpop.f32.mrf.mxu1 }
 0x186   : > { %v718_v50 = vpop.f32.mrf.mxu0  ;;  %v1128_v11 = vpop.f32.mrf.mxu1 }
 0x187   : > { %v4546_v41 = vadd.f32 %v1128_v11, %v904_v60  ;;  %v929_v11 = vadd.f32 %v4334_v61, %v703_v24 }
 0x188   : > { %v720_v52 = vpop.f32.mrf.mxu0  ;;  %v1130_v5 = vpop.f32.mrf.mxu1 }
 0x18a   : > { %v723_v17 = vpop.f32.mrf.mxu0  ;;  %v1133_v54 = vpop.f32.mrf.mxu1 }
 0x18b   : > { %v4549_v58 = vadd.f32 %v1133_v54, %v909_v44  ;;  %v934_v54 = vadd.f32 %v4357_v7, %v708_v10 }
 0x18c   : > { %v725_v43 = vpop.f32.mrf.mxu0  ;;  %v1135_v21 = vpop.f32.mrf.mxu1 }
 0x18e   : > { %v728_v38 = vpop.f32.mrf.mxu0  ;;  %v1138_v9 = vpop.f32.mrf.mxu1 }
 0x18f   : > { %v4552_v23 = vadd.f32 %v1138_v9, %v914_v35  ;;  %v939_v9 = vadd.f32 %v4349_v28, %v713_v46 }
 0x190   : > { %v730_v8 = vpop.f32.mrf.mxu0  ;;  %v1140_v53 = vpop.f32.mrf.mxu1 }
 0x192   : > { %v733_v26 = vpop.f32.mrf.mxu0  ;;  %v1143_v13 = vpop.f32.mrf.mxu1 }
 0x193   : > { %v4555_v22 = vadd.f32 %v1143_v13, %v919_v51  ;;  %v944_v13 = vadd.f32 %v4372_v31, %v718_v50 }
 0x194   : > { %v735_v47 = vpop.f32.mrf.mxu0  ;;  %v1145_v25 = vpop.f32.mrf.mxu1 }
 0x196   : > { %v1148_v36 = vpop.f32.mrf.mxu1  ;;  %v2724_v59 = vpop.f32.mrf.mxu0 }
 0x197   : > { %v4558_v0 = vadd.f32 %v1148_v36, %v924_v56  ;;  %v4561_v18 = vadd.f32 %v2724_v59, %v4409_v16  ;;  %v949_v36 = vadd.f32 %v4362_v12, %v723_v17 }
 0x198   : > { %v1150_v30 = vpop.f32.mrf.mxu1  ;;  %v1253_v60 = vpop.f32.mrf.mxu0 }
 0x199   : > { %v4565_v55 = vadd.f32 %v1253_v60, %v4397_v32 }
 0x19a   : > { %v1153_v49 = vpop.f32.mrf.mxu1  ;;  %v2727_v52 = vpop.f32.mrf.mxu0 }
 0x19b   : > { %v4567_v5 = vadd.f32 %v1153_v49, %v929_v11  ;;  %v4570_v15 = vadd.f32 %v2727_v52, %v4435_v20  ;;  %v954_v11 = vadd.f32 %v4385_v4, %v728_v38 }
 0x19c   : > { %v1155_v40 = vpop.f32.mrf.mxu1  ;;  %v1263_v44 = vpop.f32.mrf.mxu0 }
 0x19d   : > { %v4574_v16 = vadd.f32 %v1263_v44, %v4423_v45  ;;  %v959_v44 = vadd.f32 %v4377_v63, %v733_v26 }
 0x19e   : > { %v1158_v43 = vpop.f32.mrf.mxu1  ;;  %v2730_v21 = vpop.f32.mrf.mxu0 }
 0x19f   : > { %v4576_v61 = vadd.f32 %v1158_v43, %v934_v54  ;;  %v4579_v32 = vadd.f32 %v2730_v21, %v4461_v19 }
 0x1a0   : > { %v1160_v24 = vpop.f32.mrf.mxu1  ;;  %v1273_v35 = vpop.f32.mrf.mxu0 }
 0x1a1   : > { %v4583_v20 = vadd.f32 %v1273_v35, %v4449_v57 }
 0x1a2   : > { %v1163_v8 = vpop.f32.mrf.mxu1  ;;  %v2733_v53 = vpop.f32.mrf.mxu0 }
 0x1a3   : > { %v4585_v7 = vadd.f32 %v1163_v8, %v939_v9  ;;  %v4588_v45 = vadd.f32 %v2733_v53, %v4484_v37 }
 0x1a4   : > { %v1165_v10 = vpop.f32.mrf.mxu1  ;;  %v1283_v51 = vpop.f32.mrf.mxu0 }
 0x1a5   : > { %v4592_v19 = vadd.f32 %v1283_v51, %v4475_v34 }
 0x1a6   : > { %v1168_v47 = vpop.f32.mrf.mxu1  ;;  %v2736_v25 = vpop.f32.mrf.mxu0 }
 0x1a7   : > { %v4594_v28 = vadd.f32 %v1168_v47, %v944_v13  ;;  %v4597_v57 = vadd.f32 %v2736_v25, %v4497_v3 }
 0x1a8   : > { %v1170_v46 = vpop.f32.mrf.mxu1  ;;  %v1293_v56 = vpop.f32.mrf.mxu0 }
 0x1a9   : > { %v4601_v37 = vadd.f32 %v1293_v56, %v4492_v42 }
 0x1aa   : > { %v1173_v59 = vpop.f32.mrf.mxu1  ;;  %v2739_v30 = vpop.f32.mrf.mxu0 }
 0x1ab   : > { %v1174_v31 = vadd.f32 %v1173_v59, %v949_v36  ;;  %v4604_v34 = vadd.f32 %v2739_v30, %v4509_v27 }
 0x1ac   : > { %v1175_v50 = vpop.f32.mrf.mxu1  ;;  %v1303_v60 = vpop.f32.mrf.mxu0 }
 0x1ad   : > { %v4608_v3 = vadd.f32 %v1303_v60, %v4504_v1 }
 0x1ae   : > { %v1178_v49 = vpop.f32.mrf.mxu1  ;;  %v2742_v52 = vpop.f32.mrf.mxu0 }
 0x1af   : > { %v1179_v40 = vadd.f32 %v1178_v49, %v954_v11  ;;  %v4611_v12 = vadd.f32 %v2742_v52, %v4521_v62 }
 0x1b0   : > { %v1180_v42 = vpop.f32.mrf.mxu1  ;;  %v1313_v17 = vpop.f32.mrf.mxu0 }
 0x1b1   : > { %v4615_v27 = vadd.f32 %v1313_v17, %v4516_v29 }
 0x1b2   : > { %v1183_v54 = vpop.f32.mrf.mxu1  ;;  %v2745_v43 = vpop.f32.mrf.mxu0 }
 0x1b3   : > { %v1184_v21 = vadd.f32 %v1183_v54, %v959_v44  ;;  %v4618_v4 = vadd.f32 %v2745_v43, %v4532_v14 }
 0x1b4   : > { %v1185_v1 = vpop.f32.mrf.mxu1  ;;  %v1323_v38 = vpop.f32.mrf.mxu0 }
 0x1b5   : > { %v4621_v24 = vadd.f32 %v1323_v38, %v4526_v48 }
 0x1b6   : > { %v2748_v62 = vpop.f32.mrf.mxu0  ;;  %v1527_v35 = vpop.f32.mrf.mxu1 }
 0x1b7   : > { %v4624_v9 = vadd.f32 %v2748_v62, %v4537_v2 }
 0x1b8   : > { %v1333_v63 = vpop.f32.mrf.mxu0  ;;  %v1529_v26 = vpop.f32.mrf.mxu1 }
 0x1b9   : > { %v4627_v29 = vadd.f32 %v1333_v63, %v4534_v33 }
 0x1ba   : > { %v2751_v8 = vpop.f32.mrf.mxu0  ;;  %v1532_v53 = vpop.f32.mrf.mxu1 }
 0x1bb   : > { %v4630_v14 = vadd.f32 %v2751_v8, %v4543_v6 }
 0x1bc   : > { %v1343_v10 = vpop.f32.mrf.mxu0  ;;  %v1534_v51 = vpop.f32.mrf.mxu1 }
 0x1bd   : > { %v4633_v48 = vadd.f32 %v1343_v10, %v4540_v39 }
 0x1be   : > { %v2754_v13 = vpop.f32.mrf.mxu0  ;;  %v1537_v47 = vpop.f32.mrf.mxu1 }
 0x1bf   : > { %v4636_v2 = vadd.f32 %v2754_v13, %v4549_v58 }
 0x1c0   : > { %v1353_v25 = vpop.f32.mrf.mxu0  ;;  %v1539_v46 = vpop.f32.mrf.mxu1 }
 0x1c1   : > { %v4639_v33 = vadd.f32 %v1353_v25, %v4546_v41 }
 0x1c2   : > { %v2757_v56 = vpop.f32.mrf.mxu0  ;;  %v1542_v36 = vpop.f32.mrf.mxu1 }
 0x1c3   : > { %v4642_v6 = vadd.f32 %v2757_v56, %v4555_v22 }
 0x1c4   : > { %v1363_v59 = vpop.f32.mrf.mxu0  ;;  %v1544_v30 = vpop.f32.mrf.mxu1 }
 0x1c5   : > { %v4645_v39 = vadd.f32 %v1363_v59, %v4552_v23 }
 0x1c6   : > { %v2760_v50 = vpop.f32.mrf.mxu0  ;;  %v1547_v60 = vpop.f32.mrf.mxu1 }
 0x1c7   : > { %v4648_v58 = vadd.f32 %v2760_v50, %v4567_v5 }
 0x1c8   : > { %v1373_v11 = vpop.f32.mrf.mxu0  ;;  %v1549_v49 = vpop.f32.mrf.mxu1 }
 0x1c9   : > { %v4651_v41 = vadd.f32 %v1373_v11, %v4558_v0 }
 0x1ca   : > { %v2763_v52 = vpop.f32.mrf.mxu0  ;;  %v1552_v42 = vpop.f32.mrf.mxu1 }
 0x1cb   : > { %v4654_v22 = vadd.f32 %v2763_v52, %v4585_v7 }
 0x1cc   : > { %v1383_v17 = vpop.f32.mrf.mxu0  ;;  %v1554_v44 = vpop.f32.mrf.mxu1 }
 0x1cd   : > { %v4657_v23 = vadd.f32 %v1383_v17, %v4576_v61 }
 0x1ce   : > { %v2766_v54 = vpop.f32.mrf.mxu0  ;;  %v1557_v43 = vpop.f32.mrf.mxu1 }
 0x1cf   : > { %v4659_v5 = vadd.f32 %v2766_v54, %v1174_v31 }
 0x1d0   : > { %v1393_v1 = vpop.f32.mrf.mxu0  ;;  %v1559_v38 = vpop.f32.mrf.mxu1 }
 0x1d1   : > { %v4662_v0 = vadd.f32 %v1393_v1, %v4594_v28 }
 0x1d2   : > { %v2769_v62 = vpop.f32.mrf.mxu0  ;;  %v1562_v63 = vpop.f32.mrf.mxu1 }
 0x1d3   : > { %v4664_v26 = vadd.f32 %v2769_v62, %v1184_v21 }
 0x1d4   : > { %v1403_v7 = vpop.f32.mrf.mxu0  ;;  %v1564_v8 = vpop.f32.mrf.mxu1 }
 0x1d5   : > { %v4666_v10 = vadd.f32 %v1403_v7, %v1179_v40 }
 0x1d6   : > { %v4668_v61 = vpop.f32.mrf.mxu1  ;;  %v2804_v51 = vpop.f32.mrf.mxu0 }
 0x1d7   : > { %v1758_v13 = vadd.f32 %v2804_v51, %v1532_v53 }
 0x1d8   : > { %v1569_v28 = vpop.f32.mrf.mxu1  ;;  %v1752_v31 = vpop.f32.mrf.mxu0 }
 0x1d9   : > { %v1912_v21 = vadd.f32 %v1758_v13, %v4561_v18  ;;  %v1753_v25 = vadd.f32 %v1752_v31, %v1527_v35 }
 0x1da   : > { %v1572_v46 = vpop.f32.mrf.mxu1  ;;  %v2807_v40 = vpop.f32.mrf.mxu0 }
 0x1db   : > { %2053 = vst [vmem:[%s4675_s27 + $0x8] sm:$0xff] %v1912_v21  ;;  %v1911_v56 = vadd.f32 %v1753_v25, %v4565_v55  ;;  %v1768_v53 = vadd.f32 %v2807_v40, %v1542_v36  ;;  %v1981_v59 = vmul.f32 %v1912_v21, %v1912_v21 }
 0x1dc   : > { %v1574_v30 = vpop.f32.mrf.mxu1  ;;  %v1762_v50 = vpop.f32.mrf.mxu0 }
 0x1dd   : > { %v1943_v11 = vadd.f32 %v1912_v21, %v1911_v56  ;;  %v1980_v49 = vmul.f32 %v1911_v56, %v1911_v56  ;;  %2052 = vst [vmem:[%s4675_s27] sm:$0xff] %v1911_v56  ;;  %v1914_v52 = vadd.f32 %v1768_v53, %v4570_v15  ;;  %v1763_v17 = vadd.f32 %v1762_v50, %v1537_v47 }
 0x1de   : > { %v1577_v44 = vpop.f32.mrf.mxu1  ;;  %v2810_v18 = vpop.f32.mrf.mxu0 }
 0x1df   : > { %v2012_v35 = vadd.f32 %v1981_v59, %v1980_v49  ;;  %2055 = vst [vmem:[%s4675_s27 + $0x18] sm:$0xff] %v1914_v52  ;;  %v1913_v54 = vadd.f32 %v1763_v17, %v4574_v16  ;;  %v1778_v1 = vadd.f32 %v2810_v18, %v1552_v42  ;;  %v1983_v47 = vmul.f32 %v1914_v52, %v1914_v52 }
 0x1e0   : > { %v1579_v55 = vpop.f32.mrf.mxu1  ;;  %v1772_v36 = vpop.f32.mrf.mxu0 }
 0x1e1   : > { %v1944_v38 = vadd.f32 %v1943_v11, %v1913_v54  ;;  %v1982_v62 = vmul.f32 %v1913_v54, %v1913_v54  ;;  %2054 = vst [vmem:[%s4675_s27 + $0x10] sm:$0xff] %v1913_v54  ;;  %v1916_v7 = vadd.f32 %v1778_v1, %v4579_v32  ;;  %v1773_v8 = vadd.f32 %v1772_v36, %v1547_v60 }
 0x1e2   : > { %v1582_v51 = vpop.f32.mrf.mxu1  ;;  %v2813_v15 = vpop.f32.mrf.mxu0 }
 0x1e3   : > { %v2013_v13 = vadd.f32 %v2012_v35, %v1982_v62  ;;  %2057 = vst [vmem:[%s4675_s27 + $0x28] sm:$0xff] %v1916_v7  ;;  %v1915_v28 = vadd.f32 %v1773_v8, %v4583_v20  ;;  %v1945_v31 = vadd.f32 %v1944_v38, %v1914_v52  ;;  %v1788_v21 = vadd.f32 %v2813_v15, %v1562_v63 }
 0x1e4   : > { %v1584_v16 = vpop.f32.mrf.mxu1  ;;  %v1782_v42 = vpop.f32.mrf.mxu0  ;;  %v1985_v32 = vmul.f32 %v1916_v7, %v1916_v7 }
 0x1e5   : > { %v1946_v25 = vadd.f32 %v1945_v31, %v1915_v28  ;;  %v1984_v40 = vmul.f32 %v1915_v28, %v1915_v28  ;;  %v2014_v56 = vadd.f32 %v2013_v13, %v1983_v47  ;;  %2056 = vst [vmem:[%s4675_s27 + $0x20] sm:$0xff] %v1915_v28  ;;  %v1783_v53 = vadd.f32 %v1782_v42, %v1557_v43 }
 0x1e6   : > { %v1918_v60 = vadd.f32 %v1788_v21, %v4588_v45  ;;  %v1587_v59 = vpop.f32.mrf.mxu1  ;;  %v2816_v30 = vpop.f32.mrf.mxu0 }
 0x1e7   : > { %v2015_v50 = vadd.f32 %v2014_v56, %v1984_v40  ;;  %v1917_v11 = vadd.f32 %v1783_v53, %v4592_v19  ;;  %v1947_v20 = vadd.f32 %v1946_v25, %v1916_v7  ;;  %v1798_v63 = vadd.f32 %v2816_v30, %v1572_v46 }
 0x1e8   : > { %2059 = vst [vmem:[%s4675_s27 + $0x38] sm:$0xff] %v1918_v60  ;;  %v1589_v49 = vpop.f32.mrf.mxu1  ;;  %v1792_v52 = vpop.f32.mrf.mxu0  ;;  %v1987_v55 = vmul.f32 %v1918_v60, %v1918_v60 }
 0x1e9   : > { %v1948_v17 = vadd.f32 %v1947_v20, %v1917_v11  ;;  %v1986_v18 = vmul.f32 %v1917_v11, %v1917_v11  ;;  %v2016_v35 = vadd.f32 %v2015_v50, %v1985_v32  ;;  %2058 = vst [vmem:[%s4675_s27 + $0x30] sm:$0xff] %v1917_v11  ;;  %v1920_v43 = vadd.f32 %v1798_v63, %v4597_v57 }
 0x1ea   : > { %v1793_v54 = vadd.f32 %v1792_v52, %v4668_v61  ;;  %v1592_v45 = vpop.f32.mrf.mxu1  ;;  %v2819_v1 = vpop.f32.mrf.mxu0 }
 0x1eb   : > { %v2017_v19 = vadd.f32 %v2016_v35, %v1986_v18  ;;  %2061 = vst [vmem:[%s4675_s27 + $0x48] sm:$0xff] %v1920_v43  ;;  %v1949_v36 = vadd.f32 %v1948_v17, %v1918_v60  ;;  %v1808_v46 = vadd.f32 %v2819_v1, %v1582_v51  ;;  %v1989_v51 = vmul.f32 %v1920_v43, %v1920_v43 }
 0x1ec   : > { %v1919_v38 = vadd.f32 %v1793_v54, %v4601_v37  ;;  %v1594_v62 = vpop.f32.mrf.mxu1  ;;  %v1802_v7 = vpop.f32.mrf.mxu0 }
 0x1ed   : > { %v2018_v8 = vadd.f32 %v2017_v19, %v1987_v55  ;;  %v1922_v15 = vadd.f32 %v1808_v46, %v4604_v34  ;;  %v1803_v57 = vadd.f32 %v1802_v7, %v1577_v44 }
 0x1ee   : > { %v1950_v47 = vadd.f32 %v1949_v36, %v1919_v38  ;;  %v1988_v61 = vmul.f32 %v1919_v38, %v1919_v38  ;;  %2060 = vst [vmem:[%s4675_s27 + $0x40] sm:$0xff] %v1919_v38  ;;  %v1597_v13 = vpop.f32.mrf.mxu1  ;;  %v2822_v28 = vpop.f32.mrf.mxu0 }
 0x1ef   : > { %2063 = vst [vmem:[%s4675_s27 + $0x58] sm:$0xff] %v1922_v15  ;;  %v1921_v31 = vadd.f32 %v1803_v57, %v4608_v3  ;;  %v1818_v21 = vadd.f32 %v2822_v28, %v1592_v45  ;;  %v1991_v50 = vmul.f32 %v1922_v15, %v1922_v15 }
 0x1f0   : > { %v2019_v16 = vadd.f32 %v2018_v8, %v1988_v61  ;;  %v1951_v37 = vadd.f32 %v1950_v47, %v1920_v43  ;;  %v1599_v42 = vpop.f32.mrf.mxu1  ;;  %v1812_v25 = vpop.f32.mrf.mxu0 }
 0x1f1   : > { %v1990_v40 = vmul.f32 %v1921_v31, %v1921_v31  ;;  %2062 = vst [vmem:[%s4675_s27 + $0x50] sm:$0xff] %v1921_v31  ;;  %v1924_v34 = vadd.f32 %v1818_v21, %v4611_v12  ;;  %v1813_v44 = vadd.f32 %v1812_v25, %v1587_v59 }
 0x1f2   : > { %v1952_v56 = vadd.f32 %v1951_v37, %v1921_v31  ;;  %v2020_v53 = vadd.f32 %v2019_v16, %v1989_v51  ;;  %v1602_v32 = vpop.f32.mrf.mxu1  ;;  %v2825_v60 = vpop.f32.mrf.mxu0 }
 0x1f3   : > { %2065 = vst [vmem:[%s4675_s27 + $0x68] sm:$0xff] %v1924_v34  ;;  %v1923_v3 = vadd.f32 %v1813_v44, %v4615_v27  ;;  %v1828_v30 = vadd.f32 %v2825_v60, %v1602_v32  ;;  %v1993_v27 = vmul.f32 %v1924_v34, %v1924_v34 }
 0x1f4   : > { %v2021_v11 = vadd.f32 %v2020_v53, %v1990_v40  ;;  %v1953_v20 = vadd.f32 %v1952_v56, %v1922_v15  ;;  %v1604_v63 = vpop.f32.mrf.mxu1  ;;  %v1822_v49 = vpop.f32.mrf.mxu0 }
 0x1f5   : > { %v1992_v52 = vmul.f32 %v1923_v3, %v1923_v3  ;;  %2064 = vst [vmem:[%s4675_s27 + $0x60] sm:$0xff] %v1923_v3  ;;  %v1926_v12 = vadd.f32 %v1828_v30, %v4618_v4  ;;  %v1823_v59 = vadd.f32 %v1822_v49, %v1597_v13 }
 0x1f6   : > { %v1954_v17 = vadd.f32 %v1953_v20, %v1923_v3  ;;  %v2022_v18 = vadd.f32 %v2021_v11, %v1991_v50  ;;  %v1607_v35 = vpop.f32.mrf.mxu1  ;;  %v2828_v43 = vpop.f32.mrf.mxu0 }
 0x1f7   : > { %2067 = vst [vmem:[%s4675_s27 + $0x78] sm:$0xff] %v1926_v12  ;;  %v1925_v54 = vadd.f32 %v1823_v59, %v4621_v24  ;;  %v1995_v57 = vmul.f32 %v1926_v12, %v1926_v12 }
 0x1f8   : > { %v2023_v45 = vadd.f32 %v2022_v18, %v1992_v52  ;;  %v1955_v1 = vadd.f32 %v1954_v17, %v1924_v34  ;;  %v1609_v55 = vpop.f32.mrf.mxu1  ;;  %v1832_v19 = vpop.f32.mrf.mxu0 }
 0x1f9   : > { %v1994_v36 = vmul.f32 %v1925_v54, %v1925_v54  ;;  %2066 = vst [vmem:[%s4675_s27 + $0x70] sm:$0xff] %v1925_v54  ;;  %v1833_v46 = vadd.f32 %v1832_v19, %v1607_v35 }
 0x1fa   : > { %v1956_v38 = vadd.f32 %v1955_v1, %v1925_v54  ;;  %v2024_v62 = vadd.f32 %v2023_v45, %v1993_v27  ;;  %v1612_v4 = vpop.f32.mrf.mxu1  ;;  %v2831_v7 = vpop.f32.mrf.mxu0 }
 0x1fb   : > { %v1927_v8 = vadd.f32 %v1833_v46, %v4627_v29  ;;  %v1838_v15 = vadd.f32 %v2828_v43, %v1612_v4 }
 0x1fc   : > { %v2025_v47 = vadd.f32 %v2024_v62, %v1994_v36  ;;  %v1957_v24 = vadd.f32 %v1956_v38, %v1926_v12  ;;  %v1614_v61 = vpop.f32.mrf.mxu1  ;;  %v1842_v13 = vpop.f32.mrf.mxu0 }
 0x1fd   : > { %v1996_v28 = vmul.f32 %v1927_v8, %v1927_v8  ;;  %2068 = vst [vmem:[%s4675_s27 + $0x80] sm:$0xff] %v1927_v8  ;;  %v1928_v31 = vadd.f32 %v1838_v15, %v4624_v9 }
 0x1fe   : > { %v1958_v21 = vadd.f32 %v1957_v24, %v1927_v8  ;;  %v2026_v51 = vadd.f32 %v2025_v47, %v1995_v57  ;;  %v1617_v16 = vpop.f32.mrf.mxu1  ;;  %v2834_v34 = vpop.f32.mrf.mxu0 }
 0x1ff   : > { %v1997_v37 = vmul.f32 %v1928_v31, %v1928_v31  ;;  %2069 = vst [vmem:[%s4675_s27 + $0x88] sm:$0xff] %v1928_v31  ;;  %v1843_v42 = vadd.f32 %v1842_v13, %v1617_v16 }
 0x200   : > { %v2027_v25 = vadd.f32 %v2026_v51, %v1996_v28  ;;  %v1959_v40 = vadd.f32 %v1958_v21, %v1928_v31  ;;  %v1619_v29 = vpop.f32.mrf.mxu1  ;;  %v1852_v30 = vpop.f32.mrf.mxu0 }
 0x201   : > { %v1929_v44 = vadd.f32 %v1843_v42, %v4633_v48 }
 0x202   : > { %v2028_v56 = vadd.f32 %v2027_v25, %v1997_v37  ;;  %v1622_v53 = vpop.f32.mrf.mxu1  ;;  %v2837_v48 = vpop.f32.mrf.mxu0 }
 0x203   : > { %v1960_v32 = vadd.f32 %v1959_v40, %v1929_v44  ;;  %v1998_v60 = vmul.f32 %v1929_v44, %v1929_v44  ;;  %2070 = vst [vmem:[%s4675_s27 + $0x90] sm:$0xff] %v1929_v44  ;;  %v1848_v9 = vadd.f32 %v2831_v7, %v1622_v53 }
 0x204   : > { %v1624_v3 = vpop.f32.mrf.mxu1  ;;  %v1862_v45 = vpop.f32.mrf.mxu0 }
 0x205   : > { %v2029_v50 = vadd.f32 %v2028_v56, %v1998_v60  ;;  %v1930_v11 = vadd.f32 %v1848_v9, %v4630_v14 }
 0x206   : > { %v1627_v20 = vpop.f32.mrf.mxu1  ;;  %v2840_v62 = vpop.f32.mrf.mxu0 }
 0x207   : > { %v1961_v63 = vadd.f32 %v1960_v32, %v1930_v11  ;;  %v1999_v49 = vmul.f32 %v1930_v11, %v1930_v11  ;;  %2071 = vst [vmem:[%s4675_s27 + $0x98] sm:$0xff] %v1930_v11  ;;  %v1853_v52 = vadd.f32 %v1852_v30, %v1627_v20 }
 0x208   : > { %v1629_v12 = vpop.f32.mrf.mxu1  ;;  %v1872_v24 = vpop.f32.mrf.mxu0 }
 0x209   : > { %v2030_v59 = vadd.f32 %v2029_v50, %v1999_v49  ;;  %v1931_v17 = vadd.f32 %v1853_v52, %v4639_v33 }
 0x20a   : > { %v1632_v18 = vpop.f32.mrf.mxu1  ;;  %v2843_v16 = vpop.f32.mrf.mxu0 }
 0x20b   : > { %v1962_v35 = vadd.f32 %v1961_v63, %v1931_v17  ;;  %v2000_v43 = vmul.f32 %v1931_v17, %v1931_v17  ;;  %2072 = vst [vmem:[%s4675_s27 + $0xa0] sm:$0xff] %v1931_v17  ;;  %v1858_v54 = vadd.f32 %v2834_v34, %v1632_v18 }
 0x20c   : > { %v1634_v27 = vpop.f32.mrf.mxu1  ;;  %v1882_v44 = vpop.f32.mrf.mxu0 }
 0x20d   : > { %v2031_v14 = vadd.f32 %v2030_v59, %v2000_v43  ;;  %v1932_v1 = vadd.f32 %v1858_v54, %v4636_v2 }
 0x20e   : > { %v1637_v55 = vpop.f32.mrf.mxu1  ;;  %v2846_v30 = vpop.f32.mrf.mxu0 }
 0x20f   : > { %v1963_v19 = vadd.f32 %v1962_v35, %v1932_v1  ;;  %v2001_v36 = vmul.f32 %v1932_v1, %v1932_v1  ;;  %2073 = vst [vmem:[%s4675_s27 + $0xa8] sm:$0xff] %v1932_v1  ;;  %v1863_v46 = vadd.f32 %v1862_v45, %v1637_v55 }
 0x210   : > { %v1639_v38 = vpop.f32.mrf.mxu1  ;;  %v1892_v12 = vpop.f32.mrf.mxu0 }
 0x211   : > { %v2032_v33 = vadd.f32 %v2031_v14, %v2001_v36  ;;  %v1933_v4 = vadd.f32 %v1863_v46, %v4645_v39 }
 0x212   : > { %v1642_v7 = vpop.f32.mrf.mxu1  ;;  %v2849_v54 = vpop.f32.mrf.mxu0 }
 0x213   : > { %v1964_v8 = vadd.f32 %v1963_v19, %v1933_v4  ;;  %v2002_v15 = vmul.f32 %v1933_v4, %v1933_v4  ;;  %2074 = vst [vmem:[%s4675_s27 + $0xb0] sm:$0xff] %v1933_v4  ;;  %v1868_v57 = vadd.f32 %v2837_v48, %v1642_v7 }
 0x214   : > { %v1644_v47 = vpop.f32.mrf.mxu1  ;;  %v1902_v36 = vpop.f32.mrf.mxu0 }
 0x215   : > { %v2033_v2 = vadd.f32 %v2032_v33, %v2002_v15  ;;  %v1934_v61 = vadd.f32 %v1868_v57, %v4642_v6 }
 0x216   : > { %v1647_v13 = vpop.f32.mrf.mxu1 }
 0x217   : > { %v1965_v28 = vadd.f32 %v1964_v8, %v1934_v61  ;;  %v2003_v31 = vmul.f32 %v1934_v61, %v1934_v61  ;;  %2075 = vst [vmem:[%s4675_s27 + $0xb8] sm:$0xff] %v1934_v61  ;;  %v1873_v21 = vadd.f32 %v1872_v24, %v1647_v13 }
 0x218   : > { %v1649_v51 = vpop.f32.mrf.mxu1 }
 0x219   : > { %v2034_v39 = vadd.f32 %v2033_v2, %v2003_v31  ;;  %v1935_v37 = vadd.f32 %v1873_v21, %v4651_v41 }
 0x21a   : > { %v1652_v42 = vpop.f32.mrf.mxu1 }
 0x21b   : > { %v1966_v25 = vadd.f32 %v1965_v28, %v1935_v37  ;;  %v2004_v40 = vmul.f32 %v1935_v37, %v1935_v37  ;;  %2076 = vst [vmem:[%s4675_s27 + $0xc0] sm:$0xff] %v1935_v37  ;;  %v1878_v29 = vadd.f32 %v2840_v62, %v1652_v42 }
 0x21c   : > { %v1654_v34 = vpop.f32.mrf.mxu1 }
 0x21d   : > { %v2035_v6 = vadd.f32 %v2034_v39, %v2004_v40  ;;  %v1936_v56 = vadd.f32 %v1878_v29, %v4648_v58 }
 0x21e   : > { %v1657_v53 = vpop.f32.mrf.mxu1 }
 0x21f   : > { %v1967_v32 = vadd.f32 %v1966_v25, %v1936_v56  ;;  %v2005_v60 = vmul.f32 %v1936_v56, %v1936_v56  ;;  %2077 = vst [vmem:[%s4675_s27 + $0xc8] sm:$0xff] %v1936_v56  ;;  %v1883_v9 = vadd.f32 %v1882_v44, %v1657_v53 }
 0x220   : > { %v1659_v3 = vpop.f32.mrf.mxu1 }
 0x221   : > { %v2036_v41 = vadd.f32 %v2035_v6, %v2005_v60  ;;  %v1937_v50 = vadd.f32 %v1883_v9, %v4657_v23 }
 0x222   : > { %v1662_v11 = vpop.f32.mrf.mxu1 }
 0x223   : > { %v1968_v20 = vadd.f32 %v1967_v32, %v1937_v50  ;;  %v2006_v63 = vmul.f32 %v1937_v50, %v1937_v50  ;;  %2078 = vst [vmem:[%s4675_s27 + $0xd0] sm:$0xff] %v1937_v50  ;;  %v1888_v49 = vadd.f32 %v2843_v16, %v1662_v11 }
 0x224   : > { %v1664_v52 = vpop.f32.mrf.mxu1 }
 0x225   : > { %v2037_v58 = vadd.f32 %v2036_v41, %v2006_v63  ;;  %v1938_v48 = vadd.f32 %v1888_v49, %v4654_v22 }
 0x226   : > { %v1667_v59 = vpop.f32.mrf.mxu1 }
 0x227   : > { %v1969_v17 = vadd.f32 %v1968_v20, %v1938_v48  ;;  %v2007_v18 = vmul.f32 %v1938_v48, %v1938_v48  ;;  %2079 = vst [vmem:[%s4675_s27 + $0xd8] sm:$0xff] %v1938_v48  ;;  %v1893_v35 = vadd.f32 %v1892_v12, %v1667_v59 }
 0x228   : > { %v1669_v43 = vpop.f32.mrf.mxu1 }
 0x229   : > { %v2038_v23 = vadd.f32 %v2037_v58, %v2007_v18  ;;  %v1939_v27 = vadd.f32 %v1893_v35, %v4662_v0 }
 0x22a   : > { %v1672_v45 = vpop.f32.mrf.mxu1 }
 0x22b   : > { %v1970_v14 = vadd.f32 %v1969_v17, %v1939_v27  ;;  %v2008_v1 = vmul.f32 %v1939_v27, %v1939_v27  ;;  %2080 = vst [vmem:[%s4675_s27 + $0xe0] sm:$0xff] %v1939_v27  ;;  %v1898_v55 = vadd.f32 %v2846_v30, %v1672_v45 }
 0x22c   : > { %v1674_v19 = vpop.f32.mrf.mxu1 }
 0x22d   : > { %v2039_v22 = vadd.f32 %v2038_v23, %v2008_v1  ;;  %v1940_v46 = vadd.f32 %v1898_v55, %v4659_v5 }
 0x22e   : > { %v1677_v38 = vpop.f32.mrf.mxu1 }
 0x22f   : > { %v1971_v62 = vadd.f32 %v1970_v14, %v1940_v46  ;;  %v2009_v33 = vmul.f32 %v1940_v46, %v1940_v46  ;;  %2081 = vst [vmem:[%s4675_s27 + $0xe8] sm:$0xff] %v1940_v46  ;;  %v1903_v4 = vadd.f32 %v1902_v36, %v1677_v38 }
 0x230   : > { %v1679_v7 = vpop.f32.mrf.mxu1 }
 0x231   : > { %v2040_v8 = vadd.f32 %v2039_v22, %v2009_v33  ;;  %v1941_v0 = vadd.f32 %v1903_v4, %v4666_v10 }
 0x232   : > { %v1682_v15 = vpop.f32.mrf.mxu1 }
 0x233   : > { %v1972_v57 = vadd.f32 %v1971_v62, %v1941_v0  ;;  %v2010_v47 = vmul.f32 %v1941_v0, %v1941_v0  ;;  %2082 = vst [vmem:[%s4675_s27 + $0xf0] sm:$0xff] %v1941_v0  ;;  %v1908_v24 = vadd.f32 %v2849_v54, %v1682_v15 }
 0x234   : > { %v1684_v2 = vpop.f32.mrf.mxu1 }
 0x235   : > { %v2041_v61 = vadd.f32 %v2040_v8, %v2010_v47  ;;  %v1942_v5 = vadd.f32 %v1908_v24, %v4664_v26 }
 0x237   : > { %v1973_v13 = vadd.f32 %v1972_v57, %v1942_v5  ;;  %v2011_v28 = vmul.f32 %v1942_v5, %v1942_v5  ;;  %2083 = vst [vmem:[%s4675_s27 + $0xf8] sm:$0xff] %v1942_v5 }
 0x239   : > { %v1974_v31 = vrot.slane %v1973_v13, 4  ;;  %v2042_v21 = vadd.f32 %v2041_v61, %v2011_v28 }
 0x23b   : > { %v1975_v51 = vadd.f32 %v1974_v31, %v1973_v13  ;;  %v2043_v16 = vrot.slane %v2042_v21, 4 }
 0x23d   : > { %v1976_v39 = vrot.slane %v1975_v51, 2  ;;  %v2044_v37 = vadd.f32 %v2043_v16, %v2042_v21 }
 0x23f   : > { %v1977_v10 = vadd.f32 %v1976_v39, %v1975_v51  ;;  %v2045_v42 = vrot.slane %v2044_v37, 2 }
 0x241   : > { %v1978_v25 = vrot.slane %v1977_v10, 1  ;;  %v2046_v40 = vadd.f32 %v2045_v42, %v2044_v37 }
 0x243   : > { %v2047_v29 = vrot.slane %v2046_v40, 1  ;;  %v1979_v26 = vadd.f32 %v1978_v25, %v1977_v10 }
 0x245   : > { %v2048_v34 = vadd.f32 %v2047_v29, %v2046_v40 }
 0x247   : > { %v2050_v44 = vsel %vm2049_vm4, %v1979_v26, %v2048_v34 }
 0x248   : > { %2051 = vst [vmem:[%s181_s4] sm:$0x3] %v2050_v44 }
 0x249 PF: > { %s14_s12 = sadd.s32 1, %s2895_s12  }
 0x24a   : > { %p11_p4 = scmp.ge.s32.totalorder %s14_s12, 4  }
 0x24c   :  { %13 = sbr.rel (!%p11_p4) target bundleno = 1 (0x1), region = 72 }

// kernel: basic_block_pallas.4
= control target key start
LH: loop header
LB: loop body
LE: loop exit
PB: predicated region body
PF: predicated region fallthrough
CT: control target
= control target key end

     0   :  { %s3025_s15 = smov 0   ;;  %s4931_s0 = inlined_call_operand.vmem [shape: f32[2,16,16,128], index: 0, kind: input, shape index: {}]   ;;  %s4932_s1 = inlined_call_operand.vmem [shape: f32[2,128], index: 1, kind: input, shape index: {}]   ;;  %s4933_s2 = inlined_call_operand.vmem [shape: f32[3,384,128], index: 2, kind: input, shape index: {}]   ;;  %s4934_s3 = inlined_call_operand.vmem [shape: f32[2,16,16,128], index: 3, kind: output, shape index: {0}]   ;;  %s4935_s4 = inlined_call_operand.vmem [shape: f32[2,2,128], index: 4, kind: output, shape index: {1}]  }
   0x1 LB: > { %s2302_s16 = sadd.s32 4294967295, %s2997_s15   ;;  %p2306_p0 = scmp.ge.s32.totalorder %s2997_s15, 1  ;;  %s2997_s15 = sphi %s3025_s15, %s15_s15  }
   0x2   : > { %p165_p1 = scmp.lt.s32.totalorder %s2997_s15, 3 }
   0x4   : > { %p166_p2 = pnand %p2306_p0, %p165_p1 }
   0x6   : > { %169 = sbr.rel (%p166_p2) target bundleno = 585 (0x249), region = 32 }
   0xb   : > { %v2359_v0 = vld [vmem:[%s4933_s2 + $0x2f8] sm:$0xff]  ;;  %v2358_v2 = vld [vmem:[%s4933_s2 + $0x2f0] sm:$0xff]  ;;  %p195_p3 = scmp.lt.s32.totalorder %s2302_s16, 1  ;;  %v242_v3 = vlaneseq  ;;  %v4936_v4 = vmov 0.0   ;;  %v2357_v6 = vld [vmem:[%s4933_s2 + $0x2e8] sm:$0xff]  ;;  %vm2181_vm4 = vcmask 1040384  }
   0xc   : > { %v2327_v1 = vld [vmem:[%s4933_s2 + $0x1f8] sm:$0xff]  ;;  %644 = vmatprep.subr.mxu0 %v4936_v4  ;;  %2742 = vmatprep.subr.mxu1 %v2359_v0  ;;  %v2326_v5 = vld [vmem:[%s4933_s2 + $0x1f0] sm:$0xff]  ;;  %v2325_v7 = vld [vmem:[%s4933_s2 + $0x1e8] sm:$0xff] }
   0xd   : > { %645 = vmatpush1.msra.mxu0 %v2327_v1  ;;  %2743 = vmatpush3.msra.mxu1 %v2359_v0  ;;  %s5136_s16 = smov (!%p195_p3, %s2302_s16), 1  ;;  %v3055_v8 = vshrl.u32 %v242_v3, 7  ;;  %v2356_v9 = vld [vmem:[%s4933_s2 + $0x2e0] sm:$0xff]  ;;  %v2355_v11 = vld [vmem:[%s4933_s2 + $0x2d8] sm:$0xff]  ;;  %v2354_v14 = vld [vmem:[%s4933_s2 + $0x2d0] sm:$0xff] }
   0xe   : > { %646 = vmatprep.subr.mxu0 %v4936_v4  ;;  %2744 = vmatprep.subr.mxu1 %v2358_v2  ;;  %v2324_v10 = vld [vmem:[%s4933_s2 + $0x1e0] sm:$0xff]  ;;  %s2594_s7 = sshll.u32 %s5136_s16, 8  ;;  %v2323_v12 = vld [vmem:[%s4933_s2 + $0x1d8] sm:$0xff]  ;;  %v2322_v15 = vld [vmem:[%s4933_s2 + $0x1d0] sm:$0xff] }
   0xf   : > { %647 = vmatpush1.msra.mxu0 %v2326_v5  ;;  %2745 = vmatpush3.msra.mxu1 %v2358_v2  ;;  %v244_v13 = vsub.s32 0, %v3055_v8  ;;  %s3081_s18 = scalar_lea.vmem %s4931_s0, %s2594_s7  ;;  %v2353_v16 = vld [vmem:[%s4933_s2 + $0x2c8] sm:$0xff]  ;;  %v209_v17 = vld [vmem:[%s4932_s1] sm:$0x3]  ;;  %v280_v18 = vsub.s32 1, %v3055_v8  ;;  %v2351_v25 = vld [vmem:[%s4933_s2 + $0x2b8] sm:$0xff]  ;;  %s4857_s14 = scalar_lea.vmem %s4934_s3, %s2594_s7 }
  0x10   : > { %648 = vmatprep.subr.mxu0 %v4936_v4  ;;  %2746 = vmatprep.subr.mxu1 %v2357_v6  ;;  %v2321_v19 = vld [vmem:[%s4933_s2 + $0x1c8] sm:$0xff]  ;;  %v210_v20 = vld [vmem:[%s3081_s18] sm:$0xff]  ;;  %v212_v29 = vld [vmem:[%s3081_s18 + $0x10] sm:$0xff]  ;;  %v3187_v62 = vadd.s32 8, %v3055_v8  ;;  %vm482_vm0 = vcmp.lt.s32.totalorder %v3055_v8, 7  ;;  %vm383_vm2 = vcmp.lt.s32.totalorder %v3055_v8, 1 }
  0x11   : > { %649 = vmatpush1.msra.mxu0 %v2325_v7  ;;  %2747 = vmatpush3.msra.mxu1 %v2357_v6  ;;  %v211_v21 = vld [vmem:[%s3081_s18 + $0x8] sm:$0xff]  ;;  %v3100_v22 = vrot.slane %v209_v17, %v244_v13  ;;  %v2352_v23 = vld [vmem:[%s4933_s2 + $0x2c0] sm:$0xff]  ;;  %v3114_v28 = vrot.slane %v209_v17, %v280_v18  ;;  %v2319_v30 = vld [vmem:[%s4933_s2 + $0x1b8] sm:$0xff]  ;;  %vm2596_vm3 = vcmp.ne.s32.totalorder %v3055_v8, 0  ;;  %s2311_s7 = sshll.u32 %s5136_s16, 1 }
  0x12   : > { %650 = vmatprep.subr.mxu0 %v4936_v4  ;;  %2748 = vmatprep.subr.mxu1 %v2356_v9  ;;  %v2320_v24 = vld [vmem:[%s4933_s2 + $0x1c0] sm:$0xff]  ;;  %v213_v31 = vld [vmem:[%s3081_s18 + $0x18] sm:$0xff]  ;;  %v2350_v32 = vld [vmem:[%s4933_s2 + $0x2b0] sm:$0xff]  ;;  %vm2597_vm1 = vcmp.ne.s32.totalorder %v3187_v62, 15  ;;  %s208_s20 = scalar_lea.vmem %s4935_s4, %s2311_s7 }
  0x13   : > { %651 = vmatpush1.msra.mxu0 %v2324_v10  ;;  %2749 = vmatpush3.msra.mxu1 %v2356_v9  ;;  %v246_v26 = vmul.f32 %v3100_v22, %v210_v20  ;;  %v247_v27 = vmul.f32 %v3100_v22, %v211_v21  ;;  %v2318_v33 = vld [vmem:[%s4933_s2 + $0x1b0] sm:$0xff]  ;;  %v248_v34 = vmul.f32 %v3100_v22, %v212_v29  ;;  %v2349_v35 = vld [vmem:[%s4933_s2 + $0x2a8] sm:$0xff]  ;;  %v2348_v40 = vld [vmem:[%s4933_s2 + $0x2a0] sm:$0xff] }
  0x14   : > { %652 = vmatprep.subr.mxu0 %v4936_v4  ;;  %2750 = vmatprep.subr.mxu1 %v2355_v11  ;;  %v249_v38 = vmul.f32 %v3100_v22, %v213_v31  ;;  %v2317_v39 = vld [vmem:[%s4933_s2 + $0x1a8] sm:$0xff]  ;;  %v214_v41 = vld [vmem:[%s3081_s18 + $0x20] sm:$0xff]  ;;  %v2347_v44 = vld [vmem:[%s4933_s2 + $0x298] sm:$0xff] }
  0x15   : > { %653 = vmatpush1.msra.mxu0 %v2323_v12  ;;  %2751 = vmatpush3.msra.mxu1 %v2355_v11  ;;  %v282_v36 = vadd.f32 %v3114_v28, %v246_v26  ;;  %v283_v37 = vadd.f32 %v3114_v28, %v247_v27  ;;  %v215_v42 = vld [vmem:[%s3081_s18 + $0x28] sm:$0xff]  ;;  %v2316_v43 = vld [vmem:[%s4933_s2 + $0x1a0] sm:$0xff]  ;;  %v284_v47 = vadd.f32 %v3114_v28, %v248_v34  ;;  %v2315_v49 = vld [vmem:[%s4933_s2 + $0x198] sm:$0xff] }
  0x16   : > { %654 = vmatprep.subr.mxu0 %v4936_v4  ;;  %2752 = vmatprep.subr.mxu1 %v2354_v14  ;;  %v285_v48 = vadd.f32 %v3114_v28, %v249_v38  ;;  %v250_v50 = vmul.f32 %v3100_v22, %v214_v41  ;;  %v251_v51 = vmul.f32 %v3100_v22, %v215_v42  ;;  %v2346_v52 = vld [vmem:[%s4933_s2 + $0x290] sm:$0xff]  ;;  %v217_v55 = vld [vmem:[%s3081_s18 + $0x38] sm:$0xff]  ;;  %v2345_v56 = vld [vmem:[%s4933_s2 + $0x288] sm:$0xff] }
  0x17   : > { %655 = vmatpush1.msra.mxu0 %v2322_v15  ;;  %2753 = vmatpush3.msra.mxu1 %v2354_v14  ;;  %v3152_v45 = vmax.f32 %v282_v36, 0.0  ;;  %v3154_v46 = vmax.f32 %v283_v37, 0.0  ;;  %v2314_v53 = vld [vmem:[%s4933_s2 + $0x190] sm:$0xff]  ;;  %v3178_v59 = vmax.f32 %v284_v47, 0.0  ;;  %v2313_v61 = vld [vmem:[%s4933_s2 + $0x188] sm:$0xff]  ;;  %v2344_v1 = vld [vmem:[%s4933_s2 + $0x280] sm:$0xff]  ;;  %v253_v3 = vmul.f32 %v3100_v22, %v217_v55 }
  0x18   : > { %656 = vmatprep.subr.mxu0 %v4936_v4  ;;  %2754 = vmatprep.subr.mxu1 %v2353_v16  ;;  %v216_v54 = vld [vmem:[%s3081_s18 + $0x30] sm:$0xff]  ;;  %v3180_v60 = vmax.f32 %v285_v48, 0.0  ;;  %v286_v63 = vadd.f32 %v3114_v28, %v250_v50  ;;  %v287_v0 = vadd.f32 %v3114_v28, %v251_v51  ;;  %v2312_v5 = vld [vmem:[%s4933_s2 + $0x180] sm:$0xff]  ;;  %v219_v11 = vld [vmem:[%s3081_s18 + $0x48] sm:$0xff] }
  0x19   : > { %657 = vmatpush1.msra.mxu0 %v2321_v19  ;;  %2755 = vmatpush3.msra.mxu1 %v2353_v16  ;;  %v450_v57 = vrot.slane %v3152_v45, 1  ;;  %v466_v58 = vrot.slane %v3154_v46, 1  ;;  %v252_v2 = vmul.f32 %v3100_v22, %v216_v54  ;;  %v451_v7 = vrot.slane %v3178_v59, 1  ;;  %v218_v10 = vld [vmem:[%s3081_s18 + $0x40] sm:$0xff]  ;;  %v2343_v15 = vld [vmem:[%s4933_s2 + $0x278] sm:$0xff]  ;;  %v2342_v21 = vld [vmem:[%s4933_s2 + $0x270] sm:$0xff] }
  0x1a   : > { %658 = vmatprep.subr.mxu0 %v4936_v4  ;;  %2756 = vmatprep.subr.mxu1 %v2352_v23  ;;  %v467_v9 = vrot.slane %v3180_v60, 1  ;;  %v3215_v13 = vmax.f32 %v286_v63, 0.0  ;;  %v3217_v14 = vmax.f32 %v287_v0, 0.0  ;;  %v562_v16 = vld [vmem:[%s4933_s2 + $0x78] sm:$0xff]  ;;  %v289_v18 = vadd.f32 %v3114_v28, %v253_v3  ;;  %v560_v34 = vld [vmem:[%s4933_s2 + $0x68] sm:$0xff]  ;;  %v559_v42 = vld [vmem:[%s4933_s2 + $0x60] sm:$0xff] }
  0x1b   : > { %659 = vmatpush1.msra.mxu0 %v2320_v24  ;;  %2757 = vmatpush3.msra.mxu1 %v2352_v23  ;;  %v3203_v6 = vsel %vm482_vm0, %v450_v57, %v466_v58  ;;  %v3213_v12 = vsel %vm482_vm0, %v466_v58, %v450_v57  ;;  %v288_v17 = vadd.f32 %v3114_v28, %v252_v2  ;;  %v220_v24 = vld [vmem:[%s3081_s18 + $0x50] sm:$0xff]  ;;  %v221_v29 = vld [vmem:[%s3081_s18 + $0x58] sm:$0xff]  ;;  %v223_v48 = vld [vmem:[%s3081_s18 + $0x68] sm:$0xff] }
  0x1c   : > { %660 = vmatprep.subr.mxu0 %v4936_v4  ;;  %2758 = vmatprep.subr.mxu1 %v2351_v25  ;;  %v254_v19 = vmul.f32 %v3100_v22, %v218_v10  ;;  %v255_v20 = vmul.f32 %v3100_v22, %v219_v11  ;;  %v3240_v23 = vsel %vm482_vm0, %v451_v7, %v467_v9  ;;  %v452_v26 = vrot.slane %v3215_v13, 1  ;;  %v558_v54 = vld [vmem:[%s4933_s2 + $0x58] sm:$0xff]  ;;  %v224_v57 = vld [vmem:[%s3081_s18 + $0x70] sm:$0xff]  ;;  %v226_v11 = vld [vmem:[%s3081_s18 + $0x80] sm:$0xff] }
  0x1d   : > { %661 = vmatpush1.msra.mxu0 %v2319_v30  ;;  %2759 = vmatpush3.msra.mxu1 %v2351_v25  ;;  %v561_v25 = vld [vmem:[%s4933_s2 + $0x70] sm:$0xff]  ;;  %v468_v27 = vrot.slane %v3217_v14, 1  ;;  %v3253_v30 = vsel %vm482_vm0, %v467_v9, %v451_v7  ;;  %v3255_v31 = vmax.f32 %v288_v17, 0.0  ;;  %v256_v37 = vmul.f32 %v3100_v22, %v220_v24  ;;  %v225_v63 = vld [vmem:[%s3081_s18 + $0x78] sm:$0xff]  ;;  %v2336_v24 = vld [vmem:[%s4933_s2 + $0x240] sm:$0xff] }
  0x1e   : > { %662 = vmatprep.subr.mxu0 %v4936_v4  ;;  %2760 = vmatprep.subr.mxu1 %v2350_v32  ;;  %v291_v36 = vadd.f32 %v3114_v28, %v255_v20  ;;  %v257_v38 = vmul.f32 %v3100_v22, %v221_v29  ;;  %v2338_v58 = vld [vmem:[%s4933_s2 + $0x250] sm:$0xff]  ;;  %v260_v10 = vmul.f32 %v3100_v22, %v224_v57  ;;  %v239_v20 = vld [vmem:[%s3081_s18 + $0xe8] sm:$0xff] }
  0x1f   : > { %663 = vmatpush1.msra.mxu0 %v2318_v33  ;;  %2761 = vmatpush3.msra.mxu1 %v2350_v32  ;;  %v3257_v32 = vmax.f32 %v289_v18, 0.0  ;;  %v2341_v33 = vld [vmem:[%s4933_s2 + $0x268] sm:$0xff]  ;;  %v3281_v41 = vsel %vm482_vm0, %v452_v26, %v468_v27  ;;  %v292_v51 = vadd.f32 %v3114_v28, %v256_v37  ;;  %v557_v0 = vld [vmem:[%s4933_s2 + $0x50] sm:$0xff]  ;;  %v261_v18 = vmul.f32 %v3100_v22, %v225_v63  ;;  %v229_v63 = vld [vmem:[%s3081_s18 + $0x98] sm:$0xff] }
  0x20   : > { %664 = vmatprep.subr.mxu0 %v4936_v4  ;;  %2762 = vmatprep.subr.mxu1 %v2349_v35  ;;  %v3297_v50 = vmax.f32 %v291_v36, 0.0  ;;  %v293_v55 = vadd.f32 %v3114_v28, %v257_v38  ;;  %v227_v29 = vld [vmem:[%s3081_s18 + $0x88] sm:$0xff]  ;;  %v296_v38 = vadd.f32 %v3114_v28, %v260_v10 }
  0x21   : > { %665 = vmatpush1.msra.mxu0 %v2317_v39  ;;  %2763 = vmatpush3.msra.mxu1 %v2349_v35  ;;  %v290_v35 = vadd.f32 %v3114_v28, %v254_v19  ;;  %v222_v39 = vld [vmem:[%s3081_s18 + $0x60] sm:$0xff]  ;;  %v469_v47 = vrot.slane %v3257_v32, 1  ;;  %v3329_v3 = vmax.f32 %v292_v51, 0.0  ;;  %v554_v51 = vld [vmem:[%s4933_s2 + $0x38] sm:$0xff] }
  0x22   : > { %666 = vmatprep.subr.mxu0 %v4936_v4  ;;  %2764 = vmatprep.subr.mxu1 %v2348_v40  ;;  %v470_v2 = vrot.slane %v3297_v50, 1  ;;  %v3338_v9 = vmax.f32 %v293_v55, 0.0  ;;  %v238_v19 = vld [vmem:[%s3081_s18 + $0xe0] sm:$0xff] }
  0x23   : > { %667 = vmatpush1.msra.mxu0 %v2316_v43  ;;  %2765 = vmatpush3.msra.mxu1 %v2348_v40  ;;  %v2340_v40 = vld [vmem:[%s4933_s2 + $0x260] sm:$0xff]  ;;  %v3288_v43 = vsel %vm482_vm0, %v468_v27, %v452_v26  ;;  %5016 = vst [vmem:[#allocation3_spill] sm:$0xff] %v3329_v3  ;;  %v455_v26 = vrot.slane %v3329_v3, 1 }
  0x24   : > { %668 = vmatprep.subr.mxu0 %v4936_v4  ;;  %2766 = vmatprep.subr.mxu1 %v2347_v44  ;;  %v471_v37 = vrot.slane %v3338_v9, 1 }
  0x25   : > { %669 = vmatpush1.msra.mxu0 %v2315_v49  ;;  %2767 = vmatpush3.msra.mxu1 %v2347_v44  ;;  %v453_v44 = vrot.slane %v3255_v31, 1  ;;  %v3295_v49 = vmax.f32 %v290_v35, 0.0  ;;  %v555_v35 = vld [vmem:[%s4933_s2 + $0x40] sm:$0xff] }
  0x26   : > { %670 = vmatprep.subr.mxu0 %v4936_v4  ;;  %2768 = vmatprep.subr.mxu1 %v2346_v52  ;;  %v3414_v57 = vsel %vm482_vm0, %v455_v26, %v471_v37 }
  0x27   : > { %671 = vmatpush1.msra.mxu0 %v2314_v53  ;;  %2769 = vmatpush3.msra.mxu1 %v2346_v52  ;;  %5015 = vst [vmem:[#allocation2_spill] sm:$0xff] %v3295_v49  ;;  %v258_v52 = vmul.f32 %v3100_v22, %v222_v39  ;;  %v2339_v53 = vld [vmem:[%s4933_s2 + $0x258] sm:$0xff]  ;;  %v3336_v7 = vsel %vm482_vm0, %v469_v47, %v453_v44  ;;  %5019 = vst [vmem:[#allocation6_spill] sm:$0xff] %v3414_v57 }
  0x28   : > { %672 = vmatprep.subr.mxu0 %v4936_v4  ;;  %2770 = vmatprep.subr.mxu1 %v2345_v56  ;;  %v274_v39 = vmul.f32 %v3100_v22, %v238_v19  ;;  %v2333_v19 = vld [vmem:[%s4933_s2 + $0x228] sm:$0xff] }
  0x29   : > { %673 = vmatpush1.msra.mxu0 %v2313_v61  ;;  %2771 = vmatpush3.msra.mxu1 %v2345_v56  ;;  %v259_v56 = vmul.f32 %v3100_v22, %v223_v48  ;;  %v3321_v61 = vsel %vm482_vm0, %v453_v44, %v469_v47  ;;  %v275_v44 = vmul.f32 %v3100_v22, %v239_v20  ;;  %v2335_v48 = vld [vmem:[%s4933_s2 + $0x238] sm:$0xff]  ;;  %v552_v20 = vld [vmem:[%s4933_s2 + $0x28] sm:$0xff] }
  0x2a   : > { %674 = vmatprep.subr.mxu0 %v4936_v4  ;;  %2772 = vmatprep.subr.mxu1 %v2344_v1 }
  0x2b   : > { %675 = vmatpush1.msra.mxu0 %v2312_v5  ;;  %2773 = vmatpush3.msra.mxu1 %v2344_v1  ;;  %v454_v1 = vrot.slane %v3295_v49, 1  ;;  %v294_v5 = vadd.f32 %v3114_v28, %v258_v52  ;;  %v295_v17 = vadd.f32 %v3114_v28, %v259_v56  ;;  %v263_v52 = vmul.f32 %v3100_v22, %v227_v29  ;;  %v2334_v56 = vld [vmem:[%s4933_s2 + $0x230] sm:$0xff]  ;;  %v231_v29 = vld [vmem:[%s3081_s18 + $0xa8] sm:$0xff] }
  0x2c   : > { %2774 = vmatprep.mubr.f32.mxu1 %v3203_v6  ;;  %676 = vmatprep.subr.mxu0 %v4936_v4  ;;  %v3403_v55 = vadd.f32 %v3114_v28, %v275_v44 }
  0x2d   : > { %2775 = vmatmul.mubr.msk.f32.vlgmr.msra.gmra.mxu1 %vm2597_vm1, %v3213_v12  ;;  %1094 = vmatprep.subr.mxu1 %v4936_v4  ;;  %v3367_v27 = vmax.f32 %v294_v5, 0.0  ;;  %v3377_v36 = vsel %vm482_vm0, %v470_v2, %v454_v1 }
  0x2e   : > { %677 = vmatpush2.msra.mxu0 %v2343_v15  ;;  %1095 = vmatpush1.msra.mxu1 %v562_v16  ;;  %v2337_v15 = vld [vmem:[%s4933_s2 + $0x248] sm:$0xff]  ;;  %5018 = vst [vmem:[#allocation5_spill] sm:$0xff] %v3377_v36 }
  0x2f   : > { %678 = vmatprep.subr.mxu0 %v4936_v4  ;;  %1096 = vmatprep.subr.mxu1 %v4936_v4  ;;  %v556_v16 = vld [vmem:[%s4933_s2 + $0x48] sm:$0xff]  ;;  %5017 = vst [vmem:[#allocation4_spill] sm:$0xff] %v3367_v27  ;;  %v456_v5 = vrot.slane %v3367_v27, 1 }
  0x30   : > { %679 = vmatpush2.msra.mxu0 %v2342_v21  ;;  %2777 = vmatprep.mubr.f32.mxu1 %v3240_v23  ;;  %v240_v21 = vld [vmem:[%s3081_s18 + $0xf0] sm:$0xff] }
  0x31   : > { %1097 = vmatpush1.msra.mxu1 %v561_v25  ;;  %680 = vmatprep.subr.mxu0 %v4936_v4  ;;  %v3364_v25 = vsel %vm482_vm0, %v454_v1, %v470_v2  ;;  %v276_v47 = vmul.f32 %v3100_v22, %v240_v21  ;;  %v553_v2 = vld [vmem:[%s4933_s2 + $0x30] sm:$0xff] }
  0x32   : > { %2778 = vmatmul.mubr.msk.f32.gmra.mxu1 %vm2597_vm1, %v3253_v30  ;;  %1098 = vmatprep.subr.mxu1 %v4936_v4 }
  0x33   : > { %681 = vmatpush2.msra.mxu0 %v2341_v33  ;;  %1099 = vmatpush1.msra.mxu1 %v560_v34  ;;  %v262_v33 = vmul.f32 %v3100_v22, %v226_v11  ;;  %v241_v34 = vld [vmem:[%s3081_s18 + $0xf8] sm:$0xff]  ;;  %v3429_v11 = vmax.f32 %v296_v38, 0.0  ;;  %v551_v38 = vld [vmem:[%s4933_s2 + $0x20] sm:$0xff] }
  0x34   : > { %682 = vmatprep.subr.mxu0 %v4936_v4  ;;  %1100 = vmatprep.subr.mxu1 %v4936_v4 }
  0x35   : > { %683 = vmatpush2.msra.mxu0 %v2340_v40  ;;  %2780 = vmatprep.mubr.f32.mxu1 %v3281_v41  ;;  %v3384_v40 = vmax.f32 %v295_v17, 0.0  ;;  %5020 = vst [vmem:[#allocation7_spill] sm:$0xff] %v3429_v11  ;;  %v298_v17 = vadd.f32 %v3114_v28, %v262_v33  ;;  %v2332_v33 = vld [vmem:[%s4933_s2 + $0x220] sm:$0xff] }
  0x36   : > { %1101 = vmatpush1.msra.mxu1 %v559_v42  ;;  %684 = vmatprep.subr.mxu0 %v4936_v4  ;;  %v297_v42 = vadd.f32 %v3114_v28, %v261_v18  ;;  %v299_v18 = vadd.f32 %v3114_v28, %v263_v52  ;;  %v267_v52 = vmul.f32 %v3100_v22, %v231_v29 }
  0x37   : > { %2781 = vmatmul.mubr.msk.f32.gmra.mxu1 %vm2597_vm1, %v3288_v43  ;;  %1102 = vmatprep.subr.mxu1 %v4936_v4  ;;  %v472_v10 = vrot.slane %v3384_v40, 1 }
  0x38   : > { %685 = vmatpush2.msra.mxu0 %v2339_v53  ;;  %1103 = vmatpush1.msra.mxu1 %v558_v54  ;;  %v3398_v53 = vadd.f32 %v3114_v28, %v274_v39  ;;  %v277_v54 = vmul.f32 %v3100_v22, %v241_v34  ;;  %v3475_v44 = vmax.f32 %v299_v18, 0.0 }
  0x39   : > { %686 = vmatprep.subr.mxu0 %v4936_v4  ;;  %1104 = vmatprep.subr.mxu1 %v4936_v4  ;;  %v3462_v34 = vsel %vm482_vm0, %v456_v5, %v472_v10 }
  0x3a   : > { %687 = vmatpush2.msra.mxu0 %v2338_v58  ;;  %2783 = vmatprep.mubr.f32.mxu1 %v3321_v61  ;;  %v228_v58 = vld [vmem:[%s3081_s18 + $0x90] sm:$0xff]  ;;  %v3422_v1 = vadd.f32 %v3114_v28, %v277_v54  ;;  %5023 = vst [vmem:[#allocation10_spill] sm:$0xff] %v3462_v34  ;;  %v2331_v54 = vld [vmem:[%s4933_s2 + $0x218] sm:$0xff] }
  0x3b   : > { %1105 = vmatpush1.msra.mxu1 %v557_v0  ;;  %688 = vmatprep.subr.mxu0 %v4936_v4  ;;  %v3419_v0 = vadd.f32 %v3114_v28, %v276_v47  ;;  %v264_v21 = vmul.f32 %v3100_v22, %v228_v58  ;;  %v232_v58 = vld [vmem:[%s3081_s18 + $0xb0] sm:$0xff] }
  0x3c   : > { %2784 = vmatmul.mubr.msk.f32.gmra.mxu1 %vm2597_vm1, %v3336_v7  ;;  %1106 = vmatprep.subr.mxu1 %v4936_v4 }
  0x3d   : > { %689 = vmatpush2.msra.mxu0 %v2337_v15  ;;  %1107 = vmatpush1.msra.mxu1 %v556_v16  ;;  %v3435_v15 = vsel %vm482_vm0, %v471_v37, %v455_v26  ;;  %v3437_v16 = vmax.f32 %v297_v42, 0.0  ;;  %v230_v26 = vld [vmem:[%s3081_s18 + $0xa0] sm:$0xff]  ;;  %v457_v37 = vrot.slane %v3429_v11, 1  ;;  %v3473_v42 = vmax.f32 %v298_v17, 0.0 }
  0x3e   : > { %690 = vmatprep.subr.mxu0 %v4936_v4  ;;  %1108 = vmatprep.subr.mxu1 %v4936_v4  ;;  %5021 = vst [vmem:[#allocation8_spill] sm:$0xff] %v3435_v15  ;;  %v266_v47 = vmul.f32 %v3100_v22, %v230_v26  ;;  %v474_v17 = vrot.slane %v3475_v44, 1  ;;  %v268_v26 = vmul.f32 %v3100_v22, %v232_v58 }
  0x3f   : > { %691 = vmatpush2.msra.mxu0 %v2336_v24  ;;  %2786 = vmatprep.mubr.f32.mxu1 %v3364_v25  ;;  %5022 = vst [vmem:[#allocation9_spill] sm:$0xff] %v3437_v16  ;;  %v265_v24 = vmul.f32 %v3100_v22, %v229_v63  ;;  %v473_v39 = vrot.slane %v3437_v16, 1  ;;  %5025 = vst [vmem:[#allocation12_spill] sm:$0xff] %v3473_v42  ;;  %v233_v63 = vld [vmem:[%s3081_s18 + $0xb8] sm:$0xff] }
  0x40   : > { %1109 = vmatpush1.msra.mxu1 %v555_v35  ;;  %692 = vmatprep.subr.mxu0 %v4936_v4  ;;  %v3466_v35 = vsel %vm482_vm0, %v472_v10, %v456_v5  ;;  %v458_v10 = vrot.slane %v3473_v42, 1  ;;  %v302_v18 = vadd.f32 %v3114_v28, %v266_v47  ;;  %v548_v47 = vld [vmem:[%s4933_s2 + $0x8] sm:$0xff] }
  0x41   : > { %2787 = vmatmul.mubr.msk.f32.gmra.mxu1 %vm2597_vm1, %v3377_v36  ;;  %1110 = vmatprep.subr.mxu1 %v4936_v4  ;;  %5024 = vst [vmem:[#allocation11_spill] sm:$0xff] %v3466_v35  ;;  %v3502_v5 = vsel %vm482_vm0, %v457_v37, %v473_v39  ;;  %v3520_v29 = vsel %vm482_vm0, %v473_v39, %v457_v37  ;;  %v235_v37 = vld [vmem:[%s3081_s18 + $0xc8] sm:$0xff]  ;;  %v370_v36 = vrot.slane %v3257_v32, 7 }
  0x42   : > { %693 = vmatpush2.msra.mxu0 %v2335_v48  ;;  %1111 = vmatpush1.msra.mxu1 %v554_v51  ;;  %v300_v48 = vadd.f32 %v3114_v28, %v264_v21  ;;  %v301_v51 = vadd.f32 %v3114_v28, %v265_v24  ;;  %5026 = vst [vmem:[#allocation13_spill] sm:$0xff] %v3502_v5  ;;  %5028 = vst [vmem:[#allocation15_spill] sm:$0xff] %v3520_v29 }
  0x43   : > { %694 = vmatprep.subr.mxu0 %v4936_v4  ;;  %1112 = vmatprep.subr.mxu1 %v4936_v4  ;;  %v303_v24 = vadd.f32 %v3114_v28, %v267_v52  ;;  %v234_v52 = vld [vmem:[%s3081_s18 + $0xc0] sm:$0xff]  ;;  %v3537_v39 = vsel %vm482_vm0, %v458_v10, %v474_v17 }
  0x44   : > { %695 = vmatpush2.msra.mxu0 %v2334_v56  ;;  %2789 = vmatprep.mubr.f32.mxu1 %v3414_v57  ;;  %v550_v56 = vld [vmem:[%s4933_s2 + $0x18] sm:$0xff]  ;;  %v3512_v21 = vmax.f32 %v301_v51, 0.0  ;;  %v367_v51 = vrot.slane %v3154_v46, 7  ;;  %5029 = vst [vmem:[#allocation16_spill] sm:$0xff] %v3537_v39 }
  0x45   : > { %1113 = vmatpush1.msra.mxu1 %v553_v2  ;;  %696 = vmatprep.subr.mxu0 %v4936_v4  ;;  %v2330_v2 = vld [vmem:[%s4933_s2 + $0x210] sm:$0xff] }
  0x46   : > { %2790 = vmatmul.mubr.msk.f32.gmra.mxu1 %vm2597_vm1, %v3435_v15  ;;  %1114 = vmatprep.subr.mxu1 %v4936_v4 }
  0x47   : > { %697 = vmatpush2.msra.mxu0 %v2333_v19  ;;  %1115 = vmatpush1.msra.mxu1 %v552_v20  ;;  %v549_v19 = vld [vmem:[%s4933_s2 + $0x10] sm:$0xff]  ;;  %v3510_v20 = vmax.f32 %v300_v48, 0.0  ;;  %v351_v48 = vrot.slane %v3152_v45, 7 }
  0x48   : > { %698 = vmatprep.subr.mxu0 %v4936_v4  ;;  %1116 = vmatprep.subr.mxu1 %v4936_v4 }
  0x49   : > { %699 = vmatpush2.msra.mxu0 %v2332_v33  ;;  %2792 = vmatprep.mubr.f32.mxu1 %v3462_v34  ;;  %5027 = vst [vmem:[#allocation14_spill] sm:$0xff] %v3510_v20  ;;  %v2329_v33 = vld [vmem:[%s4933_s2 + $0x208] sm:$0xff]  ;;  %v459_v58 = vrot.slane %v3510_v20, 1  ;;  %v237_v34 = vld [vmem:[%s3081_s18 + $0xd8] sm:$0xff] }
  0x4a   : > { %1117 = vmatpush1.msra.mxu1 %v551_v38  ;;  %700 = vmatprep.subr.mxu0 %v4936_v4  ;;  %v269_v38 = vmul.f32 %v3100_v22, %v233_v63  ;;  %v475_v63 = vrot.slane %v3512_v21, 1 }
  0x4b   : > { %2793 = vmatmul.mubr.msk.f32.gmra.mxu1 %vm2597_vm1, %v3466_v35  ;;  %1118 = vmatprep.subr.mxu1 %v4936_v4  ;;  %v236_v35 = vld [vmem:[%s3081_s18 + $0xd0] sm:$0xff] }
  0x4c   : > { %701 = vmatpush2.msra.mxu0 %v2331_v54  ;;  %1119 = vmatpush1.msra.mxu1 %v550_v56  ;;  %v3540_v54 = vmax.f32 %v302_v18, 0.0  ;;  %v2328_v56 = vld [vmem:[%s4933_s2 + $0x200] sm:$0xff] }
  0x4d   : > { %702 = vmatprep.subr.mxu0 %v4936_v4  ;;  %1120 = vmatprep.subr.mxu1 %v4936_v4  ;;  %v547_v18 = vld [vmem:[%s4933_s2] sm:$0xff] }
  0x4e   : > { %703 = vmatpush2.msra.mxu0 %v2330_v2  ;;  %2795 = vmatprep.mubr.f32.mxu1 %v3502_v5  ;;  %v3551_v2 = vmax.f32 %v303_v24, 0.0  ;;  %v271_v5 = vmul.f32 %v3100_v22, %v235_v37  ;;  %v5030_v24 = vmov 0.0  }
  0x4f   : > { %1121 = vmatpush1.msra.mxu1 %v549_v19  ;;  %704 = vmatprep.subr.mxu0 %v4936_v4  ;;  %v304_v19 = vadd.f32 %v3114_v28, %v268_v26  ;;  %v3567_v26 = vsel %vm383_vm2, %v367_v51, %v351_v48 }
  0x50   : > { %2796 = vmatmul.mubr.msk.f32.gmra.mxu1 %vm2597_vm1, %v3520_v29  ;;  %1122 = vmatprep.subr.mxu1 %v4936_v4  ;;  %v305_v4 = vadd.f32 %v3114_v28, %v269_v38  ;;  %v270_v29 = vmul.f32 %v3100_v22, %v234_v52  ;;  %v460_v38 = vrot.slane %v3540_v54, 1  ;;  %v3581_v52 = vsel %vm482_vm0, %v459_v58, %v475_v63 }
  0x51   : > { %705 = vmatpush2.msra.mxu0 %v2329_v33  ;;  %1123 = vmatpush1.msra.mxu1 %v548_v47  ;;  %v3571_v33 = vsel %vm482_vm0, %v474_v17, %v458_v10  ;;  %v578_v47 = vld [vmem:[%s4933_s2 + $0xf8] sm:$0xff]  ;;  %5032 = vst [vmem:[#allocation18_spill] sm:$0xff] %v3581_v52  ;;  %v476_v37 = vrot.slane %v3551_v2, 1  ;;  %v272_v10 = vmul.f32 %v3100_v22, %v236_v35  ;;  %v352_v35 = vrot.slane %v3178_v59, 7 }
  0x52   : > { %706 = vmatprep.subr.mxu0 %v5030_v24  ;;  %1124 = vmatprep.subr.mxu1 %v5030_v24  ;;  %5031 = vst [vmem:[#allocation17_spill] sm:$0xff] %v3571_v33  ;;  %v273_v17 = vmul.f32 %v3100_v22, %v237_v34  ;;  %v307_v15 = vadd.f32 %v3114_v28, %v271_v5  ;;  %v3601_v22 = vld [vmem:[%s4933_s2 + $0x178] sm:$0xff]  ;;  %v577_v34 = vld [vmem:[%s4933_s2 + $0xf0] sm:$0xff]  ;;  %v368_v5 = vrot.slane %v3180_v60, 7 }
  0x53   : > { %707 = vmatpush2.msra.mxu0 %v2328_v56  ;;  %708 = vmatprep.mubr.f32.mxu0 %v3152_v45  ;;  %v3592_v56 = vmax.f32 %v304_v19, 0.0  ;;  %v576_v19 = vld [vmem:[%s4933_s2 + $0xe8] sm:$0xff] }
  0x54   : > { %2798 = vmatprep.mubr.f32.mxu1 %v3537_v39  ;;  %1125 = vmatpush1.msra.mxu1 %v547_v18  ;;  %v3594_v18 = vmax.f32 %v305_v4, 0.0  ;;  %v306_v39 = vadd.f32 %v3114_v28, %v270_v29  ;;  %v3610_v4 = vsel %vm383_vm2, %v351_v48, %v367_v51  ;;  %v3617_v29 = vsel %vm482_vm0, %v475_v63, %v459_v58 }
  0x55   : > { %2361 = vmatmul.mubr.msk.f32.vlgmr.msra.gmra.mxu0 %vm2596_vm3, %v3567_v26  ;;  %2799 = vmatmul.mubr.msk.f32.gmra.mxu1 %vm2597_vm1, %v3571_v33  ;;  %5034 = vst [vmem:[#allocation20_spill] sm:$0xff] %v3617_v29  ;;  %v3625_v48 = vsel %vm482_vm0, %v460_v38, %v476_v37  ;;  %v308_v51 = vadd.f32 %v3114_v28, %v272_v10  ;;  %v461_v58 = vrot.slane %v3592_v56, 1  ;;  %v3635_v33 = vmax.f32 %v307_v15, 0.0 }
  0x56   : > { %5033 = vst [vmem:[#allocation19_spill] sm:$0xff] %v3594_v18  ;;  %1126 = vmatprep.subr.mxu1 %v5030_v24  ;;  %713 = vmatprep.mubr.f32.mxu0 %v3154_v46  ;;  %5035 = vst [vmem:[#allocation21_spill] sm:$0xff] %v3625_v48  ;;  %v477_v63 = vrot.slane %v3594_v18, 1  ;;  %v3646_v10 = vsel %vm383_vm2, %v368_v5, %v352_v35  ;;  %v3651_v15 = vsel %vm482_vm0, %v476_v37, %v460_v38 }
  0x57   : > { %1127 = vmatpush2.msra.mxu1 %v578_v47  ;;  %2801 = vmatprep.mubr.f32.mxu1 %v3581_v52  ;;  %v309_v47 = vadd.f32 %v3114_v28, %v273_v17  ;;  %v3633_v52 = vmax.f32 %v306_v39, 0.0  ;;  %5037 = vst [vmem:[#allocation23_spill] sm:$0xff] %v3635_v33  ;;  %v575_v28 = vld [vmem:[%s4933_s2 + $0xe0] sm:$0xff]  ;;  %5038 = vst [vmem:[#allocation24_spill] sm:$0xff] %v3651_v15  ;;  %v574_v39 = vld [vmem:[%s4933_s2 + $0xd8] sm:$0xff]  ;;  %v3658_v17 = vmax.f32 %v308_v51, 0.0 }
  0x58   : > { %1128 = vmatprep.subr.mxu1 %v5030_v24  ;;  %2822 = vmatprep.subr.mxu0 %v3601_v22  ;;  %v3667_v38 = vsel %vm482_vm0, %v461_v58, %v477_v63  ;;  %v573_v51 = vld [vmem:[%s4933_s2 + $0xd0] sm:$0xff] }
  0x59   : > { %1129 = vmatpush2.msra.mxu1 %v577_v34  ;;  %714 = vmatmul.mubr.f32.gmra.mxu0 %v3610_v4  ;;  %5036 = vst [vmem:[#allocation22_spill] sm:$0xff] %v3633_v52  ;;  %5039 = vst [vmem:[#allocation25_spill] sm:$0xff] %v3658_v17  ;;  %v3660_v34 = vmax.f32 %v309_v47, 0.0  ;;  %v462_v37 = vrot.slane %v3633_v52, 1  ;;  %v3680_v47 = vsel %vm383_vm2, %v352_v35, %v368_v5  ;;  %v572_v35 = vld [vmem:[%s4933_s2 + $0xc8] sm:$0xff]  ;;  %v463_v5 = vrot.slane %v3658_v17, 1 }
  0x5a   : > { %2802 = vmatmul.mubr.msk.f32.gmra.mxu1 %vm2597_vm1, %v3617_v29  ;;  %1130 = vmatprep.subr.mxu1 %v5030_v24  ;;  %5041 = vst [vmem:[#allocation27_spill] sm:$0xff] %v3667_v38 }
  0x5b   : > { %1131 = vmatpush2.msra.mxu1 %v576_v19  ;;  %718 = vmatprep.mubr.f32.mxu0 %v3178_v59  ;;  %5040 = vst [vmem:[#allocation26_spill] sm:$0xff] %v3660_v34  ;;  %v478_v19 = vrot.slane %v3635_v33, 1  ;;  %v479_v29 = vrot.slane %v3660_v34, 1 }
  0x5c   : > { %1132 = vmatprep.subr.mxu1 %v5030_v24  ;;  %2804 = vmatprep.mubr.f32.mxu1 %v3625_v48  ;;  %v369_v48 = vrot.slane %v3217_v14, 7 }
  0x5d   : > { %1133 = vmatpush2.msra.mxu1 %v575_v28  ;;  %2363 = vmatmul.mubr.msk.f32.gmra.mxu0 %vm2596_vm3, %v3646_v10  ;;  %v353_v28 = vrot.slane %v3215_v13, 7 }
  0x5e   : > { %2805 = vmatmul.mubr.msk.f32.gmra.mxu1 %vm2597_vm1, %v3651_v15  ;;  %1134 = vmatprep.subr.mxu1 %v5030_v24  ;;  %v3687_v15 = vsel %vm482_vm0, %v477_v63, %v461_v58  ;;  %v3702_v58 = vmax.f32 %v3398_v53, 0.0  ;;  %v3705_v63 = vmax.f32 %v3403_v55, 0.0  ;;  %v3721_v53 = vsel %vm482_vm0, %v478_v19, %v462_v37  ;;  %v570_v55 = vld [vmem:[%s4933_s2 + $0xb8] sm:$0xff] }
  0x5f   : > { %1135 = vmatpush2.msra.mxu1 %v574_v39  ;;  %723 = vmatprep.mubr.f32.mxu0 %v3180_v60  ;;  %5042 = vst [vmem:[#allocation28_spill] sm:$0xff] %v3687_v15  ;;  %v3699_v39 = vsel %vm482_vm0, %v462_v37, %v478_v19  ;;  %5046 = vst [vmem:[#allocation32_spill] sm:$0xff] %v3721_v53  ;;  %v3752_v57 = vsel %vm383_vm2, %v353_v28, %v369_v48 }
  0x60   : > { %1136 = vmatprep.subr.mxu1 %v5030_v24  ;;  %2807 = vmatprep.mubr.f32.mxu1 %v3667_v38  ;;  %5043 = vst [vmem:[#allocation29_spill] sm:$0xff] %v3699_v39  ;;  %5044 = vst [vmem:[#allocation30_spill] sm:$0xff] %v3702_v58  ;;  %v3716_v38 = vsel %vm383_vm2, %v369_v48, %v353_v28  ;;  %v464_v37 = vrot.slane %v3702_v58, 1  ;;  %v480_v19 = vrot.slane %v3705_v63, 1  ;;  %v568_v48 = vld [vmem:[%s4933_s2 + $0xa8] sm:$0xff] }
  0x61   : > { %1137 = vmatpush2.msra.mxu1 %v573_v51  ;;  %724 = vmatmul.mubr.f32.gmra.mxu0 %v3680_v47  ;;  %5045 = vst [vmem:[#allocation31_spill] sm:$0xff] %v3705_v63  ;;  %v571_v51 = vld [vmem:[%s4933_s2 + $0xc0] sm:$0xff] }
  0x62   : > { %2808 = vmatmul.mubr.msk.f32.gmra.mxu1 %vm2597_vm1, %v3687_v15  ;;  %1138 = vmatprep.subr.mxu1 %v5030_v24  ;;  %v3730_v15 = vsel %vm482_vm0, %v463_v5, %v479_v29  ;;  %v3769_v28 = vsel %vm482_vm0, %v464_v37, %v480_v19 }
  0x63   : > { %1139 = vmatpush2.msra.mxu1 %v572_v35  ;;  %728 = vmatprep.mubr.f32.mxu0 %v3215_v13  ;;  %5047 = vst [vmem:[#allocation33_spill] sm:$0xff] %v3730_v15  ;;  %v3738_v35 = vmax.f32 %v3419_v0, 0.0  ;;  %v354_v0 = vrot.slane %v3255_v31, 7  ;;  %5051 = vst [vmem:[#allocation37_spill] sm:$0xff] %v3769_v28 }
  0x64   : > { %1140 = vmatprep.subr.mxu1 %v5030_v24  ;;  %2810 = vmatprep.mubr.f32.mxu1 %v3699_v39  ;;  %v3741_v39 = vmax.f32 %v3422_v1, 0.0  ;;  %v3759_v1 = vsel %vm482_vm0, %v479_v29, %v463_v5  ;;  %v567_v5 = vld [vmem:[%s4933_s2 + $0xa0] sm:$0xff] }
  0x65   : > { %1141 = vmatpush2.msra.mxu1 %v571_v51  ;;  %2365 = vmatmul.mubr.msk.f32.gmra.mxu0 %vm2596_vm3, %v3716_v38  ;;  %5048 = vst [vmem:[#allocation34_spill] sm:$0xff] %v3738_v35  ;;  %v569_v51 = vld [vmem:[%s4933_s2 + $0xb0] sm:$0xff]  ;;  %5050 = vst [vmem:[#allocation36_spill] sm:$0xff] %v3759_v1 }
  0x66   : > { %5049 = vst [vmem:[#allocation35_spill] sm:$0xff] %v3741_v39  ;;  %2811 = vmatmul.mubr.msk.f32.gmra.mxu1 %vm2597_vm1, %v3721_v53  ;;  %1142 = vmatprep.subr.mxu1 %v5030_v24  ;;  %v481_v29 = vrot.slane %v3741_v39, 1  ;;  %v376_v53 = vrot.slane %v3512_v21, 7 }
  0x67   : > { %1143 = vmatpush2.msra.mxu1 %v570_v55  ;;  %733 = vmatprep.mubr.f32.mxu0 %v3217_v14  ;;  %v465_v55 = vrot.slane %v3738_v35, 1 }
  0x68   : > { %1144 = vmatprep.subr.mxu1 %v5030_v24  ;;  %2813 = vmatprep.mubr.f32.mxu1 %v3730_v15  ;;  %v3787_v15 = vsel %vm482_vm0, %v480_v19, %v464_v37  ;;  %v565_v37 = vld [vmem:[%s4933_s2 + $0x90] sm:$0xff]  ;;  %v3810_v19 = vsel %vm383_vm2, %v354_v0, %v370_v36 }
  0x69   : > { %1145 = vmatpush2.msra.mxu1 %v569_v51  ;;  %734 = vmatmul.mubr.f32.gmra.mxu0 %v3752_v57  ;;  %v3782_v51 = vsel %vm383_vm2, %v370_v36, %v354_v0  ;;  %5053 = vst [vmem:[#allocation39_spill] sm:$0xff] %v3787_v15  ;;  %v564_v36 = vld [vmem:[%s4933_s2 + $0x88] sm:$0xff]  ;;  %v563_v0 = vld [vmem:[%s4933_s2 + $0x80] sm:$0xff] }
  0x6a   : > { %2814 = vmatmul.mubr.msk.f32.gmra.mxu1 %vm2597_vm1, %v3759_v1  ;;  %1146 = vmatprep.subr.mxu1 %v5030_v24  ;;  %5052 = vst [vmem:[#allocation38_spill] sm:$0xff] %v3782_v51  ;;  %v566_v1 = vld [vmem:[%s4933_s2 + $0x98] sm:$0xff] }
  0x6b   : > { %1147 = vmatpush2.msra.mxu1 %v568_v48  ;;  %738 = vmatprep.mubr.f32.mxu0 %v3255_v31  ;;  %v3799_v48 = vsel %vm482_vm0, %v465_v55, %v481_v29 }
  0x6c   : > { %1148 = vmatprep.subr.mxu1 %v5030_v24  ;;  %2816 = vmatprep.mubr.f32.mxu1 %v3769_v28  ;;  %5054 = vst [vmem:[#allocation40_spill] sm:$0xff] %v3799_v48  ;;  %v355_v28 = vrot.slane %v3295_v49, 7 }
  0x6d   : > { %1149 = vmatpush2.msra.mxu1 %v567_v5  ;;  %2367 = vmatmul.mubr.msk.f32.gmra.mxu0 %vm2596_vm3, %v3782_v51  ;;  %v3815_v5 = vsel %vm482_vm0, %v481_v29, %v465_v55  ;;  %v2499_v55 = vld [vmem:[%s4933_s2 + $0x378] sm:$0xff] }
  0x6e   : > { %2817 = vmatmul.mubr.msk.f32.gmra.mxu1 %vm2597_vm1, %v3787_v15  ;;  %1150 = vmatprep.subr.mxu1 %v5030_v24  ;;  %5055 = vst [vmem:[#allocation41_spill] sm:$0xff] %v3815_v5  ;;  %v371_v15 = vrot.slane %v3297_v50, 7 }
  0x6f   : > { %1151 = vmatpush2.msra.mxu1 %v566_v1  ;;  %743 = vmatprep.mubr.f32.mxu0 %v3257_v32 }
  0x70   : > { %1152 = vmatprep.subr.mxu1 %v5030_v24  ;;  %2819 = vmatprep.mubr.f32.mxu1 %v3799_v48  ;;  %v3835_v1 = vsel %vm383_vm2, %v371_v15, %v355_v28  ;;  %v3854_v29 = vsel %vm383_vm2, %v355_v28, %v371_v15  ;;  %v592_v15 = vld [vmem:[%s4933_s2 + $0x168] sm:$0xff]  ;;  %v587_v48 = vld [vmem:[%s4933_s2 + $0x140] sm:$0xff] }
  0x71   : > { %1153 = vmatpush2.msra.mxu1 %v565_v37  ;;  %744 = vmatmul.mubr.f32.gmra.mxu0 %v3810_v19  ;;  %5056 = vst [vmem:[#allocation42_spill] sm:$0xff] %v3835_v1  ;;  %v356_v37 = vrot.slane %v3329_v3, 7 }
  0x72   : > { %2820 = vmatmul.mubr.msk.f32.gmra.mxu1 %vm2597_vm1, %v3815_v5  ;;  %1154 = vmatprep.subr.mxu1 %v5030_v24  ;;  %v373_v5 = vrot.slane %v3384_v40, 7 }
  0x73   : > { %1155 = vmatpush2.msra.mxu1 %v564_v36  ;;  %2823 = vmatpush3.msra.mxu0 %v3601_v22  ;;  %v593_v22 = vld [vmem:[%s4933_s2 + $0x170] sm:$0xff]  ;;  %v372_v36 = vrot.slane %v3338_v9, 7 }
  0x74   : > { %1156 = vmatprep.subr.mxu1 %v5030_v24  ;;  %748 = vmatprep.mubr.f32.mxu0 %v3295_v49 }
  0x75   : > { %1157 = vmatpush2.msra.mxu1 %v563_v0  ;;  %1158 = vmatprep.mubr.f32.mxu1 %v5030_v24  ;;  %v2498_v0 = vld [vmem:[%s4933_s2 + $0x370] sm:$0xff]  ;;  %v3870_v28 = vsel %vm383_vm2, %v372_v36, %v356_v37 }
  0x76   : > { %2369 = vmatmul.mubr.msk.f32.gmra.mxu0 %vm2596_vm3, %v3835_v1  ;;  %1159 = vmatmul.mubr.f32.vlgmr.msra.gmra.mxu1 %v5030_v24  ;;  %5057 = vst [vmem:[#allocation43_spill] sm:$0xff] %v3870_v28 }
  0x77   : > { %1593 = vmatprep.subr.mxu1 %v5030_v24  ;;  %753 = vmatprep.mubr.f32.mxu0 %v3297_v50 }
  0x78   : > { %1594 = vmatpush1.msra.mxu1 %v2499_v55  ;;  %1163 = vmatprep.mubr.f32.mxu1 %v5030_v24  ;;  %v2497_v55 = vld [vmem:[%s4933_s2 + $0x368] sm:$0xff] }
  0x79   : > { %2824 = vmatprep.subr.mxu0 %v593_v22  ;;  %1595 = vmatprep.subr.mxu1 %v5030_v24 }
  0x7a   : > { %754 = vmatmul.mubr.f32.gmra.mxu0 %v3854_v29  ;;  %1164 = vmatmul.mubr.f32.gmra.mxu1 %v5030_v24 }
  0x7b   : > { %2825 = vmatpush3.msra.mxu0 %v593_v22  ;;  %1596 = vmatpush1.msra.mxu1 %v2498_v0  ;;  %v2496_v22 = vld [vmem:[%s4933_s2 + $0x360] sm:$0xff]  ;;  %v357_v0 = vrot.slane %v3367_v27, 7 }
  0x7c   : > { %758 = vmatprep.mubr.f32.mxu0 %v3329_v3  ;;  %1168 = vmatprep.mubr.f32.mxu1 %v3152_v45  ;;  %v3890_v45 = vsel %vm383_vm2, %v356_v37, %v372_v36  ;;  %v2495_v37 = vld [vmem:[%s4933_s2 + $0x358] sm:$0xff]  ;;  %v2494_v36 = vld [vmem:[%s4933_s2 + $0x350] sm:$0xff] }
  0x7d   : > { %1597 = vmatprep.subr.mxu1 %v5030_v24  ;;  %2826 = vmatprep.subr.mxu0 %v592_v15 }
  0x7e   : > { %2371 = vmatmul.mubr.msk.f32.gmra.mxu0 %vm2596_vm3, %v3870_v28  ;;  %2425 = vmatmul.mubr.msk.f32.gmra.mxu1 %vm2596_vm3, %v3567_v26  ;;  %v591_v26 = vld [vmem:[%s4933_s2 + $0x160] sm:$0xff] }
  0x7f   : > { %1598 = vmatpush1.msra.mxu1 %v2497_v55  ;;  %763 = vmatprep.mubr.f32.mxu0 %v3338_v9  ;;  %v358_v55 = vrot.slane %v3429_v11, 7 }
  0x80   : > { %1173 = vmatprep.mubr.f32.mxu1 %v3154_v46  ;;  %1599 = vmatprep.subr.mxu1 %v5030_v24  ;;  %v3908_v46 = vsel %vm383_vm2, %v373_v5, %v357_v0 }
  0x81   : > { %2827 = vmatpush3.msra.mxu0 %v592_v15  ;;  %1600 = vmatpush1.msra.mxu1 %v2496_v22  ;;  %5058 = vst [vmem:[#allocation44_spill] sm:$0xff] %v3908_v46  ;;  %v3927_v15 = vsel %vm383_vm2, %v357_v0, %v373_v5  ;;  %v374_v22 = vrot.slane %v3437_v16, 7  ;;  %v2493_v5 = vld [vmem:[%s4933_s2 + $0x348] sm:$0xff] }
  0x82   : > { %764 = vmatmul.mubr.f32.gmra.mxu0 %v3890_v45  ;;  %1174 = vmatmul.mubr.f32.gmra.mxu1 %v3610_v4  ;;  %v590_v4 = vld [vmem:[%s4933_s2 + $0x158] sm:$0xff] }
  0x83   : > { %768 = vmatprep.mubr.f32.mxu0 %v3367_v27  ;;  %1178 = vmatprep.mubr.f32.mxu1 %v3178_v59  ;;  %v3944_v0 = vsel %vm383_vm2, %v374_v22, %v358_v55 }
  0x84   : > { %1601 = vmatprep.subr.mxu1 %v5030_v24  ;;  %2828 = vmatprep.subr.mxu0 %v591_v26 }
  0x85   : > { %1602 = vmatpush1.msra.mxu1 %v2495_v37  ;;  %2829 = vmatpush3.msra.mxu0 %v591_v26  ;;  %v589_v26 = vld [vmem:[%s4933_s2 + $0x150] sm:$0xff]  ;;  %v588_v37 = vld [vmem:[%s4933_s2 + $0x148] sm:$0xff] }
  0x86   : > { %2373 = vmatmul.mubr.msk.f32.gmra.mxu0 %vm2596_vm3, %v3908_v46  ;;  %2427 = vmatmul.mubr.msk.f32.gmra.mxu1 %vm2596_vm3, %v3646_v10 }
  0x87   : > { %773 = vmatprep.mubr.f32.mxu0 %v3384_v40  ;;  %1183 = vmatprep.mubr.f32.mxu1 %v3180_v60 }
  0x88   : > { %1603 = vmatprep.subr.mxu1 %v5030_v24  ;;  %2830 = vmatprep.subr.mxu0 %v590_v4 }
  0x89   : > { %1604 = vmatpush1.msra.mxu1 %v2494_v36  ;;  %2831 = vmatpush3.msra.mxu0 %v590_v4  ;;  %v2492_v4 = vld [vmem:[%s4933_s2 + $0x340] sm:$0xff]  ;;  %v3963_v36 = vsel %vm383_vm2, %v358_v55, %v374_v22  ;;  %v2491_v55 = vld [vmem:[%s4933_s2 + $0x338] sm:$0xff] }
  0x8a   : > { %774 = vmatmul.mubr.f32.gmra.mxu0 %v3927_v15  ;;  %1184 = vmatmul.mubr.f32.gmra.mxu1 %v3680_v47 }
  0x8b   : > { %778 = vmatprep.mubr.f32.mxu0 %v3429_v11  ;;  %1188 = vmatprep.mubr.f32.mxu1 %v3215_v13 }
  0x8c   : > { %1605 = vmatprep.subr.mxu1 %v5030_v24  ;;  %2832 = vmatprep.subr.mxu0 %v589_v26 }
  0x8d   : > { %1606 = vmatpush1.msra.mxu1 %v2493_v5  ;;  %2833 = vmatpush3.msra.mxu0 %v589_v26  ;;  %v359_v26 = vrot.slane %v3473_v42, 7  ;;  %v375_v5 = vrot.slane %v3475_v44, 7 }
  0x8e   : > { %2375 = vmatmul.mubr.msk.f32.gmra.mxu0 %vm2596_vm3, %v3944_v0  ;;  %2429 = vmatmul.mubr.msk.f32.gmra.mxu1 %vm2596_vm3, %v3716_v38 }
  0x8f   : > { %783 = vmatprep.mubr.f32.mxu0 %v3437_v16  ;;  %1193 = vmatprep.mubr.f32.mxu1 %v3217_v14  ;;  %v3980_v22 = vsel %vm383_vm2, %v375_v5, %v359_v26 }
  0x90   : > { %1607 = vmatprep.subr.mxu1 %v5030_v24  ;;  %2834 = vmatprep.subr.mxu0 %v588_v37  ;;  %5059 = vst [vmem:[#allocation45_spill] sm:$0xff] %v3980_v22 }
  0x91   : > { %1608 = vmatpush1.msra.mxu1 %v2492_v4  ;;  %2835 = vmatpush3.msra.mxu0 %v588_v37  ;;  %v586_v37 = vld [vmem:[%s4933_s2 + $0x138] sm:$0xff]  ;;  %v2490_v4 = vld [vmem:[%s4933_s2 + $0x330] sm:$0xff] }
  0x92   : > { %784 = vmatmul.mubr.f32.gmra.mxu0 %v3963_v36  ;;  %1194 = vmatmul.mubr.f32.gmra.mxu1 %v3752_v57 }
  0x93   : > { %788 = vmatprep.mubr.f32.mxu0 %v3473_v42  ;;  %1198 = vmatprep.mubr.f32.mxu1 %v3255_v31 }
  0x94   : > { %1609 = vmatprep.subr.mxu1 %v5030_v24  ;;  %2836 = vmatprep.subr.mxu0 %v587_v48 }
  0x95   : > { %1610 = vmatpush1.msra.mxu1 %v2491_v55  ;;  %2837 = vmatpush3.msra.mxu0 %v587_v48  ;;  %v3999_v48 = vsel %vm383_vm2, %v359_v26, %v375_v5  ;;  %v360_v55 = vrot.slane %v3510_v20, 7  ;;  %v2489_v26 = vld [vmem:[%s4933_s2 + $0x328] sm:$0xff] }
  0x96   : > { %2377 = vmatmul.mubr.msk.f32.gmra.mxu0 %vm2596_vm3, %v3980_v22  ;;  %2431 = vmatmul.mubr.msk.f32.gmra.mxu1 %vm2596_vm3, %v3782_v51  ;;  %v585_v51 = vld [vmem:[%s4933_s2 + $0x130] sm:$0xff] }
  0x97   : > { %793 = vmatprep.mubr.f32.mxu0 %v3475_v44  ;;  %1203 = vmatprep.mubr.f32.mxu1 %v3257_v32  ;;  %v4016_v5 = vsel %vm383_vm2, %v376_v53, %v360_v55 }
  0x98   : > { %1611 = vmatprep.subr.mxu1 %v5030_v24  ;;  %2838 = vmatprep.subr.mxu0 %v586_v37  ;;  %5060 = vst [vmem:[#allocation46_spill] sm:$0xff] %v4016_v5 }
  0x99   : > { %1612 = vmatpush1.msra.mxu1 %v2490_v4  ;;  %2839 = vmatpush3.msra.mxu0 %v586_v37  ;;  %v584_v37 = vld [vmem:[%s4933_s2 + $0x128] sm:$0xff]  ;;  %v2488_v4 = vld [vmem:[%s4933_s2 + $0x320] sm:$0xff] }
  0x9a   : > { %794 = vmatmul.mubr.f32.gmra.mxu0 %v3999_v48  ;;  %1204 = vmatmul.mubr.f32.gmra.mxu1 %v3810_v19 }
  0x9b   : > { %798 = vmatprep.mubr.f32.mxu0 %v3510_v20  ;;  %1208 = vmatprep.mubr.f32.mxu1 %v3295_v49  ;;  %v377_v49 = vrot.slane %v3551_v2, 7 }
  0x9c   : > { %1613 = vmatprep.subr.mxu1 %v5030_v24  ;;  %2840 = vmatprep.subr.mxu0 %v585_v51 }
  0x9d   : > { %1614 = vmatpush1.msra.mxu1 %v2489_v26  ;;  %2841 = vmatpush3.msra.mxu0 %v585_v51  ;;  %v4035_v51 = vsel %vm383_vm2, %v360_v55, %v376_v53  ;;  %v361_v26 = vrot.slane %v3540_v54, 7  ;;  %v2487_v53 = vld [vmem:[%s4933_s2 + $0x318] sm:$0xff] }
  0x9e   : > { %2379 = vmatmul.mubr.msk.f32.gmra.mxu0 %vm2596_vm3, %v4016_v5  ;;  %2433 = vmatmul.mubr.msk.f32.gmra.mxu1 %vm2596_vm3, %v3835_v1  ;;  %v583_v1 = vld [vmem:[%s4933_s2 + $0x120] sm:$0xff] }
  0x9f   : > { %803 = vmatprep.mubr.f32.mxu0 %v3512_v21  ;;  %1213 = vmatprep.mubr.f32.mxu1 %v3297_v50  ;;  %v4052_v55 = vsel %vm383_vm2, %v377_v49, %v361_v26 }
  0xa0   : > { %1615 = vmatprep.subr.mxu1 %v5030_v24  ;;  %2842 = vmatprep.subr.mxu0 %v584_v37 }
  0xa1   : > { %1616 = vmatpush1.msra.mxu1 %v2488_v4  ;;  %2843 = vmatpush3.msra.mxu0 %v584_v37  ;;  %v582_v37 = vld [vmem:[%s4933_s2 + $0x118] sm:$0xff]  ;;  %v2486_v4 = vld [vmem:[%s4933_s2 + $0x310] sm:$0xff] }
  0xa2   : > { %804 = vmatmul.mubr.f32.gmra.mxu0 %v4035_v51  ;;  %1214 = vmatmul.mubr.f32.gmra.mxu1 %v3854_v29 }
  0xa3   : > { %808 = vmatprep.mubr.f32.mxu0 %v3540_v54  ;;  %1218 = vmatprep.mubr.f32.mxu1 %v3329_v3  ;;  %v378_v3 = vrot.slane %v3594_v18, 7 }
  0xa4   : > { %1617 = vmatprep.subr.mxu1 %v5030_v24  ;;  %2844 = vmatprep.subr.mxu0 %v583_v1 }
  0xa5   : > { %1618 = vmatpush1.msra.mxu1 %v2487_v53  ;;  %2845 = vmatpush3.msra.mxu0 %v583_v1  ;;  %v4071_v1 = vsel %vm383_vm2, %v361_v26, %v377_v49  ;;  %v362_v53 = vrot.slane %v3592_v56, 7  ;;  %v2485_v49 = vld [vmem:[%s4933_s2 + $0x308] sm:$0xff] }
  0xa6   : > { %2381 = vmatmul.mubr.msk.f32.gmra.mxu0 %vm2596_vm3, %v4052_v55  ;;  %2435 = vmatmul.mubr.msk.f32.gmra.mxu1 %vm2596_vm3, %v3870_v28  ;;  %v581_v28 = vld [vmem:[%s4933_s2 + $0x110] sm:$0xff] }
  0xa7   : > { %813 = vmatprep.mubr.f32.mxu0 %v3551_v2  ;;  %1223 = vmatprep.mubr.f32.mxu1 %v3338_v9  ;;  %v4088_v26 = vsel %vm383_vm2, %v378_v3, %v362_v53 }
  0xa8   : > { %1619 = vmatprep.subr.mxu1 %v5030_v24  ;;  %2846 = vmatprep.subr.mxu0 %v582_v37  ;;  %5061 = vst [vmem:[#allocation47_spill] sm:$0xff] %v4088_v26 }
  0xa9   : > { %1620 = vmatpush1.msra.mxu1 %v2486_v4  ;;  %2847 = vmatpush3.msra.mxu0 %v582_v37  ;;  %v580_v37 = vld [vmem:[%s4933_s2 + $0x108] sm:$0xff]  ;;  %v2484_v4 = vld [vmem:[%s4933_s2 + $0x300] sm:$0xff] }
  0xaa   : > { %814 = vmatmul.mubr.f32.gmra.mxu0 %v4071_v1  ;;  %1224 = vmatmul.mubr.f32.gmra.mxu1 %v3890_v45 }
  0xab   : > { %818 = vmatprep.mubr.f32.mxu0 %v3592_v56  ;;  %1228 = vmatprep.mubr.f32.mxu1 %v3367_v27  ;;  %v379_v27 = vrot.slane %v3635_v33, 7 }
  0xac   : > { %1621 = vmatprep.subr.mxu1 %v5030_v24  ;;  %2848 = vmatprep.subr.mxu0 %v581_v28 }
  0xad   : > { %1622 = vmatpush1.msra.mxu1 %v2485_v49  ;;  %2849 = vmatpush3.msra.mxu0 %v581_v28  ;;  %v4107_v28 = vsel %vm383_vm2, %v362_v53, %v378_v3  ;;  %v363_v49 = vrot.slane %v3633_v52, 7  ;;  %v2515_v3 = vld [vmem:[%s4933_s2 + $0x3f8] sm:$0xff] }
  0xae   : > { %2383 = vmatmul.mubr.msk.f32.gmra.mxu0 %vm2596_vm3, %v4088_v26  ;;  %2437 = vmatmul.mubr.msk.f32.gmra.mxu1 %vm2596_vm3, %v3908_v46  ;;  %5062 = vst [vmem:[#allocation48_spill] sm:$0xff] %v4107_v28  ;;  %v579_v46 = vld [vmem:[%s4933_s2 + $0x100] sm:$0xff] }
  0xaf   : > { %823 = vmatprep.mubr.f32.mxu0 %v3594_v18  ;;  %1233 = vmatprep.mubr.f32.mxu1 %v3384_v40  ;;  %v4124_v53 = vsel %vm383_vm2, %v379_v27, %v363_v49 }
  0xb0   : > { %1623 = vmatprep.subr.mxu1 %v5030_v24  ;;  %2850 = vmatprep.subr.mxu0 %v580_v37  ;;  %5063 = vst [vmem:[#allocation49_spill] sm:$0xff] %v4124_v53 }
  0xb1   : > { %1624 = vmatpush1.msra.mxu1 %v2484_v4  ;;  %2851 = vmatpush3.msra.mxu0 %v580_v37  ;;  %v4130_v37 = vld [vmem:[%s4933_s2 + $0x478] sm:$0xff]  ;;  %v2514_v4 = vld [vmem:[%s4933_s2 + $0x3f0] sm:$0xff] }
  0xb2   : > { %824 = vmatmul.mubr.f32.gmra.mxu0 %v4107_v28  ;;  %1234 = vmatmul.mubr.f32.gmra.mxu1 %v3927_v15 }
  0xb3   : > { %828 = vmatprep.mubr.f32.mxu0 %v3633_v52  ;;  %1238 = vmatprep.mubr.f32.mxu1 %v3429_v11  ;;  %v380_v11 = vrot.slane %v3660_v34, 7 }
  0xb4   : > { %1625 = vmatprep.subr.mxu1 %v5030_v24  ;;  %2852 = vmatprep.subr.mxu0 %v579_v46 }
  0xb5   : > { %1626 = vmatpush2.msra.mxu1 %v2515_v3  ;;  %2853 = vmatpush3.msra.mxu0 %v579_v46  ;;  %v4145_v46 = vsel %vm383_vm2, %v363_v49, %v379_v27  ;;  %v364_v3 = vrot.slane %v3658_v17, 7  ;;  %v2512_v49 = vld [vmem:[%s4933_s2 + $0x3e0] sm:$0xff] }
  0xb6   : > { %2385 = vmatmul.mubr.msk.f32.gmra.mxu0 %vm2596_vm3, %v4124_v53  ;;  %2439 = vmatmul.mubr.msk.f32.gmra.mxu1 %vm2596_vm3, %v3944_v0  ;;  %5064 = vst [vmem:[#allocation50_spill] sm:$0xff] %v4145_v46 }
  0xb7   : > { %833 = vmatprep.mubr.f32.mxu0 %v3635_v33  ;;  %1243 = vmatprep.mubr.f32.mxu1 %v3437_v16  ;;  %v2513_v16 = vld [vmem:[%s4933_s2 + $0x3e8] sm:$0xff]  ;;  %v4160_v27 = vsel %vm383_vm2, %v380_v11, %v364_v3 }
  0xb8   : > { %1627 = vmatprep.subr.mxu1 %v5030_v24  ;;  %2902 = vmatprep.subr.mxu0 %v4130_v37  ;;  %5065 = vst [vmem:[#allocation51_spill] sm:$0xff] %v4160_v27 }
  0xb9   : > { %1628 = vmatpush2.msra.mxu1 %v2514_v4  ;;  %v4176_v4 = vsel %vm383_vm2, %v364_v3, %v380_v11  ;;  %v2510_v3 = vld [vmem:[%s4933_s2 + $0x3d0] sm:$0xff] }
  0xba   : > { %834 = vmatmul.mubr.f32.gmra.mxu0 %v4145_v46  ;;  %1244 = vmatmul.mubr.f32.gmra.mxu1 %v3963_v36  ;;  %5066 = vst [vmem:[#allocation52_spill] sm:$0xff] %v4176_v4 }
  0xbb   : > { %838 = vmatprep.mubr.f32.mxu0 %v3658_v17  ;;  %1248 = vmatprep.mubr.f32.mxu1 %v3473_v42  ;;  %v381_v42 = vrot.slane %v3705_v63, 7 }
  0xbc   : > { %1629 = vmatprep.subr.mxu1 %v5030_v24 }
  0xbd   : > { %1630 = vmatpush2.msra.mxu1 %v2513_v16  ;;  %v365_v16 = vrot.slane %v3702_v58, 7 }
  0xbe   : > { %2387 = vmatmul.mubr.msk.f32.gmra.mxu0 %vm2596_vm3, %v4160_v27  ;;  %2441 = vmatmul.mubr.msk.f32.gmra.mxu1 %vm2596_vm3, %v3980_v22  ;;  %v2511_v22 = vld [vmem:[%s4933_s2 + $0x3d8] sm:$0xff] }
  0xbf   : > { %843 = vmatprep.mubr.f32.mxu0 %v3660_v34  ;;  %1253 = vmatprep.mubr.f32.mxu1 %v3475_v44  ;;  %v4190_v11 = vsel %vm383_vm2, %v381_v42, %v365_v16 }
  0xc0   : > { %1631 = vmatprep.subr.mxu1 %v5030_v24  ;;  %5067 = vst [vmem:[#allocation53_spill] sm:$0xff] %v4190_v11 }
  0xc1   : > { %1632 = vmatpush2.msra.mxu1 %v2512_v49  ;;  %v4206_v49 = vsel %vm383_vm2, %v365_v16, %v381_v42  ;;  %v2508_v16 = vld [vmem:[%s4933_s2 + $0x3c0] sm:$0xff] }
  0xc2   : > { %844 = vmatmul.mubr.f32.gmra.mxu0 %v4176_v4  ;;  %1254 = vmatmul.mubr.f32.gmra.mxu1 %v3999_v48  ;;  %5068 = vst [vmem:[#allocation54_spill] sm:$0xff] %v4206_v49 }
  0xc3   : > { %848 = vmatprep.mubr.f32.mxu0 %v3702_v58  ;;  %1258 = vmatprep.mubr.f32.mxu1 %v3510_v20  ;;  %v382_v20 = vrot.slane %v3741_v39, 7 }
  0xc4   : > { %1633 = vmatprep.subr.mxu1 %v5030_v24 }
  0xc5   : > { %1634 = vmatpush2.msra.mxu1 %v2511_v22  ;;  %v366_v22 = vrot.slane %v3738_v35, 7 }
  0xc6   : > { %2389 = vmatmul.mubr.msk.f32.gmra.mxu0 %vm2596_vm3, %v4190_v11  ;;  %2443 = vmatmul.mubr.msk.f32.gmra.mxu1 %vm2596_vm3, %v4016_v5  ;;  %v2509_v5 = vld [vmem:[%s4933_s2 + $0x3c8] sm:$0xff] }
  0xc7   : > { %853 = vmatprep.mubr.f32.mxu0 %v3705_v63  ;;  %1263 = vmatprep.mubr.f32.mxu1 %v3512_v21  ;;  %v4220_v42 = vsel %vm383_vm2, %v382_v20, %v366_v22 }
  0xc8   : > { %1635 = vmatprep.subr.mxu1 %v5030_v24  ;;  %5069 = vst [vmem:[#allocation55_spill] sm:$0xff] %v4220_v42 }
  0xc9   : > { %1636 = vmatpush2.msra.mxu1 %v2510_v3  ;;  %v4236_v3 = vsel %vm383_vm2, %v366_v22, %v382_v20  ;;  %v2506_v20 = vld [vmem:[%s4933_s2 + $0x3b0] sm:$0xff] }
  0xca   : > { %854 = vmatmul.mubr.f32.gmra.mxu0 %v4206_v49  ;;  %1264 = vmatmul.mubr.f32.gmra.mxu1 %v4035_v51  ;;  %5070 = vst [vmem:[#allocation56_spill] sm:$0xff] %v4236_v3  ;;  %v2530_v22 = vld [vmem:[%s4933_s2 + $0x470] sm:$0xff] }
  0xcb   : > { %858 = vmatprep.mubr.f32.mxu0 %v3738_v35  ;;  %1268 = vmatprep.mubr.f32.mxu1 %v3540_v54 }
  0xcc   : > { %1637 = vmatprep.subr.mxu1 %v5030_v24 }
  0xcd   : > { %1638 = vmatpush2.msra.mxu1 %v2509_v5  ;;  %v2507_v5 = vld [vmem:[%s4933_s2 + $0x3b8] sm:$0xff] }
  0xce   : > { %2391 = vmatmul.mubr.msk.f32.gmra.mxu0 %vm2596_vm3, %v4220_v42  ;;  %2445 = vmatmul.mubr.msk.f32.gmra.mxu1 %vm2596_vm3, %v4052_v55  ;;  %v5075_v42 = vld [vmem:[#allocation11_spill] sm:$0xff] }
  0xcf   : > { %863 = vmatprep.mubr.f32.mxu0 %v3741_v39  ;;  %1273 = vmatprep.mubr.f32.mxu1 %v3551_v2 }
  0xd0   : > { %1639 = vmatprep.subr.mxu1 %v5030_v24 }
  0xd1   : > { %1640 = vmatpush2.msra.mxu1 %v2508_v16  ;;  %v2505_v16 = vld [vmem:[%s4933_s2 + $0x3a8] sm:$0xff] }
  0xd2   : > { %864 = vmatmul.mubr.f32.gmra.mxu0 %v4236_v3  ;;  %1274 = vmatmul.mubr.f32.gmra.mxu1 %v4071_v1  ;;  %v2500_v3 = vld [vmem:[%s4933_s2 + $0x380] sm:$0xff] }
  0xd3   : > { %1278 = vmatprep.mubr.f32.mxu1 %v3592_v56  ;;  %2854 = vmatprep.mubr.f32.mxu0 %v5030_v24 }
  0xd4   : > { %1641 = vmatprep.subr.mxu1 %v5030_v24 }
  0xd5   : > { %1642 = vmatpush2.msra.mxu1 %v2507_v5  ;;  %v2503_v5 = vld [vmem:[%s4933_s2 + $0x398] sm:$0xff] }
  0xd6   : > { %2447 = vmatmul.mubr.msk.f32.gmra.mxu1 %vm2596_vm3, %v4088_v26  ;;  %2855 = vmatmul.mubr.f32.vlgmr.msra.gmra.mxu0 %v5030_v24  ;;  %v5094_v26 = vld [vmem:[#allocation42_spill] sm:$0xff] }
  0xd7   : > { %1283 = vmatprep.mubr.f32.mxu1 %v3594_v18  ;;  %2857 = vmatprep.mubr.f32.mxu0 %v3203_v6  ;;  %v2529_v6 = vld [vmem:[%s4933_s2 + $0x468] sm:$0xff] }
  0xd8   : > { %1643 = vmatprep.subr.mxu1 %v5030_v24  ;;  %2903 = vmatpush3.msra.mxu0 %v4130_v37  ;;  %v2528_v37 = vld [vmem:[%s4933_s2 + $0x460] sm:$0xff] }
  0xd9   : > { %1644 = vmatpush2.msra.mxu1 %v2506_v20  ;;  %2904 = vmatprep.subr.mxu0 %v2530_v22  ;;  %v2527_v20 = vld [vmem:[%s4933_s2 + $0x458] sm:$0xff] }
  0xda   : > { %1284 = vmatmul.mubr.f32.gmra.mxu1 %v4107_v28  ;;  %2858 = vmatmul.mubr.msk.f32.gmra.mxu0 %vm2597_vm1, %v3213_v12  ;;  %v2504_v12 = vld [vmem:[%s4933_s2 + $0x3a0] sm:$0xff] }
  0xdb   : > { %1288 = vmatprep.mubr.f32.mxu1 %v3633_v52  ;;  %2860 = vmatprep.mubr.f32.mxu0 %v3240_v23  ;;  %v5089_v52 = vld [vmem:[#allocation33_spill] sm:$0xff]  ;;  %v5090_v28 = vld [vmem:[#allocation2_spill] sm:$0xff] }
  0xdc   : > { %1645 = vmatprep.subr.mxu1 %v5030_v24  ;;  %2905 = vmatpush3.msra.mxu0 %v2530_v22  ;;  %v2502_v22 = vld [vmem:[%s4933_s2 + $0x390] sm:$0xff] }
  0xdd   : > { %1646 = vmatpush2.msra.mxu1 %v2505_v16  ;;  %2906 = vmatprep.subr.mxu0 %v2529_v6  ;;  %v2526_v16 = vld [vmem:[%s4933_s2 + $0x450] sm:$0xff] }
  0xde   : > { %2449 = vmatmul.mubr.msk.f32.gmra.mxu1 %vm2596_vm3, %v4124_v53  ;;  %2861 = vmatmul.mubr.msk.f32.gmra.mxu0 %vm2597_vm1, %v3253_v30  ;;  %v5087_v53 = vld [vmem:[#allocation29_spill] sm:$0xff] }
  0xdf   : > { %1293 = vmatprep.mubr.f32.mxu1 %v3635_v33  ;;  %2863 = vmatprep.mubr.f32.mxu0 %v3281_v41  ;;  %v2518_v33 = vld [vmem:[%s4933_s2 + $0x410] sm:$0xff] }
  0xe0   : > { %1647 = vmatprep.subr.mxu1 %v5030_v24  ;;  %2907 = vmatpush3.msra.mxu0 %v2529_v6  ;;  %v5071_v6 = vld [vmem:[#allocation5_spill] sm:$0xff] }
  0xe1   : > { %1648 = vmatpush2.msra.mxu1 %v2504_v12  ;;  %2908 = vmatprep.subr.mxu0 %v2528_v37  ;;  %v2501_v12 = vld [vmem:[%s4933_s2 + $0x388] sm:$0xff] }
  0xe2   : > { %1294 = vmatmul.mubr.f32.gmra.mxu1 %v4145_v46  ;;  %2864 = vmatmul.mubr.msk.f32.gmra.mxu0 %vm2597_vm1, %v3288_v43  ;;  %v5084_v46 = vld [vmem:[#allocation27_spill] sm:$0xff] }
  0xe3   : > { %1298 = vmatprep.mubr.f32.mxu1 %v3658_v17  ;;  %2866 = vmatprep.mubr.f32.mxu0 %v3321_v61  ;;  %v5082_v17 = vld [vmem:[#allocation21_spill] sm:$0xff] }
  0xe4   : > { %1649 = vmatprep.subr.mxu1 %v5030_v24  ;;  %2909 = vmatpush3.msra.mxu0 %v2528_v37  ;;  %v2525_v37 = vld [vmem:[%s4933_s2 + $0x448] sm:$0xff] }
  0xe5   : > { %1650 = vmatpush2.msra.mxu1 %v2503_v5  ;;  %2910 = vmatprep.subr.mxu0 %v2527_v20  ;;  %v5072_v5 = vld [vmem:[#allocation6_spill] sm:$0xff] }
  0xe6   : > { %2451 = vmatmul.mubr.msk.f32.gmra.mxu1 %vm2596_vm3, %v4160_v27  ;;  %2867 = vmatmul.mubr.msk.f32.gmra.mxu0 %vm2597_vm1, %v3336_v7  ;;  %v2520_v27 = vld [vmem:[%s4933_s2 + $0x420] sm:$0xff] }
  0xe7   : > { %1303 = vmatprep.mubr.f32.mxu1 %v3660_v34  ;;  %2869 = vmatprep.mubr.f32.mxu0 %v3364_v25  ;;  %v5080_v34 = vld [vmem:[#allocation18_spill] sm:$0xff] }
  0xe8   : > { %1651 = vmatprep.subr.mxu1 %v5030_v24  ;;  %2911 = vmatpush3.msra.mxu0 %v2527_v20 }
  0xe9   : > { %1652 = vmatpush2.msra.mxu1 %v2502_v22  ;;  %2912 = vmatprep.subr.mxu0 %v2526_v16  ;;  %v5073_v22 = vld [vmem:[#allocation8_spill] sm:$0xff] }
  0xea   : > { %1304 = vmatmul.mubr.f32.gmra.mxu1 %v4176_v4  ;;  %2870 = vmatmul.mubr.msk.f32.gmra.mxu0 %vm2597_vm1, %v5071_v6  ;;  %v5079_v4 = vld [vmem:[#allocation17_spill] sm:$0xff] }
  0xeb   : > { %1308 = vmatprep.mubr.f32.mxu1 %v3702_v58  ;;  %2872 = vmatprep.mubr.f32.mxu0 %v5072_v5 }
  0xec   : > { %1653 = vmatprep.subr.mxu1 %v5030_v24  ;;  %2913 = vmatpush3.msra.mxu0 %v2526_v16  ;;  %v2524_v16 = vld [vmem:[%s4933_s2 + $0x440] sm:$0xff] }
  0xed   : > { %1654 = vmatpush2.msra.mxu1 %v2501_v12  ;;  %v4330_v20 = vpop.f32.mrf.mxu1  ;;  %2914 = vmatprep.subr.mxu0 %v2525_v37  ;;  %v5074_v12 = vld [vmem:[#allocation10_spill] sm:$0xff] }
  0xee   : > { %2453 = vmatmul.mubr.msk.f32.gmra.mxu1 %vm2596_vm3, %v4190_v11  ;;  %2873 = vmatmul.mubr.msk.f32.gmra.mxu0 %vm2597_vm1, %v5073_v22  ;;  %v5076_v11 = vld [vmem:[#allocation13_spill] sm:$0xff] }
  0xef   : > { %1313 = vmatprep.mubr.f32.mxu1 %v3705_v63  ;;  %2875 = vmatprep.mubr.f32.mxu0 %v5074_v12  ;;  %v4346_v39 = vpop.f32.mrf.mxu1  ;;  %v2523_v63 = vld [vmem:[%s4933_s2 + $0x438] sm:$0xff] }
  0xf0   : > { %1655 = vmatprep.subr.mxu1 %v5030_v24  ;;  %2915 = vmatpush3.msra.mxu0 %v2525_v37  ;;  %v2522_v37 = vld [vmem:[%s4933_s2 + $0x430] sm:$0xff] }
  0xf1   : > { %1656 = vmatpush2.msra.mxu1 %v2500_v3  ;;  %2916 = vmatprep.subr.mxu0 %v2524_v16  ;;  %v5077_v3 = vld [vmem:[#allocation15_spill] sm:$0xff] }
  0xf2   : > { %1314 = vmatmul.mubr.f32.gmra.mxu1 %v4206_v49  ;;  %2876 = vmatmul.mubr.msk.f32.gmra.mxu0 %vm2597_vm1, %v5075_v42  ;;  %v4353_v35 = vpop.f32.mrf.mxu1  ;;  %v5078_v49 = vld [vmem:[#allocation16_spill] sm:$0xff] }
  0xf3   : > { %2878 = vmatprep.mubr.f32.mxu0 %v5076_v11  ;;  %1657 = vmatprep.mubr.f32.mxu1 %v3178_v59 }
  0xf4   : > { %v4360_v58 = vpop.f32.mrf.mxu1  ;;  %2917 = vmatpush3.msra.mxu0 %v2524_v16 }
  0xf5   : > { %2918 = vmatprep.subr.mxu0 %v2523_v63 }
  0xf6   : > { %2879 = vmatmul.mubr.msk.f32.gmra.mxu0 %vm2597_vm1, %v5077_v3  ;;  %2533 = vmatmul.mubr.msk.f32.vlgmr.msra.gmra.mxu1 %vm2596_vm3, %v3646_v10  ;;  %v2521_v10 = vld [vmem:[%s4933_s2 + $0x428] sm:$0xff] }
  0xf7   : > { %2881 = vmatprep.mubr.f32.mxu0 %v5078_v49  ;;  %1662 = vmatprep.mubr.f32.mxu1 %v3180_v60  ;;  %v4373_v59 = vpop.f32.mrf.mxu1 }
  0xf8   : > { %2919 = vmatpush3.msra.mxu0 %v2523_v63  ;;  %v5081_v63 = vld [vmem:[#allocation20_spill] sm:$0xff] }
  0xf9   : > { %v4375_v16 = vpop.f32.mrf.mxu1  ;;  %2920 = vmatprep.subr.mxu0 %v2522_v37 }
  0xfa   : > { %2882 = vmatmul.mubr.msk.f32.gmra.mxu0 %vm2597_vm1, %v5079_v4  ;;  %1663 = vmatmul.mubr.f32.gmra.mxu1 %v3680_v47 }
  0xfb   : > { %2884 = vmatprep.mubr.f32.mxu0 %v5080_v34  ;;  %1667 = vmatprep.mubr.f32.mxu1 %v3215_v13 }
  0xfc   : > { %v4386_v60 = vpop.f32.mrf.mxu1  ;;  %2921 = vmatpush3.msra.mxu0 %v2522_v37  ;;  %v5083_v37 = vld [vmem:[#allocation24_spill] sm:$0xff] }
  0xfd   : > { %2922 = vmatprep.subr.mxu0 %v2521_v10 }
  0xfe   : > { %2885 = vmatmul.mubr.msk.f32.gmra.mxu0 %vm2597_vm1, %v5081_v63  ;;  %2535 = vmatmul.mubr.msk.f32.gmra.mxu1 %vm2596_vm3, %v3716_v38  ;;  %v4394_v47 = vpop.f32.mrf.mxu1  ;;  %v2519_v38 = vld [vmem:[%s4933_s2 + $0x418] sm:$0xff] }
  0xff   : > { %2887 = vmatprep.mubr.f32.mxu0 %v5082_v17  ;;  %1672 = vmatprep.mubr.f32.mxu1 %v3217_v14  ;;  %v5085_v14 = vld [vmem:[#allocation28_spill] sm:$0xff] }
 0x100   : > { %2923 = vmatpush3.msra.mxu0 %v2521_v10  ;;  %v5086_v10 = vld [vmem:[#allocation38_spill] sm:$0xff] }
 0x101   : > { %v4401_v13 = vpop.f32.mrf.mxu1  ;;  %2924 = vmatprep.subr.mxu0 %v2520_v27 }
 0x102   : > { %2888 = vmatmul.mubr.msk.f32.gmra.mxu0 %vm2597_vm1, %v5083_v37  ;;  %1673 = vmatmul.mubr.f32.gmra.mxu1 %v3752_v57 }
 0x103   : > { %2890 = vmatprep.mubr.f32.mxu0 %v5084_v46  ;;  %1677 = vmatprep.mubr.f32.mxu1 %v3255_v31  ;;  %v4412_v24 = vpop.f32.mrf.mxu1 }
 0x104   : > { %2925 = vmatpush3.msra.mxu0 %v2520_v27  ;;  %v5088_v27 = vld [vmem:[#allocation32_spill] sm:$0xff] }
 0x105   : > { %2926 = vmatprep.subr.mxu0 %v2519_v38 }
 0x106   : > { %2891 = vmatmul.mubr.msk.f32.gmra.mxu0 %vm2597_vm1, %v5085_v14  ;;  %2537 = vmatmul.mubr.msk.f32.gmra.mxu1 %vm2596_vm3, %v5086_v10  ;;  %v4420_v57 = vpop.f32.mrf.mxu1  ;;  %v2517_v10 = vld [vmem:[%s4933_s2 + $0x408] sm:$0xff] }
 0x107   : > { %2893 = vmatprep.mubr.f32.mxu0 %v5087_v53  ;;  %1682 = vmatprep.mubr.f32.mxu1 %v3257_v32 }
 0x108   : > { %v4427_v31 = vpop.f32.mrf.mxu1  ;;  %2927 = vmatpush3.msra.mxu0 %v2519_v38  ;;  %v5093_v38 = vld [vmem:[#allocation36_spill] sm:$0xff] }
 0x109   : > { %2928 = vmatprep.subr.mxu0 %v2518_v33 }
 0x10a   : > { %2894 = vmatmul.mubr.msk.f32.gmra.mxu0 %vm2597_vm1, %v5088_v27  ;;  %1683 = vmatmul.mubr.f32.gmra.mxu1 %v3810_v19  ;;  %v2516_v19 = vld [vmem:[%s4933_s2 + $0x400] sm:$0xff] }
 0x10b   : > { %2896 = vmatprep.mubr.f32.mxu0 %v5089_v52  ;;  %1687 = vmatprep.mubr.f32.mxu1 %v5090_v28  ;;  %v4438_v18 = vpop.f32.mrf.mxu1  ;;  %v5095_v52 = vld [vmem:[#allocation37_spill] sm:$0xff]  ;;  %v5097_v28 = vld [vmem:[#allocation39_spill] sm:$0xff] }
 0x10c   : > { %5091 = vst [vmem:[#allocation5_spill] sm:$0xff] %v4438_v18  ;;  %2929 = vmatpush3.msra.mxu0 %v2518_v33 }
 0x10d   : > { %v4440_v32 = vpop.f32.mrf.mxu1  ;;  %2930 = vmatprep.subr.mxu0 %v2517_v10 }
 0x10e   : > { %5092 = vst [vmem:[#allocation6_spill] sm:$0xff] %v4440_v32  ;;  %2897 = vmatmul.mubr.msk.f32.gmra.mxu0 %vm2597_vm1, %v5093_v38  ;;  %2539 = vmatmul.mubr.msk.f32.gmra.mxu1 %vm2596_vm3, %v5094_v26  ;;  %v5098_v26 = vld [vmem:[#allocation3_spill] sm:$0xff] }
 0x10f   : > { %2899 = vmatprep.mubr.f32.mxu0 %v5095_v52  ;;  %1692 = vmatprep.mubr.f32.mxu1 %v3297_v50 }
 0x110   : > { %v4453_v33 = vpop.f32.mrf.mxu1  ;;  %2931 = vmatpush3.msra.mxu0 %v2517_v10  ;;  %v5099_v10 = vld [vmem:[#allocation43_spill] sm:$0xff] }
 0x111   : > { %5096 = vst [vmem:[#allocation8_spill] sm:$0xff] %v4453_v33  ;;  %2932 = vmatprep.subr.mxu0 %v2516_v19 }
 0x112   : > { %2900 = vmatmul.mubr.msk.f32.gmra.mxu0 %vm2597_vm1, %v5097_v28  ;;  %1693 = vmatmul.mubr.f32.gmra.mxu1 %v3854_v29  ;;  %v4459_v18 = vpop.f32.mrf.mxu1 }
 0x113   : > { %1697 = vmatprep.mubr.f32.mxu1 %v5098_v26  ;;  %2933 = vmatpush3.msra.mxu0 %v2516_v19 }
 0x114   : > { %2934 = vmatprep.mubr.f32.mxu0 %v3240_v23 }
 0x115   : > { %v710_v52 = vpop.f32.mrf.mxu0  ;;  %v4463_v32 = vpop.f32.mrf.mxu1 }
 0x116   : > { %v4466_v50 = vadd.f32 %v4346_v39, %v710_v52  ;;  %2541 = vmatmul.mubr.msk.f32.gmra.mxu1 %vm2596_vm3, %v5099_v10  ;;  %2935 = vmatmul.mubr.msk.f32.vlgmr.msra.gmra.mxu0 %vm2597_vm1, %v3253_v30  ;;  %v5100_v39 = vld [vmem:[#allocation4_spill] sm:$0xff] }
 0x117   : > { %v712_v29 = vpop.f32.mrf.mxu0  ;;  %v4474_v33 = vpop.f32.mrf.mxu1  ;;  %1702 = vmatprep.mubr.f32.mxu1 %v3338_v9  ;;  %2937 = vmatprep.mubr.f32.mxu0 %v3281_v41  ;;  %v5101_v10 = vld [vmem:[#allocation44_spill] sm:$0xff] }
 0x119   : > { %v715_v23 = vpop.f32.mrf.mxu0 }
 0x11a   : > { %v4479_v19 = vadd.f32 %v4330_v20, %v715_v23  ;;  %v4481_v52 = vpop.f32.mrf.mxu1  ;;  %1703 = vmatmul.mubr.f32.gmra.mxu1 %v3890_v45  ;;  %2938 = vmatmul.mubr.msk.f32.gmra.mxu0 %vm2597_vm1, %v3288_v43  ;;  %v5102_v23 = vld [vmem:[#allocation7_spill] sm:$0xff] }
 0x11b   : > { %v717_v30 = vpop.f32.mrf.mxu0  ;;  %1707 = vmatprep.mubr.f32.mxu1 %v5100_v39  ;;  %2940 = vmatprep.mubr.f32.mxu0 %v3321_v61 }
 0x11c   : > { %v4489_v9 = vpop.f32.mrf.mxu1 }
 0x11d   : > { %v720_v41 = vpop.f32.mrf.mxu0 }
 0x11e   : > { %v4492_v26 = vadd.f32 %v4360_v58, %v720_v41  ;;  %v4494_v20 = vpop.f32.mrf.mxu1  ;;  %2543 = vmatmul.mubr.msk.f32.gmra.mxu1 %vm2596_vm3, %v5101_v10  ;;  %2941 = vmatmul.mubr.msk.f32.gmra.mxu0 %vm2597_vm1, %v3336_v7 }
 0x11f   : > { %v722_v43 = vpop.f32.mrf.mxu0  ;;  %1712 = vmatprep.mubr.f32.mxu1 %v3384_v40  ;;  %2943 = vmatprep.mubr.f32.mxu0 %v3364_v25 }
 0x120   : > { %v4504_v61 = vpop.f32.mrf.mxu1 }
 0x121   : > { %v725_v45 = vpop.f32.mrf.mxu0 }
 0x122   : > { %v4507_v58 = vadd.f32 %v4353_v35, %v725_v45  ;;  %v4509_v29 = vpop.f32.mrf.mxu1  ;;  %1713 = vmatmul.mubr.f32.gmra.mxu1 %v3927_v15  ;;  %2944 = vmatmul.mubr.msk.f32.gmra.mxu0 %vm2597_vm1, %v5071_v6  ;;  %v5103_v6 = vld [vmem:[#allocation9_spill] sm:$0xff] }
 0x123   : > { %v727_v7 = vpop.f32.mrf.mxu0  ;;  %1717 = vmatprep.mubr.f32.mxu1 %v5102_v23  ;;  %2946 = vmatprep.mubr.f32.mxu0 %v5072_v5  ;;  %v5105_v45 = vld [vmem:[#allocation45_spill] sm:$0xff]  ;;  %v5106_v23 = vld [vmem:[#allocation14_spill] sm:$0xff] }
 0x124   : > { %v4517_v25 = vpop.f32.mrf.mxu1 }
 0x125   : > { %v730_v40 = vpop.f32.mrf.mxu0 }
 0x126   : > { %v4520_v30 = vadd.f32 %v4375_v16, %v730_v40  ;;  %v4522_v35 = vpop.f32.mrf.mxu1  ;;  %2545 = vmatmul.mubr.msk.f32.gmra.mxu1 %vm2596_vm3, %v3944_v0  ;;  %2947 = vmatmul.mubr.msk.f32.gmra.mxu0 %vm2597_vm1, %v5073_v22  ;;  %v5104_v22 = vld [vmem:[#allocation12_spill] sm:$0xff] }
 0x127   : > { %v732_v15 = vpop.f32.mrf.mxu0  ;;  %1722 = vmatprep.mubr.f32.mxu1 %v5103_v6  ;;  %2949 = vmatprep.mubr.f32.mxu0 %v5074_v12 }
 0x128   : > { %v4532_v5 = vpop.f32.mrf.mxu1  ;;  %v5107_v15 = vld [vmem:[#allocation46_spill] sm:$0xff] }
 0x129   : > { %v735_v39 = vpop.f32.mrf.mxu0 }
 0x12a   : > { %v4535_v16 = vadd.f32 %v4373_v59, %v735_v39  ;;  %v4537_v41 = vpop.f32.mrf.mxu1  ;;  %1723 = vmatmul.mubr.f32.gmra.mxu1 %v3963_v36  ;;  %2950 = vmatmul.mubr.msk.f32.gmra.mxu0 %vm2597_vm1, %v5075_v42 }
 0x12b   : > { %v737_v0 = vpop.f32.mrf.mxu0  ;;  %1727 = vmatprep.mubr.f32.mxu1 %v5104_v22  ;;  %2952 = vmatprep.mubr.f32.mxu0 %v5076_v11 }
 0x12c   : > { %v4545_v12 = vpop.f32.mrf.mxu1 }
 0x12d   : > { %v740_v10 = vpop.f32.mrf.mxu0 }
 0x12e   : > { %v4548_v43 = vadd.f32 %v4394_v47, %v740_v10  ;;  %v4550_v59 = vpop.f32.mrf.mxu1  ;;  %2547 = vmatmul.mubr.msk.f32.gmra.mxu1 %vm2596_vm3, %v5105_v45  ;;  %2953 = vmatmul.mubr.msk.f32.gmra.mxu0 %vm2597_vm1, %v5077_v3  ;;  %v5109_v10 = vld [vmem:[#allocation47_spill] sm:$0xff] }
 0x12f   : > { %v742_v36 = vpop.f32.mrf.mxu0  ;;  %1732 = vmatprep.mubr.f32.mxu1 %v3475_v44  ;;  %2955 = vmatprep.mubr.f32.mxu0 %v5078_v49 }
 0x130   : > { %v4560_v11 = vpop.f32.mrf.mxu1 }
 0x131   : > { %v745_v42 = vpop.f32.mrf.mxu0 }
 0x132   : > { %v4563_v47 = vadd.f32 %v4386_v60, %v745_v42  ;;  %v4565_v7 = vpop.f32.mrf.mxu1  ;;  %1733 = vmatmul.mubr.f32.gmra.mxu1 %v3999_v48  ;;  %2956 = vmatmul.mubr.msk.f32.gmra.mxu0 %vm2597_vm1, %v5079_v4 }
 0x133   : > { %v747_v3 = vpop.f32.mrf.mxu0  ;;  %1737 = vmatprep.mubr.f32.mxu1 %v5106_v23  ;;  %2958 = vmatprep.mubr.f32.mxu0 %v5080_v34  ;;  %v5113_v23 = vld [vmem:[#allocation48_spill] sm:$0xff] }
 0x134   : > { %v4573_v44 = vpop.f32.mrf.mxu1 }
 0x136   : > { %v750_v49 = vpop.f32.mrf.mxu0  ;;  %v1160_v40 = vpop.f32.mrf.mxu1  ;;  %2549 = vmatmul.mubr.msk.f32.gmra.mxu1 %vm2596_vm3, %v5107_v15  ;;  %2959 = vmatmul.mubr.msk.f32.gmra.mxu0 %vm2597_vm1, %v5081_v63  ;;  %v5116_v15 = vld [vmem:[#allocation40_spill] sm:$0xff] }
 0x137   : > { %v4582_v48 = vadd.f32 %v4412_v24, %v750_v49  ;;  %v4585_v4 = vadd.f32 %v1160_v40, %v4466_v50  ;;  %1742 = vmatprep.mubr.f32.mxu1 %v3512_v21  ;;  %2961 = vmatprep.mubr.f32.mxu0 %v5082_v17  ;;  %v5115_v40 = vld [vmem:[#allocation22_spill] sm:$0xff] }
 0x138   : > { %v752_v34 = vpop.f32.mrf.mxu0  ;;  %v1162_v60 = vpop.f32.mrf.mxu1 }
 0x13a   : > { %v755_v6 = vpop.f32.mrf.mxu0  ;;  %v1165_v39 = vpop.f32.mrf.mxu1  ;;  %1743 = vmatmul.mubr.f32.gmra.mxu1 %v4035_v51  ;;  %2962 = vmatmul.mubr.msk.f32.gmra.mxu0 %vm2597_vm1, %v5083_v37 }
 0x13b   : > { %v4594_v24 = vadd.f32 %v4401_v13, %v755_v6  ;;  %v4597_v63 = vadd.f32 %v1165_v39, %v4479_v19  ;;  %1747 = vmatprep.mubr.f32.mxu1 %v3540_v54  ;;  %2964 = vmatprep.mubr.f32.mxu0 %v5084_v46 }
 0x13c   : > { %v757_v21 = vpop.f32.mrf.mxu0  ;;  %v1167_v17 = vpop.f32.mrf.mxu1 }
 0x13d   : > { %v5117_v21 = vld [vmem:[#allocation49_spill] sm:$0xff] }
 0x13e   : > { %v760_v50 = vpop.f32.mrf.mxu0  ;;  %v1170_v0 = vpop.f32.mrf.mxu1  ;;  %2551 = vmatmul.mubr.msk.f32.gmra.mxu1 %vm2596_vm3, %v4052_v55  ;;  %2965 = vmatmul.mubr.msk.f32.gmra.mxu0 %vm2597_vm1, %v5085_v14  ;;  %v5118_v17 = vld [vmem:[#allocation41_spill] sm:$0xff] }
 0x13f   : > { %v4608_v51 = vadd.f32 %v4427_v31, %v760_v50  ;;  %v4611_v13 = vadd.f32 %v1170_v0, %v4492_v26  ;;  %1752 = vmatprep.mubr.f32.mxu1 %v3551_v2  ;;  %2967 = vmatprep.mubr.f32.mxu0 %v5087_v53  ;;  %v5108_v2 = vld [vmem:[#allocation33_spill] sm:$0xff]  ;;  %v5119_v50 = vld [vmem:[#allocation23_spill] sm:$0xff]  ;;  %v5120_v0 = vmov 0.0  }
 0x140   : > { %v762_v54 = vpop.f32.mrf.mxu0  ;;  %v1172_v46 = vpop.f32.mrf.mxu1 }
 0x142   : > { %v765_v37 = vpop.f32.mrf.mxu0  ;;  %v1175_v19 = vpop.f32.mrf.mxu1  ;;  %1753 = vmatmul.mubr.f32.gmra.mxu1 %v4071_v1  ;;  %2968 = vmatmul.mubr.msk.f32.gmra.mxu0 %vm2597_vm1, %v5088_v27  ;;  %v5110_v1 = vld [vmem:[#allocation6_spill] sm:$0xff] }
 0x143   : > { %v4620_v55 = vadd.f32 %v4420_v57, %v765_v37  ;;  %v4623_v14 = vadd.f32 %v1175_v19, %v4507_v58  ;;  %1757 = vmatprep.mubr.f32.mxu1 %v3592_v56  ;;  %2970 = vmatprep.mubr.f32.mxu0 %v5108_v2  ;;  %v5111_v56 = vld [vmem:[#allocation19_spill] sm:$0xff]  ;;  %v5112_v58 = vld [vmem:[#allocation37_spill] sm:$0xff]  ;;  %v5121_v2 = vld [vmem:[#allocation50_spill] sm:$0xff] }
 0x144   : > { %v767_v53 = vpop.f32.mrf.mxu0  ;;  %v1177_v31 = vpop.f32.mrf.mxu1 }
 0x145   : > { %v5122_v53 = vld [vmem:[#allocation25_spill] sm:$0xff] }
 0x146   : > { %v770_v26 = vpop.f32.mrf.mxu0  ;;  %v1180_v22 = vpop.f32.mrf.mxu1  ;;  %2553 = vmatmul.mubr.msk.f32.gmra.mxu1 %vm2596_vm3, %v5109_v10  ;;  %2971 = vmatmul.mubr.msk.f32.gmra.mxu0 %vm2597_vm1, %v5093_v38  ;;  %v5114_v38 = vld [vmem:[#allocation5_spill] sm:$0xff] }
 0x147   : > { %v4634_v57 = vadd.f32 %v5110_v1, %v770_v26  ;;  %v4637_v27 = vadd.f32 %v1180_v22, %v4520_v30  ;;  %1762 = vmatprep.mubr.f32.mxu1 %v5111_v56  ;;  %2973 = vmatprep.mubr.f32.mxu0 %v5112_v58  ;;  %v5123_v22 = vld [vmem:[#allocation51_spill] sm:$0xff]  ;;  %v5124_v56 = vld [vmem:[#allocation26_spill] sm:$0xff] }
 0x148   : > { %v772_v45 = vpop.f32.mrf.mxu0  ;;  %v1182_v36 = vpop.f32.mrf.mxu1 }
 0x14a   : > { %v775_v42 = vpop.f32.mrf.mxu0  ;;  %v1185_v3 = vpop.f32.mrf.mxu1  ;;  %1763 = vmatmul.mubr.f32.gmra.mxu1 %v5113_v23  ;;  %2974 = vmatmul.mubr.msk.f32.gmra.mxu0 %vm2597_vm1, %v5097_v28  ;;  %v5126_v23 = vld [vmem:[#allocation30_spill] sm:$0xff] }
 0x14b   : > { %v4646_v49 = vadd.f32 %v5114_v38, %v775_v42  ;;  %v4649_v30 = vadd.f32 %v1185_v3, %v4535_v16  ;;  %1767 = vmatprep.mubr.f32.mxu1 %v5115_v40  ;;  %2976 = vmatprep.mubr.f32.mxu0 %v5116_v15  ;;  %v5125_v42 = vld [vmem:[#allocation52_spill] sm:$0xff] }
 0x14c   : > { %v777_v34 = vpop.f32.mrf.mxu0  ;;  %v1187_v60 = vpop.f32.mrf.mxu1 }
 0x14d   : > { %v5127_v34 = vld [vmem:[#allocation53_spill] sm:$0xff]  ;;  %v5128_v60 = vld [vmem:[#allocation31_spill] sm:$0xff] }
 0x14e   : > { %v780_v6 = vpop.f32.mrf.mxu0  ;;  %v1190_v39 = vpop.f32.mrf.mxu1  ;;  %2555 = vmatmul.mubr.msk.f32.gmra.mxu1 %vm2596_vm3, %v5117_v21  ;;  %2977 = vmatmul.mubr.msk.f32.gmra.mxu0 %vm2597_vm1, %v5118_v17  ;;  %v5129_v17 = vld [vmem:[#allocation54_spill] sm:$0xff] }
 0x14f   : > { %v1006_v28 = vadd.f32 %v4459_v18, %v780_v6  ;;  %v4661_v16 = vadd.f32 %v1190_v39, %v4548_v43  ;;  %1772 = vmatprep.mubr.f32.mxu1 %v5119_v50  ;;  %2979 = vmatprep.mubr.f32.mxu0 %v5120_v0 }
 0x150   : > { %v782_v54 = vpop.f32.mrf.mxu0  ;;  %v1192_v46 = vpop.f32.mrf.mxu1 }
 0x151   : > { %v5130_v54 = vld [vmem:[#allocation34_spill] sm:$0xff] }
 0x152   : > { %v785_v37 = vpop.f32.mrf.mxu0  ;;  %v1195_v19 = vpop.f32.mrf.mxu1  ;;  %1773 = vmatmul.mubr.f32.gmra.mxu1 %v5121_v2  ;;  %2980 = vmatmul.mubr.f32.gmra.mxu0 %v5120_v0 }
 0x153   : > { %v4668_v62 = vadd.f32 %v1195_v19, %v4563_v47  ;;  %1777 = vmatprep.mubr.f32.mxu1 %v5122_v53 }
 0x154   : > { %v787_v18 = vpop.f32.mrf.mxu0  ;;  %v1197_v43 = vpop.f32.mrf.mxu1 }
 0x155   : > { %v5131_v18 = vld [vmem:[#allocation55_spill] sm:$0xff] }
 0x156   : > { %v790_v31 = vpop.f32.mrf.mxu0  ;;  %v1200_v26 = vpop.f32.mrf.mxu1  ;;  %2557 = vmatmul.mubr.msk.f32.gmra.mxu1 %vm2596_vm3, %v5123_v22  ;;  %v5132_v43 = vld [vmem:[#allocation35_spill] sm:$0xff] }
 0x157   : > { %v1016_v10 = vadd.f32 %v4474_v33, %v790_v31  ;;  %v4676_v1 = vadd.f32 %v1200_v26, %v4582_v48  ;;  %1782 = vmatprep.mubr.f32.mxu1 %v5124_v56  ;;  %v5133_v56 = vld [vmem:[#allocation56_spill] sm:$0xff] }
 0x158   : > { %v792_v58 = vpop.f32.mrf.mxu0  ;;  %v1202_v47 = vpop.f32.mrf.mxu1 }
 0x15a   : > { %v795_v45 = vpop.f32.mrf.mxu0  ;;  %v1205_v36 = vpop.f32.mrf.mxu1  ;;  %1783 = vmatmul.mubr.f32.gmra.mxu1 %v5125_v42 }
 0x15b   : > { %v4681_v3 = vadd.f32 %v1205_v36, %v4594_v24  ;;  %1787 = vmatprep.mubr.f32.mxu1 %v5126_v23 }
 0x15c   : > { %v797_v38 = vpop.f32.mrf.mxu0  ;;  %v1207_v40 = vpop.f32.mrf.mxu1 }
 0x15d   : > { %v5134_v40 = vld [vmem:[#allocation8_spill] sm:$0xff] }
 0x15e   : > { %v800_v15 = vpop.f32.mrf.mxu0  ;;  %v1210_v33 = vpop.f32.mrf.mxu1  ;;  %2559 = vmatmul.mubr.msk.f32.gmra.mxu1 %vm2596_vm3, %v5127_v34 }
 0x15f   : > { %v4688_v48 = vadd.f32 %v1210_v33, %v4608_v51  ;;  %1792 = vmatprep.mubr.f32.mxu1 %v5128_v60  ;;  %v1011_v33 = vadd.f32 %v5134_v40, %v785_v37 }
 0x160   : > { %v802_v6 = vpop.f32.mrf.mxu0  ;;  %v1212_v39 = vpop.f32.mrf.mxu1 }
 0x162   : > { %v805_v21 = vpop.f32.mrf.mxu0  ;;  %v1215_v24 = vpop.f32.mrf.mxu1  ;;  %1793 = vmatmul.mubr.f32.gmra.mxu1 %v5129_v17 }
 0x163   : > { %v4693_v50 = vadd.f32 %v1215_v24, %v4620_v55  ;;  %1797 = vmatprep.mubr.f32.mxu1 %v5130_v54 }
 0x164   : > { %v807_v46 = vpop.f32.mrf.mxu0  ;;  %v1217_v19 = vpop.f32.mrf.mxu1 }
 0x165   : > { %v1021_v19 = vadd.f32 %v4463_v32, %v795_v45 }
 0x166   : > { %v810_v2 = vpop.f32.mrf.mxu0  ;;  %v1220_v53 = vpop.f32.mrf.mxu1  ;;  %2561 = vmatmul.mubr.msk.f32.gmra.mxu1 %vm2596_vm3, %v5131_v18 }
 0x167   : > { %v4700_v51 = vadd.f32 %v1220_v53, %v4634_v57  ;;  %1802 = vmatprep.mubr.f32.mxu1 %v5132_v43  ;;  %v1036_v40 = vadd.f32 %v4504_v61, %v810_v2 }
 0x168   : > { %v812_v31 = vpop.f32.mrf.mxu0  ;;  %v1222_v26 = vpop.f32.mrf.mxu1 }
 0x16a   : > { %v815_v22 = vpop.f32.mrf.mxu0  ;;  %v1225_v55 = vpop.f32.mrf.mxu1  ;;  %1803 = vmatmul.mubr.f32.gmra.mxu1 %v5133_v56 }
 0x16b   : > { %v4705_v58 = vadd.f32 %v1225_v55, %v4646_v49  ;;  %1807 = vmatprep.mubr.f32.mxu1 %v5120_v0 }
 0x16c   : > { %v817_v47 = vpop.f32.mrf.mxu0  ;;  %v1227_v36 = vpop.f32.mrf.mxu1 }
 0x16e   : > { %v820_v8 = vpop.f32.mrf.mxu0  ;;  %v1230_v42 = vpop.f32.mrf.mxu1  ;;  %1808 = vmatmul.mubr.f32.gmra.mxu1 %v5120_v0 }
 0x16f   : > { %v4709_v57 = vadd.f32 %v1230_v42, %v1006_v28  ;;  %1812 = vmatprep.mubr.f32.mxu1 %v5120_v0 }
 0x170   : > { %v822_v23 = vpop.f32.mrf.mxu0  ;;  %v1232_v38 = vpop.f32.mrf.mxu1 }
 0x172   : > { %v825_v34 = vpop.f32.mrf.mxu0  ;;  %v1235_v60 = vpop.f32.mrf.mxu1  ;;  %1813 = vmatmul.mubr.f32.gmra.mxu1 %v5120_v0  ;;  %v1026_v0 = vadd.f32 %v4489_v9, %v800_v15 }
 0x173   : > { %v4714_v49 = vadd.f32 %v1235_v60, %v1011_v33 }
 0x174   : > { %v827_v6 = vpop.f32.mrf.mxu0  ;;  %v1237_v39 = vpop.f32.mrf.mxu1 }
 0x175   : > { %v1041_v39 = vadd.f32 %v4494_v20, %v815_v22 }
 0x176   : > { %v830_v24 = vpop.f32.mrf.mxu0  ;;  %v1240_v17 = vpop.f32.mrf.mxu1 }
 0x177   : > { %v4716_v54 = vadd.f32 %v1240_v17, %v1016_v10  ;;  %v1031_v10 = vadd.f32 %v4481_v52, %v805_v21 }
 0x178   : > { %v832_v28 = vpop.f32.mrf.mxu0  ;;  %v1242_v46 = vpop.f32.mrf.mxu1 }
 0x17a   : > { %v835_v53 = vpop.f32.mrf.mxu0  ;;  %v1245_v18 = vpop.f32.mrf.mxu1 }
 0x17b   : > { %v4719_v43 = vadd.f32 %v1245_v18, %v1021_v19  ;;  %v1046_v19 = vadd.f32 %v4517_v25, %v820_v8 }
 0x17c   : > { %v837_v37 = vpop.f32.mrf.mxu0  ;;  %v1247_v31 = vpop.f32.mrf.mxu1 }
 0x17e   : > { %v840_v26 = vpop.f32.mrf.mxu0  ;;  %v1250_v55 = vpop.f32.mrf.mxu1 }
 0x17f   : > { %v4722_v56 = vadd.f32 %v1250_v55, %v1026_v0  ;;  %v1051_v0 = vadd.f32 %v4509_v29, %v825_v34 }
 0x180   : > { %v842_v47 = vpop.f32.mrf.mxu0  ;;  %v1252_v36 = vpop.f32.mrf.mxu1 }
 0x182   : > { %v845_v42 = vpop.f32.mrf.mxu0  ;;  %v1255_v23 = vpop.f32.mrf.mxu1 }
 0x183   : > { %v4725_v38 = vadd.f32 %v1255_v23, %v1031_v10  ;;  %v1056_v10 = vadd.f32 %v4532_v5, %v830_v24 }
 0x184   : > { %v847_v32 = vpop.f32.mrf.mxu0  ;;  %v1257_v45 = vpop.f32.mrf.mxu1 }
 0x186   : > { %v850_v33 = vpop.f32.mrf.mxu0  ;;  %v1260_v60 = vpop.f32.mrf.mxu1 }
 0x187   : > { %v4728_v6 = vadd.f32 %v1260_v60, %v1036_v40  ;;  %v1061_v60 = vadd.f32 %v4522_v35, %v835_v53 }
 0x188   : > { %v852_v9 = vpop.f32.mrf.mxu0  ;;  %v1262_v15 = vpop.f32.mrf.mxu1 }
 0x18a   : > { %v855_v17 = vpop.f32.mrf.mxu0  ;;  %v1265_v28 = vpop.f32.mrf.mxu1 }
 0x18b   : > { %v4731_v46 = vadd.f32 %v1265_v28, %v1041_v39  ;;  %v1066_v28 = vadd.f32 %v4545_v12, %v840_v26 }
 0x18c   : > { %v857_v52 = vpop.f32.mrf.mxu0  ;;  %v1267_v21 = vpop.f32.mrf.mxu1 }
 0x18e   : > { %v860_v18 = vpop.f32.mrf.mxu0  ;;  %v1270_v37 = vpop.f32.mrf.mxu1 }
 0x18f   : > { %v4734_v31 = vadd.f32 %v1270_v37, %v1046_v19  ;;  %v1071_v37 = vadd.f32 %v4537_v41, %v845_v42 }
 0x190   : > { %v862_v61 = vpop.f32.mrf.mxu0  ;;  %v1272_v2 = vpop.f32.mrf.mxu1 }
 0x192   : > { %v865_v55 = vpop.f32.mrf.mxu0  ;;  %v1275_v47 = vpop.f32.mrf.mxu1 }
 0x193   : > { %v4737_v36 = vadd.f32 %v1275_v47, %v1051_v0  ;;  %v1076_v47 = vadd.f32 %v4560_v11, %v850_v33 }
 0x194   : > { %v867_v20 = vpop.f32.mrf.mxu0  ;;  %v1277_v22 = vpop.f32.mrf.mxu1 }
 0x196   : > { %v1280_v23 = vpop.f32.mrf.mxu1  ;;  %v2856_v32 = vpop.f32.mrf.mxu0 }
 0x197   : > { %v4740_v45 = vadd.f32 %v1280_v23, %v1056_v10  ;;  %v4743_v25 = vadd.f32 %v2856_v32, %v4597_v63  ;;  %v1081_v23 = vadd.f32 %v4550_v59, %v855_v17 }
 0x198   : > { %v1282_v8 = vpop.f32.mrf.mxu1  ;;  %v1385_v40 = vpop.f32.mrf.mxu0 }
 0x199   : > { %v4747_v29 = vadd.f32 %v1385_v40, %v4585_v4 }
 0x19a   : > { %v1285_v34 = vpop.f32.mrf.mxu1  ;;  %v2859_v9 = vpop.f32.mrf.mxu0 }
 0x19b   : > { %v4749_v15 = vadd.f32 %v1285_v34, %v1061_v60  ;;  %v4752_v5 = vadd.f32 %v2859_v9, %v4623_v14  ;;  %v1086_v60 = vadd.f32 %v4573_v44, %v860_v18 }
 0x19c   : > { %v1287_v24 = vpop.f32.mrf.mxu1  ;;  %v1395_v39 = vpop.f32.mrf.mxu0 }
 0x19d   : > { %v4756_v63 = vadd.f32 %v1395_v39, %v4611_v13  ;;  %v1091_v39 = vadd.f32 %v4565_v7, %v865_v55 }
 0x19e   : > { %v1290_v52 = vpop.f32.mrf.mxu1  ;;  %v2862_v21 = vpop.f32.mrf.mxu0 }
 0x19f   : > { %v4758_v35 = vadd.f32 %v1290_v52, %v1066_v28  ;;  %v4761_v4 = vadd.f32 %v2862_v21, %v4649_v30 }
 0x1a0   : > { %v1292_v53 = vpop.f32.mrf.mxu1  ;;  %v1405_v19 = vpop.f32.mrf.mxu0 }
 0x1a1   : > { %v4765_v14 = vadd.f32 %v1405_v19, %v4637_v27 }
 0x1a2   : > { %v1295_v61 = vpop.f32.mrf.mxu1  ;;  %v2865_v2 = vpop.f32.mrf.mxu0 }
 0x1a3   : > { %v4767_v12 = vadd.f32 %v1295_v61, %v1071_v37  ;;  %v4770_v13 = vadd.f32 %v2865_v2, %v4668_v62 }
 0x1a4   : > { %v1297_v26 = vpop.f32.mrf.mxu1  ;;  %v1415_v0 = vpop.f32.mrf.mxu0 }
 0x1a5   : > { %v4774_v30 = vadd.f32 %v1415_v0, %v4661_v16 }
 0x1a6   : > { %v1300_v20 = vpop.f32.mrf.mxu1  ;;  %v2868_v22 = vpop.f32.mrf.mxu0 }
 0x1a7   : > { %v4776_v41 = vadd.f32 %v1300_v20, %v1076_v47  ;;  %v4779_v27 = vadd.f32 %v2868_v22, %v4681_v3 }
 0x1a8   : > { %v1302_v42 = vpop.f32.mrf.mxu1  ;;  %v1425_v10 = vpop.f32.mrf.mxu0 }
 0x1a9   : > { %v4783_v62 = vadd.f32 %v1425_v10, %v4676_v1 }
 0x1aa   : > { %v1305_v32 = vpop.f32.mrf.mxu1  ;;  %v2871_v8 = vpop.f32.mrf.mxu0 }
 0x1ab   : > { %v1306_v11 = vadd.f32 %v1305_v32, %v1081_v23  ;;  %v4786_v16 = vadd.f32 %v2871_v8, %v4693_v50 }
 0x1ac   : > { %v1307_v33 = vpop.f32.mrf.mxu1  ;;  %v1435_v40 = vpop.f32.mrf.mxu0 }
 0x1ad   : > { %v4790_v3 = vadd.f32 %v1435_v40, %v4688_v48 }
 0x1ae   : > { %v1310_v34 = vpop.f32.mrf.mxu1  ;;  %v2874_v9 = vpop.f32.mrf.mxu0 }
 0x1af   : > { %v1311_v24 = vadd.f32 %v1310_v34, %v1086_v60  ;;  %v4793_v59 = vadd.f32 %v2874_v9, %v4705_v58 }
 0x1b0   : > { %v1312_v1 = vpop.f32.mrf.mxu1  ;;  %v1445_v17 = vpop.f32.mrf.mxu0 }
 0x1b1   : > { %v4797_v50 = vadd.f32 %v1445_v17, %v4700_v51 }
 0x1b2   : > { %v1315_v28 = vpop.f32.mrf.mxu1  ;;  %v2877_v52 = vpop.f32.mrf.mxu0 }
 0x1b3   : > { %v1316_v21 = vadd.f32 %v1315_v28, %v1091_v39  ;;  %v4800_v44 = vadd.f32 %v2877_v52, %v4714_v49 }
 0x1b4   : > { %v1317_v48 = vpop.f32.mrf.mxu1  ;;  %v1455_v18 = vpop.f32.mrf.mxu0 }
 0x1b5   : > { %v4803_v53 = vadd.f32 %v1455_v18, %v4709_v57 }
 0x1b6   : > { %v2880_v58 = vpop.f32.mrf.mxu0  ;;  %v1659_v19 = vpop.f32.mrf.mxu1 }
 0x1b7   : > { %v4806_v37 = vadd.f32 %v2880_v58, %v4719_v43 }
 0x1b8   : > { %v1465_v7 = vpop.f32.mrf.mxu0  ;;  %v1661_v55 = vpop.f32.mrf.mxu1 }
 0x1b9   : > { %v4809_v51 = vadd.f32 %v1465_v7, %v4716_v54 }
 0x1ba   : > { %v2883_v61 = vpop.f32.mrf.mxu0  ;;  %v1664_v2 = vpop.f32.mrf.mxu1 }
 0x1bb   : > { %v4812_v49 = vadd.f32 %v2883_v61, %v4725_v38 }
 0x1bc   : > { %v1475_v26 = vpop.f32.mrf.mxu0  ;;  %v1666_v0 = vpop.f32.mrf.mxu1 }
 0x1bd   : > { %v4815_v57 = vadd.f32 %v1475_v26, %v4722_v56 }
 0x1be   : > { %v2886_v47 = vpop.f32.mrf.mxu0  ;;  %v1669_v20 = vpop.f32.mrf.mxu1 }
 0x1bf   : > { %v4818_v43 = vadd.f32 %v2886_v47, %v4731_v46 }
 0x1c0   : > { %v1485_v22 = vpop.f32.mrf.mxu0  ;;  %v1671_v42 = vpop.f32.mrf.mxu1 }
 0x1c1   : > { %v4821_v54 = vadd.f32 %v1485_v22, %v4728_v6 }
 0x1c2   : > { %v2889_v10 = vpop.f32.mrf.mxu0  ;;  %v1674_v23 = vpop.f32.mrf.mxu1 }
 0x1c3   : > { %v4824_v38 = vadd.f32 %v2889_v10, %v4737_v36 }
 0x1c4   : > { %v1495_v32 = vpop.f32.mrf.mxu0  ;;  %v1676_v8 = vpop.f32.mrf.mxu1 }
 0x1c5   : > { %v4827_v56 = vadd.f32 %v1495_v32, %v4734_v31 }
 0x1c6   : > { %v2892_v33 = vpop.f32.mrf.mxu0  ;;  %v1679_v40 = vpop.f32.mrf.mxu1 }
 0x1c7   : > { %v4830_v46 = vadd.f32 %v2892_v33, %v4749_v15 }
 0x1c8   : > { %v1505_v60 = vpop.f32.mrf.mxu0  ;;  %v1681_v34 = vpop.f32.mrf.mxu1 }
 0x1c9   : > { %v4833_v6 = vadd.f32 %v1505_v60, %v4740_v45 }
 0x1ca   : > { %v2895_v9 = vpop.f32.mrf.mxu0  ;;  %v1684_v1 = vpop.f32.mrf.mxu1 }
 0x1cb   : > { %v4836_v36 = vadd.f32 %v2895_v9, %v4767_v12 }
 0x1cc   : > { %v1515_v17 = vpop.f32.mrf.mxu0  ;;  %v1686_v39 = vpop.f32.mrf.mxu1 }
 0x1cd   : > { %v4839_v31 = vadd.f32 %v1515_v17, %v4758_v35 }
 0x1ce   : > { %v2898_v28 = vpop.f32.mrf.mxu0  ;;  %v1689_v52 = vpop.f32.mrf.mxu1 }
 0x1cf   : > { %v4841_v15 = vadd.f32 %v2898_v28, %v1306_v11 }
 0x1d0   : > { %v1525_v48 = vpop.f32.mrf.mxu0  ;;  %v1691_v18 = vpop.f32.mrf.mxu1 }
 0x1d1   : > { %v4844_v45 = vadd.f32 %v1525_v48, %v4776_v41 }
 0x1d2   : > { %v2901_v58 = vpop.f32.mrf.mxu0  ;;  %v1694_v7 = vpop.f32.mrf.mxu1 }
 0x1d3   : > { %v4846_v55 = vadd.f32 %v2901_v58, %v1316_v21 }
 0x1d4   : > { %v1535_v12 = vpop.f32.mrf.mxu0  ;;  %v1696_v61 = vpop.f32.mrf.mxu1 }
 0x1d5   : > { %v4848_v26 = vadd.f32 %v1535_v12, %v1311_v24 }
 0x1d6   : > { %v4850_v35 = vpop.f32.mrf.mxu1  ;;  %v2936_v0 = vpop.f32.mrf.mxu0 }
 0x1d7   : > { %v1890_v47 = vadd.f32 %v2936_v0, %v1664_v2 }
 0x1d8   : > { %v1701_v41 = vpop.f32.mrf.mxu1  ;;  %v1884_v11 = vpop.f32.mrf.mxu0 }
 0x1d9   : > { %v2044_v21 = vadd.f32 %v1890_v47, %v4743_v25  ;;  %v1885_v22 = vadd.f32 %v1884_v11, %v1659_v19 }
 0x1da   : > { %v1704_v42 = vpop.f32.mrf.mxu1  ;;  %v2939_v24 = vpop.f32.mrf.mxu0 }
 0x1db   : > { %2185 = vst [vmem:[%s4857_s14 + $0x8] sm:$0xff] %v2044_v21  ;;  %v2043_v10 = vadd.f32 %v1885_v22, %v4747_v29  ;;  %v1900_v2 = vadd.f32 %v2939_v24, %v1674_v23  ;;  %v2113_v32 = vmul.f32 %v2044_v21, %v2044_v21 }
 0x1dc   : > { %v1706_v8 = vpop.f32.mrf.mxu1  ;;  %v1894_v33 = vpop.f32.mrf.mxu0 }
 0x1dd   : > { %v2075_v60 = vadd.f32 %v2044_v21, %v2043_v10  ;;  %v2112_v34 = vmul.f32 %v2043_v10, %v2043_v10  ;;  %2184 = vst [vmem:[%s4857_s14] sm:$0xff] %v2043_v10  ;;  %v2046_v9 = vadd.f32 %v1900_v2, %v4752_v5  ;;  %v1895_v17 = vadd.f32 %v1894_v33, %v1669_v20 }
 0x1de   : > { %v1709_v39 = vpop.f32.mrf.mxu1  ;;  %v2942_v25 = vpop.f32.mrf.mxu0 }
 0x1df   : > { %v2144_v19 = vadd.f32 %v2113_v32, %v2112_v34  ;;  %2187 = vst [vmem:[%s4857_s14 + $0x18] sm:$0xff] %v2046_v9  ;;  %v2045_v28 = vadd.f32 %v1895_v17, %v4756_v63  ;;  %v1910_v48 = vadd.f32 %v2942_v25, %v1684_v1  ;;  %v2115_v20 = vmul.f32 %v2046_v9, %v2046_v9 }
 0x1e0   : > { %v1711_v29 = vpop.f32.mrf.mxu1  ;;  %v1904_v23 = vpop.f32.mrf.mxu0 }
 0x1e1   : > { %v2076_v18 = vadd.f32 %v2075_v60, %v2045_v28  ;;  %v2114_v58 = vmul.f32 %v2045_v28, %v2045_v28  ;;  %2186 = vst [vmem:[%s4857_s14 + $0x10] sm:$0xff] %v2045_v28  ;;  %v2048_v12 = vadd.f32 %v1910_v48, %v4761_v4  ;;  %v1905_v61 = vadd.f32 %v1904_v23, %v1679_v40 }
 0x1e2   : > { %v1714_v0 = vpop.f32.mrf.mxu1  ;;  %v2945_v5 = vpop.f32.mrf.mxu0 }
 0x1e3   : > { %v2145_v47 = vadd.f32 %v2144_v19, %v2114_v58  ;;  %2189 = vst [vmem:[%s4857_s14 + $0x28] sm:$0xff] %v2048_v12  ;;  %v2047_v41 = vadd.f32 %v1905_v61, %v4765_v14  ;;  %v2077_v11 = vadd.f32 %v2076_v18, %v2046_v9  ;;  %v1920_v21 = vadd.f32 %v2945_v5, %v1694_v7 }
 0x1e4   : > { %v1716_v63 = vpop.f32.mrf.mxu1  ;;  %v1914_v1 = vpop.f32.mrf.mxu0  ;;  %v2117_v4 = vmul.f32 %v2048_v12, %v2048_v12 }
 0x1e5   : > { %v2078_v22 = vadd.f32 %v2077_v11, %v2047_v41  ;;  %v2116_v24 = vmul.f32 %v2047_v41, %v2047_v41  ;;  %v2146_v10 = vadd.f32 %v2145_v47, %v2115_v20  ;;  %2188 = vst [vmem:[%s4857_s14 + $0x20] sm:$0xff] %v2047_v41  ;;  %v1915_v2 = vadd.f32 %v1914_v1, %v1689_v52 }
 0x1e6   : > { %v2050_v40 = vadd.f32 %v1920_v21, %v4770_v13  ;;  %v1719_v32 = vpop.f32.mrf.mxu1  ;;  %v2948_v8 = vpop.f32.mrf.mxu0 }
 0x1e7   : > { %v2147_v33 = vadd.f32 %v2146_v10, %v2116_v24  ;;  %v2049_v60 = vadd.f32 %v1915_v2, %v4774_v30  ;;  %v2079_v14 = vadd.f32 %v2078_v22, %v2048_v12  ;;  %v1930_v7 = vadd.f32 %v2948_v8, %v1704_v42 }
 0x1e8   : > { %2191 = vst [vmem:[%s4857_s14 + $0x38] sm:$0xff] %v2050_v40  ;;  %v1721_v34 = vpop.f32.mrf.mxu1  ;;  %v1924_v9 = vpop.f32.mrf.mxu0  ;;  %v2119_v29 = vmul.f32 %v2050_v40, %v2050_v40 }
 0x1e9   : > { %v2080_v17 = vadd.f32 %v2079_v14, %v2049_v60  ;;  %v2118_v25 = vmul.f32 %v2049_v60, %v2049_v60  ;;  %v2148_v19 = vadd.f32 %v2147_v33, %v2117_v4  ;;  %2190 = vst [vmem:[%s4857_s14 + $0x30] sm:$0xff] %v2049_v60  ;;  %v2052_v52 = vadd.f32 %v1930_v7, %v4779_v27 }
 0x1ea   : > { %v1925_v28 = vadd.f32 %v1924_v9, %v4850_v35  ;;  %v1724_v13 = vpop.f32.mrf.mxu1  ;;  %v2951_v48 = vpop.f32.mrf.mxu0 }
 0x1eb   : > { %v2149_v30 = vadd.f32 %v2148_v19, %v2118_v25  ;;  %2193 = vst [vmem:[%s4857_s14 + $0x48] sm:$0xff] %v2052_v52  ;;  %v2081_v23 = vadd.f32 %v2080_v17, %v2050_v40  ;;  %v1940_v42 = vadd.f32 %v2951_v48, %v1714_v0  ;;  %v2121_v0 = vmul.f32 %v2052_v52, %v2052_v52 }
 0x1ec   : > { %v2051_v18 = vadd.f32 %v1925_v28, %v4783_v62  ;;  %v1726_v58 = vpop.f32.mrf.mxu1  ;;  %v1934_v12 = vpop.f32.mrf.mxu0 }
 0x1ed   : > { %v2150_v61 = vadd.f32 %v2149_v30, %v2119_v29  ;;  %v2054_v5 = vadd.f32 %v1940_v42, %v4786_v16  ;;  %v1935_v27 = vadd.f32 %v1934_v12, %v1709_v39 }
 0x1ee   : > { %v2082_v20 = vadd.f32 %v2081_v23, %v2051_v18  ;;  %v2120_v35 = vmul.f32 %v2051_v18, %v2051_v18  ;;  %2192 = vst [vmem:[%s4857_s14 + $0x40] sm:$0xff] %v2051_v18  ;;  %v1729_v47 = vpop.f32.mrf.mxu1  ;;  %v2954_v41 = vpop.f32.mrf.mxu0 }
 0x1ef   : > { %2195 = vst [vmem:[%s4857_s14 + $0x58] sm:$0xff] %v2054_v5  ;;  %v2053_v11 = vadd.f32 %v1935_v27, %v4790_v3  ;;  %v1950_v21 = vadd.f32 %v2954_v41, %v1724_v13  ;;  %v2123_v33 = vmul.f32 %v2054_v5, %v2054_v5 }
 0x1f0   : > { %v2151_v63 = vadd.f32 %v2150_v61, %v2120_v35  ;;  %v2083_v62 = vadd.f32 %v2082_v20, %v2052_v52  ;;  %v1731_v1 = vpop.f32.mrf.mxu1  ;;  %v1944_v22 = vpop.f32.mrf.mxu0 }
 0x1f1   : > { %v2122_v24 = vmul.f32 %v2053_v11, %v2053_v11  ;;  %2194 = vst [vmem:[%s4857_s14 + $0x50] sm:$0xff] %v2053_v11  ;;  %v2056_v16 = vadd.f32 %v1950_v21, %v4793_v59  ;;  %v1945_v39 = vadd.f32 %v1944_v22, %v1719_v32 }
 0x1f2   : > { %v2084_v10 = vadd.f32 %v2083_v62, %v2053_v11  ;;  %v2152_v2 = vadd.f32 %v2151_v63, %v2121_v0  ;;  %v1734_v4 = vpop.f32.mrf.mxu1  ;;  %v2957_v40 = vpop.f32.mrf.mxu0 }
 0x1f3   : > { %2197 = vst [vmem:[%s4857_s14 + $0x68] sm:$0xff] %v2056_v16  ;;  %v2055_v3 = vadd.f32 %v1945_v39, %v4797_v50  ;;  %v1960_v8 = vadd.f32 %v2957_v40, %v1734_v4  ;;  %v2125_v50 = vmul.f32 %v2056_v16, %v2056_v16 }
 0x1f4   : > { %v2153_v60 = vadd.f32 %v2152_v2, %v2122_v24  ;;  %v2085_v14 = vadd.f32 %v2084_v10, %v2054_v5  ;;  %v1736_v7 = vpop.f32.mrf.mxu1  ;;  %v1954_v34 = vpop.f32.mrf.mxu0 }
 0x1f5   : > { %v2124_v9 = vmul.f32 %v2055_v3, %v2055_v3  ;;  %2196 = vst [vmem:[%s4857_s14 + $0x60] sm:$0xff] %v2055_v3  ;;  %v2058_v59 = vadd.f32 %v1960_v8, %v4800_v44  ;;  %v1955_v32 = vadd.f32 %v1954_v34, %v1729_v47 }
 0x1f6   : > { %v2086_v17 = vadd.f32 %v2085_v14, %v2055_v3  ;;  %v2154_v25 = vadd.f32 %v2153_v60, %v2123_v33  ;;  %v1739_v19 = vpop.f32.mrf.mxu1  ;;  %v2960_v52 = vpop.f32.mrf.mxu0 }
 0x1f7   : > { %2199 = vst [vmem:[%s4857_s14 + $0x78] sm:$0xff] %v2058_v59  ;;  %v2057_v28 = vadd.f32 %v1955_v32, %v4803_v53  ;;  %v2127_v27 = vmul.f32 %v2058_v59, %v2058_v59 }
 0x1f8   : > { %v2155_v13 = vadd.f32 %v2154_v25, %v2124_v9  ;;  %v2087_v48 = vadd.f32 %v2086_v17, %v2056_v16  ;;  %v1741_v29 = vpop.f32.mrf.mxu1  ;;  %v1964_v30 = vpop.f32.mrf.mxu0 }
 0x1f9   : > { %v2126_v23 = vmul.f32 %v2057_v28, %v2057_v28  ;;  %2198 = vst [vmem:[%s4857_s14 + $0x70] sm:$0xff] %v2057_v28  ;;  %v1965_v42 = vadd.f32 %v1964_v30, %v1739_v19 }
 0x1fa   : > { %v2088_v18 = vadd.f32 %v2087_v48, %v2057_v28  ;;  %v2156_v58 = vadd.f32 %v2155_v13, %v2125_v50  ;;  %v1744_v44 = vpop.f32.mrf.mxu1  ;;  %v2963_v12 = vpop.f32.mrf.mxu0 }
 0x1fb   : > { %v2059_v61 = vadd.f32 %v1965_v42, %v4809_v51  ;;  %v1970_v5 = vadd.f32 %v2960_v52, %v1744_v44 }
 0x1fc   : > { %v2157_v20 = vadd.f32 %v2156_v58, %v2126_v23  ;;  %v2089_v53 = vadd.f32 %v2088_v18, %v2058_v59  ;;  %v1746_v35 = vpop.f32.mrf.mxu1  ;;  %v1974_v47 = vpop.f32.mrf.mxu0 }
 0x1fd   : > { %v2128_v41 = vmul.f32 %v2059_v61, %v2059_v61  ;;  %2200 = vst [vmem:[%s4857_s14 + $0x80] sm:$0xff] %v2059_v61  ;;  %v2060_v11 = vadd.f32 %v1970_v5, %v4806_v37 }
 0x1fe   : > { %v2090_v21 = vadd.f32 %v2089_v53, %v2059_v61  ;;  %v2158_v0 = vadd.f32 %v2157_v20, %v2127_v27  ;;  %v1749_v63 = vpop.f32.mrf.mxu1  ;;  %v2966_v16 = vpop.f32.mrf.mxu0 }
 0x1ff   : > { %v2129_v62 = vmul.f32 %v2060_v11, %v2060_v11  ;;  %2201 = vst [vmem:[%s4857_s14 + $0x88] sm:$0xff] %v2060_v11  ;;  %v1975_v1 = vadd.f32 %v1974_v47, %v1749_v63 }
 0x200   : > { %v2159_v22 = vadd.f32 %v2158_v0, %v2128_v41  ;;  %v2091_v24 = vadd.f32 %v2090_v21, %v2060_v11  ;;  %v1751_v51 = vpop.f32.mrf.mxu1  ;;  %v1984_v8 = vpop.f32.mrf.mxu0 }
 0x201   : > { %v2061_v39 = vadd.f32 %v1975_v1, %v4815_v57 }
 0x202   : > { %v2160_v10 = vadd.f32 %v2159_v22, %v2129_v62  ;;  %v1754_v2 = vpop.f32.mrf.mxu1  ;;  %v2969_v57 = vpop.f32.mrf.mxu0 }
 0x203   : > { %v2092_v4 = vadd.f32 %v2091_v24, %v2061_v39  ;;  %v2130_v40 = vmul.f32 %v2061_v39, %v2061_v39  ;;  %2202 = vst [vmem:[%s4857_s14 + $0x90] sm:$0xff] %v2061_v39  ;;  %v1980_v37 = vadd.f32 %v2963_v12, %v1754_v2 }
 0x204   : > { %v1756_v3 = vpop.f32.mrf.mxu1  ;;  %v1994_v13 = vpop.f32.mrf.mxu0 }
 0x205   : > { %v2161_v33 = vadd.f32 %v2160_v10, %v2130_v40  ;;  %v2062_v60 = vadd.f32 %v1980_v37, %v4812_v49 }
 0x206   : > { %v1759_v14 = vpop.f32.mrf.mxu1  ;;  %v2972_v58 = vpop.f32.mrf.mxu0 }
 0x207   : > { %v2093_v7 = vadd.f32 %v2092_v4, %v2062_v60  ;;  %v2131_v34 = vmul.f32 %v2062_v60, %v2062_v60  ;;  %2203 = vst [vmem:[%s4857_s14 + $0x98] sm:$0xff] %v2062_v60  ;;  %v1985_v9 = vadd.f32 %v1984_v8, %v1759_v14 }
 0x208   : > { %v1761_v59 = vpop.f32.mrf.mxu1  ;;  %v2004_v53 = vpop.f32.mrf.mxu0 }
 0x209   : > { %v2162_v32 = vadd.f32 %v2161_v33, %v2131_v34  ;;  %v2063_v17 = vadd.f32 %v1985_v9, %v4821_v54 }
 0x20a   : > { %v1764_v25 = vpop.f32.mrf.mxu1  ;;  %v2975_v63 = vpop.f32.mrf.mxu0 }
 0x20b   : > { %v2094_v19 = vadd.f32 %v2093_v7, %v2063_v17  ;;  %v2132_v52 = vmul.f32 %v2063_v17, %v2063_v17  ;;  %2204 = vst [vmem:[%s4857_s14 + $0xa0] sm:$0xff] %v2063_v17  ;;  %v1990_v28 = vadd.f32 %v2966_v16, %v1764_v25 }
 0x20c   : > { %v1766_v50 = vpop.f32.mrf.mxu1  ;;  %v2014_v39 = vpop.f32.mrf.mxu0 }
 0x20d   : > { %v2163_v49 = vadd.f32 %v2162_v32, %v2132_v52  ;;  %v2064_v48 = vadd.f32 %v1990_v28, %v4818_v43 }
 0x20e   : > { %v1769_v29 = vpop.f32.mrf.mxu1  ;;  %v2978_v8 = vpop.f32.mrf.mxu0 }
 0x20f   : > { %v2095_v30 = vadd.f32 %v2094_v19, %v2064_v48  ;;  %v2133_v23 = vmul.f32 %v2064_v48, %v2064_v48  ;;  %2205 = vst [vmem:[%s4857_s14 + $0xa8] sm:$0xff] %v2064_v48  ;;  %v1995_v42 = vadd.f32 %v1994_v13, %v1769_v29 }
 0x210   : > { %v1771_v18 = vpop.f32.mrf.mxu1  ;;  %v2024_v59 = vpop.f32.mrf.mxu0 }
 0x211   : > { %v2164_v54 = vadd.f32 %v2163_v49, %v2133_v23  ;;  %v2065_v44 = vadd.f32 %v1995_v42, %v4827_v56 }
 0x212   : > { %v1774_v12 = vpop.f32.mrf.mxu1  ;;  %v2981_v28 = vpop.f32.mrf.mxu0 }
 0x213   : > { %v2096_v61 = vadd.f32 %v2095_v30, %v2065_v44  ;;  %v2134_v5 = vmul.f32 %v2065_v44, %v2065_v44  ;;  %2206 = vst [vmem:[%s4857_s14 + $0xb0] sm:$0xff] %v2065_v44  ;;  %v2000_v27 = vadd.f32 %v2969_v57, %v1774_v12 }
 0x214   : > { %v1776_v20 = vpop.f32.mrf.mxu1  ;;  %v2034_v23 = vpop.f32.mrf.mxu0 }
 0x215   : > { %v2165_v43 = vadd.f32 %v2164_v54, %v2134_v5  ;;  %v2066_v35 = vadd.f32 %v2000_v27, %v4824_v38 }
 0x216   : > { %v1779_v47 = vpop.f32.mrf.mxu1 }
 0x217   : > { %v2097_v41 = vadd.f32 %v2096_v61, %v2066_v35  ;;  %v2135_v11 = vmul.f32 %v2066_v35, %v2066_v35  ;;  %2207 = vst [vmem:[%s4857_s14 + $0xb8] sm:$0xff] %v2066_v35  ;;  %v2005_v21 = vadd.f32 %v2004_v53, %v1779_v47 }
 0x218   : > { %v1781_v0 = vpop.f32.mrf.mxu1 }
 0x219   : > { %v2166_v56 = vadd.f32 %v2165_v43, %v2135_v11  ;;  %v2067_v62 = vadd.f32 %v2005_v21, %v4833_v6 }
 0x21a   : > { %v1784_v1 = vpop.f32.mrf.mxu1 }
 0x21b   : > { %v2098_v22 = vadd.f32 %v2097_v41, %v2067_v62  ;;  %v2136_v24 = vmul.f32 %v2067_v62, %v2067_v62  ;;  %2208 = vst [vmem:[%s4857_s14 + $0xc0] sm:$0xff] %v2067_v62  ;;  %v2010_v51 = vadd.f32 %v2972_v58, %v1784_v1 }
 0x21c   : > { %v1786_v16 = vpop.f32.mrf.mxu1 }
 0x21d   : > { %v2167_v38 = vadd.f32 %v2166_v56, %v2136_v24  ;;  %v2068_v10 = vadd.f32 %v2010_v51, %v4830_v46 }
 0x21e   : > { %v1789_v2 = vpop.f32.mrf.mxu1 }
 0x21f   : > { %v2099_v4 = vadd.f32 %v2098_v22, %v2068_v10  ;;  %v2137_v40 = vmul.f32 %v2068_v10, %v2068_v10  ;;  %2209 = vst [vmem:[%s4857_s14 + $0xc8] sm:$0xff] %v2068_v10  ;;  %v2015_v37 = vadd.f32 %v2014_v39, %v1789_v2 }
 0x220   : > { %v1791_v3 = vpop.f32.mrf.mxu1 }
 0x221   : > { %v2168_v6 = vadd.f32 %v2167_v38, %v2137_v40  ;;  %v2069_v33 = vadd.f32 %v2015_v37, %v4839_v31 }
 0x222   : > { %v1794_v60 = vpop.f32.mrf.mxu1 }
 0x223   : > { %v2100_v14 = vadd.f32 %v2099_v4, %v2069_v33  ;;  %v2138_v7 = vmul.f32 %v2069_v33, %v2069_v33  ;;  %2210 = vst [vmem:[%s4857_s14 + $0xd0] sm:$0xff] %v2069_v33  ;;  %v2020_v34 = vadd.f32 %v2975_v63, %v1794_v60 }
 0x224   : > { %v1796_v9 = vpop.f32.mrf.mxu1 }
 0x225   : > { %v2169_v46 = vadd.f32 %v2168_v6, %v2138_v7  ;;  %v2070_v57 = vadd.f32 %v2020_v34, %v4836_v36 }
 0x226   : > { %v1799_v32 = vpop.f32.mrf.mxu1 }
 0x227   : > { %v2101_v17 = vadd.f32 %v2100_v14, %v2070_v57  ;;  %v2139_v25 = vmul.f32 %v2070_v57, %v2070_v57  ;;  %2211 = vst [vmem:[%s4857_s14 + $0xd8] sm:$0xff] %v2070_v57  ;;  %v2025_v19 = vadd.f32 %v2024_v59, %v1799_v32 }
 0x228   : > { %v1801_v52 = vpop.f32.mrf.mxu1 }
 0x229   : > { %v2170_v31 = vadd.f32 %v2169_v46, %v2139_v25  ;;  %v2071_v50 = vadd.f32 %v2025_v19, %v4844_v45 }
 0x22a   : > { %v1804_v13 = vpop.f32.mrf.mxu1 }
 0x22b   : > { %v2102_v49 = vadd.f32 %v2101_v17, %v2071_v50  ;;  %v2140_v48 = vmul.f32 %v2071_v50, %v2071_v50  ;;  %2212 = vst [vmem:[%s4857_s14 + $0xe0] sm:$0xff] %v2071_v50  ;;  %v2030_v29 = vadd.f32 %v2978_v8, %v1804_v13 }
 0x22c   : > { %v1806_v30 = vpop.f32.mrf.mxu1 }
 0x22d   : > { %v2171_v36 = vadd.f32 %v2170_v31, %v2140_v48  ;;  %v2072_v42 = vadd.f32 %v2030_v29, %v4841_v15 }
 0x22e   : > { %v1809_v18 = vpop.f32.mrf.mxu1 }
 0x22f   : > { %v2103_v58 = vadd.f32 %v2102_v49, %v2072_v42  ;;  %v2141_v54 = vmul.f32 %v2072_v42, %v2072_v42  ;;  %2213 = vst [vmem:[%s4857_s14 + $0xe8] sm:$0xff] %v2072_v42  ;;  %v2035_v44 = vadd.f32 %v2034_v23, %v1809_v18 }
 0x230   : > { %v1811_v12 = vpop.f32.mrf.mxu1 }
 0x231   : > { %v2172_v61 = vadd.f32 %v2171_v36, %v2141_v54  ;;  %v2073_v45 = vadd.f32 %v2035_v44, %v4848_v26 }
 0x232   : > { %v1814_v5 = vpop.f32.mrf.mxu1 }
 0x233   : > { %v2104_v27 = vadd.f32 %v2103_v58, %v2073_v45  ;;  %v2142_v20 = vmul.f32 %v2073_v45, %v2073_v45  ;;  %2214 = vst [vmem:[%s4857_s14 + $0xf0] sm:$0xff] %v2073_v45  ;;  %v2040_v53 = vadd.f32 %v2981_v28, %v1814_v5 }
 0x234   : > { %v1816_v43 = vpop.f32.mrf.mxu1 }
 0x235   : > { %v2173_v35 = vadd.f32 %v2172_v61, %v2142_v20  ;;  %v2074_v15 = vadd.f32 %v2040_v53, %v4846_v55 }
 0x237   : > { %v2105_v47 = vadd.f32 %v2104_v27, %v2074_v15  ;;  %v2143_v41 = vmul.f32 %v2074_v15, %v2074_v15  ;;  %2215 = vst [vmem:[%s4857_s14 + $0xf8] sm:$0xff] %v2074_v15 }
 0x239   : > { %v2106_v11 = vrot.slane %v2105_v47, 4  ;;  %v2174_v21 = vadd.f32 %v2173_v35, %v2143_v41 }
 0x23b   : > { %v2107_v0 = vadd.f32 %v2106_v11, %v2105_v47  ;;  %v2175_v63 = vrot.slane %v2174_v21, 4 }
 0x23d   : > { %v2108_v56 = vrot.slane %v2107_v0, 2  ;;  %v2176_v62 = vadd.f32 %v2175_v63, %v2174_v21 }
 0x23f   : > { %v2109_v26 = vadd.f32 %v2108_v56, %v2107_v0  ;;  %v2177_v1 = vrot.slane %v2176_v62, 2 }
 0x241   : > { %v2110_v22 = vrot.slane %v2109_v26, 1  ;;  %v2178_v24 = vadd.f32 %v2177_v1, %v2176_v62 }
 0x243   : > { %v2179_v51 = vrot.slane %v2178_v24, 1  ;;  %v2111_v55 = vadd.f32 %v2110_v22, %v2109_v26 }
 0x245   : > { %v2180_v16 = vadd.f32 %v2179_v51, %v2178_v24 }
 0x247   : > { %v2182_v39 = vsel %vm2181_vm4, %v2111_v55, %v2180_v16 }
 0x248   : > { %2183 = vst [vmem:[%s208_s20] sm:$0x3] %v2182_v39 }
 0x249 PF: > { %s15_s15 = sadd.s32 1, %s2997_s15  }
 0x24a   : > { %p12_p4 = scmp.ge.s32.totalorder %s15_s15, 4  }
 0x24c   :  { %14 = sbr.rel (!%p12_p4) target bundleno = 1 (0x1), region = 76 }

</bundles_post_ra>
